<compile_context>
chip_gen: v6e
topology: v6e:2x2x1
jax: 0.10.0
libtpu: 0.0.40
codegen_flags: <defaults>
</compile_context>

<pallas_src>
import math

import jax
import jax.numpy as jnp
from jax import lax
from jax.experimental import pallas as pl
from jax.experimental.pallas import tpu as pltpu


# ---------------------------------------------------------------- tile picking
def _largest_tile(n_pad, target):
    """Largest multiple of 128 that divides n_pad and is <= target."""
    t = min(target, n_pad)
    t = (t // 128) * 128
    while t > 128 and n_pad % t != 0:
        t -= 128
    return max(t, 128)


def _default_tile_targets():
    """Per-generation tile targets from the perf review.

    v6e/v7x have a 2x256^2 MXU (tk=256 fills the contraction depth); v5e/v5p
    (and older) have 128-deep MXUs, so tk stays 128 there.  tq targets put the
    V stream past each chip's HBM roofline while staying inside default
    scoped VMEM.
    """
    try:
        kind = jax.devices()[0].device_kind.lower()
    except Exception:  # pragma: no cover - defensive
        kind = ""
    if "v7" in kind:
        return dict(tn=512, tq=256, tk=256)
    if "v6" in kind:
        return dict(tn=512, tq=512, tk=256)
    # v5e / v5p / v4 / unknown.
    return dict(tn=512, tq=256, tk=128)


# ------------------------------------------------------------------ Stage 1
def mlp_kernel(x_ref,
               w1_ref, b1_ref, w2_ref, b2_ref, w3_ref, b3_ref,
               w4_ref, b4_ref, w5_ref, b5_ref,
               h3_ref, h5_ref):
    def lin_relu(h_bf16, w_ref, b_ref):
        # bf16 operands on the MXU, f32 accumulate; bias + ReLU stay f32
        # (v5e has no bf16 VPU, so elementwise work is kept in f32).
        y = jnp.dot(h_bf16, w_ref[...], preferred_element_type=jnp.float32)
        return jnp.maximum(y + b_ref[...], 0.0)

    x = x_ref[0].astype(jnp.bfloat16)                          # (TN, 8), cols 3..7 zero pad
    h1 = lin_relu(x, w1_ref, b1_ref).astype(jnp.bfloat16)      # (TN, 64)
    h2 = lin_relu(h1, w2_ref, b2_ref).astype(jnp.bfloat16)     # (TN, 64)
    h3 = lin_relu(h2, w3_ref, b3_ref).astype(jnp.bfloat16)     # (TN, 64)   == output3
    h4 = lin_relu(h3, w4_ref, b4_ref).astype(jnp.bfloat16)     # (TN, 128)
    h5 = lin_relu(h4, w5_ref, b5_ref)                          # (TN, 1024) == output5 (f32)
    h3_ref[0] = h3
    h5_ref[0] = h5.astype(jnp.bfloat16)


# ------------------------------------------------------------------ Stage 2
def _make_attn_kernel(tk, n_valid, n_pad, scale):
    """Flash-style attention step with channel-first accumulation.

    Scores are computed as K @ Q^T -> (TK, TQ) so the (1024, TQ) accumulator
    can be written to the (B, 1024, N) output with no epilogue transpose.
    Padded keys (index >= n_valid) are masked to a large negative score so
    they carry zero softmax probability; padding is < 128 <= TK so every key
    tile always contains at least one valid key.
    """
    mask_keys = n_valid < n_pad

    def attn_kernel(q_ref, k_ref, v_ref, o_ref, m_sc, l_sc, acc_sc):
        ki = pl.program_id(2)

        @pl.when(ki == 0)
        def _():
            m_sc[...] = jnp.full_like(m_sc, -jnp.inf)
            l_sc[...] = jnp.zeros_like(l_sc)
            acc_sc[...] = jnp.zeros_like(acc_sc)

        q = q_ref[0]                                            # (TQ, 64)   bf16
        k = k_ref[0]                                            # (TK, 64)   bf16
        v = v_ref[0]                                            # (TK, 1024) bf16

        # Transposed scores: keys on sublanes, queries on lanes.  NT
        # contraction on the channel dims, no transposed copy of either side.
        s = lax.dot_general(k, q, (((1,), (1,)), ((), ())),
                            preferred_element_type=jnp.float32)  # (TK, TQ) f32
        s = s * scale

        if mask_keys:
            key_id = ki * tk + lax.broadcasted_iota(jnp.int32, s.shape, 0)
            s = jnp.where(key_id < n_valid, s, jnp.float32(-1e30))

        m_prev = m_sc[...]                                       # (1, TQ)
        m_new = jnp.maximum(m_prev, jnp.max(s, axis=0, keepdims=True))
        alpha = jnp.exp(m_prev - m_new)                          # (1, TQ) f32 (EUP)
        p = jnp.exp(s - m_new)                                   # (TK, TQ) f32 (EUP)
        l_sc[...] = alpha * l_sc[...] + jnp.sum(p, axis=0, keepdims=True)
        # acc (1024, TQ) += V^T @ P : contract the key dim of both operands.
        pv = lax.dot_general(v, p.astype(jnp.bfloat16),
                             (((0,), (0,)), ((), ())),
                             preferred_element_type=jnp.float32)  # (1024, TQ)
        acc_sc[...] = alpha * acc_sc[...] + pv
        m_sc[...] = m_new

        @pl.when(ki == pl.num_programs(2) - 1)
        def _():
            # Exact reciprocal: it is a (1, TQ) vector, once per query tile.
            inv_l = pl.reciprocal(l_sc[...])
            o_ref[0] = (acc_sc[...] * inv_l).astype(o_ref.dtype)  # (1024, TQ)

    return attn_kernel


# ------------------------------------------------------------------ Wrapper
def pointnet_forward(x, params, *, input_shape="bnc", tn=None, tq=None, tk=None):
    """PointNet forward.  Returns (B, 1024, N) float32.

    x: (B, N, 3) for input_shape='bnc' or (B, 3, N) for 'bcn'.
    N may be arbitrary; it is zero-padded to a multiple of 128 and padded
    keys are masked inside the attention kernel.
    """
    if input_shape == "bcn":
        x = jnp.transpose(x, (0, 2, 1))
    elif input_shape != "bnc":
        raise ValueError("Allowed shapes are 'bcn' and 'bnc'")

    B, N, C = x.shape
    assert C == 3

    n_pad = ((N + 127) // 128) * 128
    targets = _default_tile_targets()
    tn = _largest_tile(n_pad, tn or targets["tn"])
    tq = _largest_tile(n_pad, tq or targets["tq"])
    tk = _largest_tile(n_pad, tk or targets["tk"])

    (w1, b1), (w2, b2), (w3, b3), (w4, b4), (w5, b5) = params

    # Pad the 3-wide conv1 contraction up to 8 (sublane granule) and the
    # point axis up to n_pad; both are cheap wrapper-side pads.
    x_pad = jnp.pad(x, ((0, 0), (0, n_pad - N), (0, 5)))
    w1p = jnp.pad(w1, ((0, 5), (0, 0)))
    ws = [w.astype(jnp.bfloat16) for w in (w1p, w2, w3, w4, w5)]   # MXU operands
    bs = [b1, b2, b3, b4, b5]                                      # f32 (1, C)

    def const_spec(a):
        return pl.BlockSpec(a.shape, lambda b, i, _nd=a.ndim: (0,) * _nd)

    wb_specs, wb_args = [], []
    for w, b in zip(ws, bs):
        wb_specs += [const_spec(w), const_spec(b)]
        wb_args += [w, b]

    # Stage 1: N-tiled MLP producing h3 (Q/K) and h5 (V) in bf16.
    h3, h5 = pl.pallas_call(
        mlp_kernel,
        out_shape=(jax.ShapeDtypeStruct((B, n_pad, 64), jnp.bfloat16),
                   jax.ShapeDtypeStruct((B, n_pad, 1024), jnp.bfloat16)),
        grid_spec=pltpu.PrefetchScalarGridSpec(
            num_scalar_prefetch=0,
            grid=(B, n_pad // tn),
            in_specs=[pl.BlockSpec((1, tn, 8), lambda b, i: (b, i, 0))] + wb_specs,
            out_specs=(pl.BlockSpec((1, tn, 64), lambda b, i: (b, i, 0)),
                       pl.BlockSpec((1, tn, 1024), lambda b, i: (b, i, 0))),
        ),
        compiler_params=pltpu.CompilerParams(
            dimension_semantics=("parallel", "parallel")),
    )(x_pad, *wb_args)

    # Stage 2: flash-style attention, KV axis last ("arbitrary"), output
    # written channel-first straight from the (1024, TQ) accumulator.
    attn_kernel = _make_attn_kernel(tk, N, n_pad, 1.0 / math.sqrt(64.0))
    out = pl.pallas_call(
        attn_kernel,
        out_shape=jax.ShapeDtypeStruct((B, 1024, n_pad), jnp.float32),
        grid_spec=pltpu.PrefetchScalarGridSpec(
            num_scalar_prefetch=0,
            grid=(B, n_pad // tq, n_pad // tk),
            in_specs=[pl.BlockSpec((1, tq, 64),   lambda b, qi, ki: (b, qi, 0)),
                      pl.BlockSpec((1, tk, 64),   lambda b, qi, ki: (b, ki, 0)),
                      pl.BlockSpec((1, tk, 1024), lambda b, qi, ki: (b, ki, 0))],
            out_specs=pl.BlockSpec((1, 1024, tq), lambda b, qi, ki: (b, 0, qi)),
            scratch_shapes=[pltpu.VMEM((1, tq), jnp.float32),       # running max
                            pltpu.VMEM((1, tq), jnp.float32),       # running sum
                            pltpu.VMEM((1024, tq), jnp.float32)],   # accumulator
        ),
        compiler_params=pltpu.CompilerParams(
            dimension_semantics=("parallel", "parallel", "arbitrary")),
    )(h3, h3, h5)

    if n_pad != N:
        out = out[:, :, :N]
    return out


# --------------------------------------------------------------- Params/ref
def init_params(key):
    """Deterministic init matching nn.Conv1d(ci, co, 1) parameter shapes.

    PyTorch weight shape is (co, ci, 1); stored here pre-transposed as (ci, co)
    so the kernel can do x @ W.  Biases stored as (1, co)."""
    dims = [(3, 64), (64, 64), (64, 64), (64, 128), (128, 1024)]
    params = []
    for i, (ci, co) in enumerate(dims):
        kw, kb = jax.random.split(jax.random.fold_in(key, i))
        bound = 1.0 / math.sqrt(ci)  # PyTorch conv default init range
        w = jax.random.uniform(kw, (ci, co), jnp.float32, -bound, bound)
        b = jax.random.uniform(kb, (1, co), jnp.float32, -bound, bound)
        params.append((w, b))
    return params


def reference_forward(x_bnc, params):
    """Pure-JAX f32 reference of the same math (sanity check)."""
    (w1, b1), (w2, b2), (w3, b3), (w4, b4), (w5, b5) = params
    h = jax.nn.relu(x_bnc @ w1 + b1)
    h = jax.nn.relu(h @ w2 + b2)
    h3 = jax.nn.relu(h @ w3 + b3)
    h = jax.nn.relu(h3 @ w4 + b4)
    h5 = jax.nn.relu(h @ w5 + b5)
    scores = jnp.einsum("bic,bjc->bij", h3, h3) / math.sqrt(h3.shape[-1])
    attn = jax.nn.softmax(scores, axis=-1)
    out = jnp.einsum("bij,bjc->bic", attn, h5)
    return jnp.transpose(out, (0, 2, 1))


if __name__ == "__main__":
    key = jax.random.PRNGKey(0)
    k_in1, k_in2, k_par = jax.random.split(key, 3)
    params = init_params(k_par)

    # Case 1: N is an exact multiple of the tiles (no padding path).
    B, N = 2, 256
    x = jax.random.normal(k_in1, (B, N, 3), dtype=jnp.float32)  # 'bnc' input
    out = jax.block_until_ready(pointnet_forward(x, params))
    ref = reference_forward(x, params)
    assert out.shape == (B, 1024, N), out.shape
    # bf16 MXU operands -> loosened tolerance vs. the pure-f32 reference.
    assert jnp.allclose(out, ref, atol=2e-2, rtol=2e-2), (
        "mismatch vs reference, max abs diff = %f"
        % float(jnp.max(jnp.abs(out - ref))))

    # Case 2: non-multiple N exercises wrapper padding + in-kernel key mask.
    B2, N2 = 1, 200
    x2 = jax.random.normal(k_in2, (B2, N2, 3), dtype=jnp.float32)
    out2 = jax.block_until_ready(pointnet_forward(x2, params))
    ref2 = reference_forward(x2, params)
    assert out2.shape == (B2, 1024, N2), out2.shape
    assert jnp.allclose(out2, ref2, atol=2e-2, rtol=2e-2), (
        "padded-N mismatch vs reference, max abs diff = %f"
        % float(jnp.max(jnp.abs(out2 - ref2))))

    print("KERNEL_OK")
</pallas_src>

<mosaic_0001>
module attributes {stable_mosaic.version = 11 : i64} {
  func.func @mlp_kernel(%arg0: i32, %arg1: i32, %arg2: memref<1x256x8xf32, #tpu.memory_space<vmem>>, %arg3: memref<8x64xbf16, #tpu.memory_space<vmem>>, %arg4: memref<1x64xf32, #tpu.memory_space<vmem>>, %arg5: memref<64x64xbf16, #tpu.memory_space<vmem>>, %arg6: memref<1x64xf32, #tpu.memory_space<vmem>>, %arg7: memref<64x64xbf16, #tpu.memory_space<vmem>>, %arg8: memref<1x64xf32, #tpu.memory_space<vmem>>, %arg9: memref<64x128xbf16, #tpu.memory_space<vmem>>, %arg10: memref<1x128xf32, #tpu.memory_space<vmem>>, %arg11: memref<128x1024xbf16, #tpu.memory_space<vmem>>, %arg12: memref<1x1024xf32, #tpu.memory_space<vmem>>, %arg13: memref<1x256x64xbf16, #tpu.memory_space<vmem>>, %arg14: memref<1x256x1024xbf16, #tpu.memory_space<vmem>>) attributes {dimension_semantics = [#tpu.dimension_semantics<parallel>, #tpu.dimension_semantics<parallel>], iteration_bounds = array<i64: 2, 1>, scalar_prefetch = 0 : i64, scratch_operands = 0 : i64, tpu.core_type = #tpu.core_type<tc>, window_params = [{transform_indices = @transform_0, window_bounds = array<i64: 1, 256, 8>}, {pipeline_mode = #tpu.pipeline_mode<synchronous>, transform_indices = @transform_1, window_bounds = array<i64: 8, 64>}, {pipeline_mode = #tpu.pipeline_mode<synchronous>, transform_indices = @transform_2, window_bounds = array<i64: 1, 64>}, {pipeline_mode = #tpu.pipeline_mode<synchronous>, transform_indices = @transform_3, window_bounds = array<i64: 64, 64>}, {pipeline_mode = #tpu.pipeline_mode<synchronous>, transform_indices = @transform_4, window_bounds = array<i64: 1, 64>}, {pipeline_mode = #tpu.pipeline_mode<synchronous>, transform_indices = @transform_5, window_bounds = array<i64: 64, 64>}, {pipeline_mode = #tpu.pipeline_mode<synchronous>, transform_indices = @transform_6, window_bounds = array<i64: 1, 64>}, {pipeline_mode = #tpu.pipeline_mode<synchronous>, transform_indices = @transform_7, window_bounds = array<i64: 64, 128>}, {pipeline_mode = #tpu.pipeline_mode<synchronous>, transform_indices = @transform_8, window_bounds = array<i64: 1, 128>}, {pipeline_mode = #tpu.pipeline_mode<synchronous>, transform_indices = @transform_9, window_bounds = array<i64: 128, 1024>}, {pipeline_mode = #tpu.pipeline_mode<synchronous>, transform_indices = @transform_10, window_bounds = array<i64: 1, 1024>}, {transform_indices = @transform_11, window_bounds = array<i64: 1, 256, 64>}, {transform_indices = @transform_12, window_bounds = array<i64: 1, 256, 1024>}]} {
    %c0 = arith.constant 0 : index
    %c0_0 = arith.constant 0 : index
    %c0_1 = arith.constant 0 : index
    %0 = vector.load %arg2[%c0, %c0_0, %c0_1] : memref<1x256x8xf32, #tpu.memory_space<vmem>>, vector<1x256x8xf32>
    %1 = vector.shape_cast %0 : vector<1x256x8xf32> to vector<256x8xf32>
    %2 = arith.truncf %1 : vector<256x8xf32> to vector<256x8xbf16>
    %c0_2 = arith.constant 0 : index
    %c0_3 = arith.constant 0 : index
    %3 = vector.load %arg3[%c0_2, %c0_3] : memref<8x64xbf16, #tpu.memory_space<vmem>>, vector<8x64xbf16>
    %cst = arith.constant dense<0.000000e+00> : vector<256x64xf32>
    %4 = tpu.matmul %2, %3, %cst {dimension_numbers = #tpu.dot_dimension_numbers<[1], [0], [0], [1], [0, 0, 1, 1], [], []>} : vector<256x8xbf16>, vector<8x64xbf16>, vector<256x64xf32> -> vector<256x64xf32>
    %c0_4 = arith.constant 0 : index
    %c0_5 = arith.constant 0 : index
    %5 = vector.load %arg4[%c0_4, %c0_5] : memref<1x64xf32, #tpu.memory_space<vmem>>, vector<1x64xf32>
    %6 = vector.broadcast %5 : vector<1x64xf32> to vector<256x64xf32>
    %7 = arith.addf %4, %6 : vector<256x64xf32>
    %cst_6 = arith.constant 0.000000e+00 : f32
    %8 = vector.broadcast %cst_6 : f32 to vector<256x64xf32>
    %9 = arith.maximumf %7, %8 : vector<256x64xf32>
    %10 = arith.truncf %9 : vector<256x64xf32> to vector<256x64xbf16>
    %c0_7 = arith.constant 0 : index
    %c0_8 = arith.constant 0 : index
    %11 = vector.load %arg5[%c0_7, %c0_8] : memref<64x64xbf16, #tpu.memory_space<vmem>>, vector<64x64xbf16>
    %cst_9 = arith.constant dense<0.000000e+00> : vector<256x64xf32>
    %12 = tpu.matmul %10, %11, %cst_9 {dimension_numbers = #tpu.dot_dimension_numbers<[1], [0], [0], [1], [0, 0, 1, 1], [], []>} : vector<256x64xbf16>, vector<64x64xbf16>, vector<256x64xf32> -> vector<256x64xf32>
    %c0_10 = arith.constant 0 : index
    %c0_11 = arith.constant 0 : index
    %13 = vector.load %arg6[%c0_10, %c0_11] : memref<1x64xf32, #tpu.memory_space<vmem>>, vector<1x64xf32>
    %14 = vector.broadcast %13 : vector<1x64xf32> to vector<256x64xf32>
    %15 = arith.addf %12, %14 : vector<256x64xf32>
    %cst_12 = arith.constant 0.000000e+00 : f32
    %16 = vector.broadcast %cst_12 : f32 to vector<256x64xf32>
    %17 = arith.maximumf %15, %16 : vector<256x64xf32>
    %18 = arith.truncf %17 : vector<256x64xf32> to vector<256x64xbf16>
    %c0_13 = arith.constant 0 : index
    %c0_14 = arith.constant 0 : index
    %19 = vector.load %arg7[%c0_13, %c0_14] : memref<64x64xbf16, #tpu.memory_space<vmem>>, vector<64x64xbf16>
    %cst_15 = arith.constant dense<0.000000e+00> : vector<256x64xf32>
    %20 = tpu.matmul %18, %19, %cst_15 {dimension_numbers = #tpu.dot_dimension_numbers<[1], [0], [0], [1], [0, 0, 1, 1], [], []>} : vector<256x64xbf16>, vector<64x64xbf16>, vector<256x64xf32> -> vector<256x64xf32>
    %c0_16 = arith.constant 0 : index
    %c0_17 = arith.constant 0 : index
    %21 = vector.load %arg8[%c0_16, %c0_17] : memref<1x64xf32, #tpu.memory_space<vmem>>, vector<1x64xf32>
    %22 = vector.broadcast %21 : vector<1x64xf32> to vector<256x64xf32>
    %23 = arith.addf %20, %22 : vector<256x64xf32>
    %cst_18 = arith.constant 0.000000e+00 : f32
    %24 = vector.broadcast %cst_18 : f32 to vector<256x64xf32>
    %25 = arith.maximumf %23, %24 : vector<256x64xf32>
    %26 = arith.truncf %25 : vector<256x64xf32> to vector<256x64xbf16>
    %c0_19 = arith.constant 0 : index
    %c0_20 = arith.constant 0 : index
    %27 = vector.load %arg9[%c0_19, %c0_20] : memref<64x128xbf16, #tpu.memory_space<vmem>>, vector<64x128xbf16>
    %cst_21 = arith.constant dense<0.000000e+00> : vector<256x128xf32>
    %28 = tpu.matmul %26, %27, %cst_21 {dimension_numbers = #tpu.dot_dimension_numbers<[1], [0], [0], [1], [0, 0, 1, 1], [], []>} : vector<256x64xbf16>, vector<64x128xbf16>, vector<256x128xf32> -> vector<256x128xf32>
    %c0_22 = arith.constant 0 : index
    %c0_23 = arith.constant 0 : index
    %29 = vector.load %arg10[%c0_22, %c0_23] : memref<1x128xf32, #tpu.memory_space<vmem>>, vector<1x128xf32>
    %30 = vector.broadcast %29 : vector<1x128xf32> to vector<256x128xf32>
    %31 = arith.addf %28, %30 : vector<256x128xf32>
    %cst_24 = arith.constant 0.000000e+00 : f32
    %32 = vector.broadcast %cst_24 : f32 to vector<256x128xf32>
    %33 = arith.maximumf %31, %32 : vector<256x128xf32>
    %34 = arith.truncf %33 : vector<256x128xf32> to vector<256x128xbf16>
    %c0_25 = arith.constant 0 : index
    %c0_26 = arith.constant 0 : index
    %35 = vector.load %arg11[%c0_25, %c0_26] : memref<128x1024xbf16, #tpu.memory_space<vmem>>, vector<128x1024xbf16>
    %cst_27 = arith.constant dense<0.000000e+00> : vector<256x1024xf32>
    %36 = tpu.matmul %34, %35, %cst_27 {dimension_numbers = #tpu.dot_dimension_numbers<[1], [0], [0], [1], [0, 0, 1, 1], [], []>} : vector<256x128xbf16>, vector<128x1024xbf16>, vector<256x1024xf32> -> vector<256x1024xf32>
    %c0_28 = arith.constant 0 : index
    %c0_29 = arith.constant 0 : index
    %37 = vector.load %arg12[%c0_28, %c0_29] : memref<1x1024xf32, #tpu.memory_space<vmem>>, vector<1x1024xf32>
    %38 = vector.broadcast %37 : vector<1x1024xf32> to vector<256x1024xf32>
    %39 = arith.addf %36, %38 : vector<256x1024xf32>
    %cst_30 = arith.constant 0.000000e+00 : f32
    %40 = vector.broadcast %cst_30 : f32 to vector<256x1024xf32>
    %41 = arith.maximumf %39, %40 : vector<256x1024xf32>
    %c0_31 = arith.constant 0 : index
    %c0_32 = arith.constant 0 : index
    %c0_33 = arith.constant 0 : index
    %42 = vector.load %arg13[%c0_31, %c0_32, %c0_33] : memref<1x256x64xbf16, #tpu.memory_space<vmem>>, vector<1x256x64xbf16>
    %43 = vector.shape_cast %42 : vector<1x256x64xbf16> to vector<256x64xbf16>
    %44 = vector.shape_cast %26 : vector<256x64xbf16> to vector<1x256x64xbf16>
    tpu.vector_store %arg13[%c0_31, %c0_32, %c0_33], %44 {strides = array<i32>} : memref<1x256x64xbf16, #tpu.memory_space<vmem>>, vector<1x256x64xbf16>,
    %45 = arith.truncf %41 : vector<256x1024xf32> to vector<256x1024xbf16>
    %c0_34 = arith.constant 0 : index
    %c0_35 = arith.constant 0 : index
    %c0_36 = arith.constant 0 : index
    %46 = vector.load %arg14[%c0_34, %c0_35, %c0_36] : memref<1x256x1024xbf16, #tpu.memory_space<vmem>>, vector<1x256x1024xbf16>
    %47 = vector.shape_cast %46 : vector<1x256x1024xbf16> to vector<256x1024xbf16>
    %48 = vector.shape_cast %45 : vector<256x1024xbf16> to vector<1x256x1024xbf16>
    tpu.vector_store %arg14[%c0_34, %c0_35, %c0_36], %48 {strides = array<i32>} : memref<1x256x1024xbf16, #tpu.memory_space<vmem>>, vector<1x256x1024xbf16>,
    return
  }
  func.func @transform_0(%arg0: i32, %arg1: i32) -> (i32, i32, i32) {
    %c0_i32 = arith.constant 0 : i32
    %c0_i32_0 = arith.constant 0 : i32
    return %arg0, %arg1, %c0_i32 : i32, i32, i32
  }
  func.func @transform_1(%arg0: i32, %arg1: i32) -> (i32, i32) {
    %c0_i32 = arith.constant 0 : i32
    %c0_i32_0 = arith.constant 0 : i32
    %c0_i32_1 = arith.constant 0 : i32
    return %c0_i32, %c0_i32_0 : i32, i32
  }
  func.func @transform_2(%arg0: i32, %arg1: i32) -> (i32, i32) {
    %c0_i32 = arith.constant 0 : i32
    %c0_i32_0 = arith.constant 0 : i32
    %c0_i32_1 = arith.constant 0 : i32
    return %c0_i32, %c0_i32_0 : i32, i32
  }
  func.func @transform_3(%arg0: i32, %arg1: i32) -> (i32, i32) {
    %c0_i32 = arith.constant 0 : i32
    %c0_i32_0 = arith.constant 0 : i32
    %c0_i32_1 = arith.constant 0 : i32
    return %c0_i32, %c0_i32_0 : i32, i32
  }
  func.func @transform_4(%arg0: i32, %arg1: i32) -> (i32, i32) {
    %c0_i32 = arith.constant 0 : i32
    %c0_i32_0 = arith.constant 0 : i32
    %c0_i32_1 = arith.constant 0 : i32
    return %c0_i32, %c0_i32_0 : i32, i32
  }
  func.func @transform_5(%arg0: i32, %arg1: i32) -> (i32, i32) {
    %c0_i32 = arith.constant 0 : i32
    %c0_i32_0 = arith.constant 0 : i32
    %c0_i32_1 = arith.constant 0 : i32
    return %c0_i32, %c0_i32_0 : i32, i32
  }
  func.func @transform_6(%arg0: i32, %arg1: i32) -> (i32, i32) {
    %c0_i32 = arith.constant 0 : i32
    %c0_i32_0 = arith.constant 0 : i32
    %c0_i32_1 = arith.constant 0 : i32
    return %c0_i32, %c0_i32_0 : i32, i32
  }
  func.func @transform_7(%arg0: i32, %arg1: i32) -> (i32, i32) {
    %c0_i32 = arith.constant 0 : i32
    %c0_i32_0 = arith.constant 0 : i32
    %c0_i32_1 = arith.constant 0 : i32
    return %c0_i32, %c0_i32_0 : i32, i32
  }
  func.func @transform_8(%arg0: i32, %arg1: i32) -> (i32, i32) {
    %c0_i32 = arith.constant 0 : i32
    %c0_i32_0 = arith.constant 0 : i32
    %c0_i32_1 = arith.constant 0 : i32
    return %c0_i32, %c0_i32_0 : i32, i32
  }
  func.func @transform_9(%arg0: i32, %arg1: i32) -> (i32, i32) {
    %c0_i32 = arith.constant 0 : i32
    %c0_i32_0 = arith.constant 0 : i32
    %c0_i32_1 = arith.constant 0 : i32
    return %c0_i32, %c0_i32_0 : i32, i32
  }
  func.func @transform_10(%arg0: i32, %arg1: i32) -> (i32, i32) {
    %c0_i32 = arith.constant 0 : i32
    %c0_i32_0 = arith.constant 0 : i32
    %c0_i32_1 = arith.constant 0 : i32
    return %c0_i32, %c0_i32_0 : i32, i32
  }
  func.func @transform_11(%arg0: i32, %arg1: i32) -> (i32, i32, i32) {
    %c0_i32 = arith.constant 0 : i32
    %c0_i32_0 = arith.constant 0 : i32
    return %arg0, %arg1, %c0_i32 : i32, i32, i32
  }
  func.func @transform_12(%arg0: i32, %arg1: i32) -> (i32, i32, i32) {
    %c0_i32 = arith.constant 0 : i32
    %c0_i32_0 = arith.constant 0 : i32
    return %arg0, %arg1, %c0_i32 : i32, i32, i32
  }
}

</mosaic_0001>

<bundles_post_ra>
// kernel: tpu_custom_call.1
= control target key start
LH: loop header
LB: loop body
LE: loop exit
PB: predicated region body
PF: predicated region fallthrough
CT: control target
= control target key end

     0   :  { %18 = vsyncpa [#allocation3], 0  ;;  %s6675_s0 = inlined_call_operand.vmem [shape: f32[2,256,8], index: 0, kind: input, shape index: {}]   ;;  %s6676_s1 = inlined_call_operand.vmem [shape: bf16[8,64], index: 1, kind: input, shape index: {}]   ;;  %s6677_s2 = inlined_call_operand.vmem [shape: f32[1,64], index: 2, kind: input, shape index: {}]   ;;  %s6678_s3 = inlined_call_operand.vmem [shape: bf16[64,64], index: 3, kind: input, shape index: {}]   ;;  %s6679_s4 = inlined_call_operand.vmem [shape: f32[1,64], index: 4, kind: input, shape index: {}]   ;;  %s6680_s5 = inlined_call_operand.hbm [shape: bf16[64,64], index: 5, kind: input, shape index: {}]   ;;  %s6681_s6 = inlined_call_operand.vmem [shape: f32[1,64], index: 6, kind: input, shape index: {}]   ;;  %s6682_s7 = inlined_call_operand.hbm [shape: bf16[64,128], index: 7, kind: input, shape index: {}]   ;;  %s6683_s8 = inlined_call_operand.vmem [shape: f32[1,128], index: 8, kind: input, shape index: {}]   ;;  %s6684_s9 = inlined_call_operand.vmem [shape: bf16[128,1024], index: 9, kind: input, shape index: {}]   ;;  %s6685_s10 = inlined_call_operand.vmem [shape: f32[1,1024], index: 10, kind: input, shape index: {}]   ;;  %s6686_s11 = inlined_call_operand.vmem [shape: bf16[2,256,64], index: 11, kind: output, shape index: {0}]   ;;  %s6687_s12 = inlined_call_operand.hbm [shape: bf16[2,256,1024], index: 12, kind: output, shape index: {1}]  }
   0x1   :  { %19 = vsyncpa [#allocation6], 0 }
   0x2   :  { %20 = vsyncpa [#allocation4], 0 }
   0x3   :  { %22 = vsyncpa [#allocation4 + $0x1], 0  ;;  %s5391_s21 = smov 0   ;;  %s5393_s22 = smov 0  }
   0x4   :  { %s5395_s23 = smov 0   ;;  %s5397_s24 = smov 0  }
   0x5   :  { %s5399_s25 = smov 0   ;;  %s5401_s26 = smov 0  }
   0x6 LB: > { %6692 = sst [smem:[#allocation11_spill]] %s5304_s23  ;;  %s4368_s27 = sadd.s32 4294967295, %s5316_s26   ;;  %s5316_s26 = sphi %s5401_s26, %s28_s26   ;;  %s5312_s25 = sphi %s5399_s25, %s6706_s25   ;;  %s5308_s24 = sphi %s5397_s24, %s6705_s24   ;;  %s5304_s23 = sphi %s5395_s23, %s6704_s23   ;;  %s5300_s22 = sphi %s5393_s22, %s6708_s22   ;;  %s5296_s21 = sphi %s5391_s21, %s6707_s21  }
   0x7   : > { %6693 = sst [smem:[#allocation12_spill]] %s5312_s25  ;;  %s4369_s28 = sadd.s32 4294967294, %s5316_s26  }
   0x8   : > { %s40_s29 = sadd.s32 1, %s5312_s25  ;;  %s315_s30 = sadd.s32 1, %s5304_s23 }
   0x9   : > { %p42_p0 = scmp.ge.s32.totalorder %s40_s29, 2  ;;  %p325_p1 = scmp.ne.s32.totalorder %s5304_s23, %s5300_s22 }
   0xa   : > { %p326_p2 = scmp.eq.s32.totalorder %s4368_s27, 1  ;;  %p331_p3 = scmp.ne.s32.totalorder %s5300_s22, %s5296_s21 }
   0xb   : > { %s6710_s29 = smov (%p42_p0, %s40_s29), 0  ;;  %p332_p5 = scmp.eq.s32.totalorder %s4369_s28, 1 }
   0xc   : > { %6694 = sst [smem:[#allocation13_spill]] %s6710_s29  ;;  %p5431_p4 = por %p326_p2, %p325_p1 }
   0xd   : > { %s310_s14 = ssub.s32 %s5312_s25, %s6710_s29  ;;  %p4370_p6 = scmp.ge.s32.totalorder %s5316_s26, 1 }
   0xe   : > { %s6695_s13 = scalar_select %p5431_p4, 1, 0 }
   0xf   : > { %p313_p7 = scmp.eq.s32.totalorder %s310_s14, 0  ;;  %p5438_p8 = por %p332_p5, %p331_p3 }
  0x10   : > { %p339_p9 = scmp.lt.s32.totalorder %s5316_s26, 3  ;;  %p5450_p11 = scmp.eq.s32.totalorder %s4368_s27, 0 }
  0x11   : > { %s6696_s15 = scalar_select %p5438_p8, 1, 0 }
  0x12   : > { %s5444_s16 = scalar_select %p313_p7, %s5304_s23, %s315_s30  }
  0x13   : > { %p5446_p10 = pnand %p4370_p6, %p339_p9  ;;  %s5318_s19 = smov [#allocation2]  }
  0x14   : > { %6697 = sst [smem:[#allocation14_spill]] %s5444_s16  ;;  %s363_s20 = sshll.u32 %s5318_s19, 4  ;;  %s364_s20 = int_to_ptr.vmem [resolvable:$true] %s363_s20 }
  0x15   : > { %p5096_p12 = pneg %p5446_p10  ;;  %s5319_s30 = smov [#allocation5]  }
  0x16   : > { %s379_s14 = sshll.u32 %s5319_s30, 4  ;;  %s5191_s27 = scalar_lea.vmem %s364_s20, 512  ;;  %s380_s14 = int_to_ptr.vmem [resolvable:$true] %s379_s14 }
  0x17   : > { %p5458_p13 = pnand %p5450_p11, %p5096_p12  ;;  %p5192_p1 = scmp.ne.s32.totalorder %s364_s20, %s5191_s27 }
  0x18   : > { %p5199_p5 = scmp.lt.s32.totalorder %s364_s20, %s364_s20  ;;  %p5200_p6 = scmp.lt.s32.totalorder %s5191_s27, %s5191_s27 }
  0x19   : > { %p5182_p0 = pneg %p5458_p13 }
  0x1a   : > { %p5201_p7 = por %p5200_p6, %p5199_p5 }
  0x1b   : > { %p5194_p2 = pnand %p5192_p1, %p5182_p0 }
  0x1d   : > { %p5195_p3 = pneg %p5194_p2 }
  0x1f   : > { %p5202_p9 = pnand %p5201_p7, %p5195_p3 }
  0x21   : > { %5205 = shalt.err (!%p5202_p9)
}
  0x22   : > { %s5320_s19 = smov 64   ;;  %s5321_s29 = smov 4  }
  0x23   : > { %5099 = dma.hbm_to_vmem [thread:$0]  (!%p5458_p13), %s6680_s5, 512, %s364_s20, [#allocation3], %s5320_s19, %s5320_s19, %s5321_s29  }
  0x24   : > { %s5217_s16 = scalar_lea.vmem %s380_s14, 512  ;;  %p5225_p8 = scmp.lt.s32.totalorder %s380_s14, %s380_s14 }
  0x25   : > { %p5218_p12 = scmp.ne.s32.totalorder %s380_s14, %s5217_s16  ;;  %p5226_p4 = scmp.lt.s32.totalorder %s5217_s16, %s5217_s16 }
  0x27   : > { %p5220_p1 = pnand %p5218_p12, %p5182_p0  ;;  %p5227_p5 = por %p5226_p4, %p5225_p8 }
  0x29   : > { %p5221_p2 = pneg %p5220_p1 }
  0x2b   : > { %p5228_p3 = pnand %p5227_p5, %p5221_p2 }
  0x2d   : > { %5231 = shalt.err (!%p5228_p3)
}
  0x2e   : > { %5102 = dma.hbm_to_vmem [thread:$0]  (!%p5458_p13), %s6682_s7, 512, %s380_s14, [#allocation6], %s5320_s19, %s5320_s19, %s5321_s29  }
  0x2f   : > { %417 = sbr.rel (%p5446_p10) target bundleno = 1355 (0x54b), region = 64 }
  0x34   : > { %5283 = dma.done.wait (%p5450_p11), [#allocation3], 512  }
  0x35   : > { %5285 = vsyncadd (%p5450_p11), [#allocation3], 4294966784 }
  0x36   : > { %5287 = dma.done.wait (%p5450_p11), [#allocation6], 512  }
  0x37   : > { %5289 = vsyncadd (%p5450_p11), [#allocation6], 4294966784  ;;  %p477_p4 = scmp.lt.s32.totalorder %s5308_s24, 1  ;;  %vm603_vm0 = vcmask 1043456   ;;  %v546_v0 = vld [vmem:[%s6676_s1] sm:$0xf] }
  0x38   : > { %vm554_vm1 = vcmask 64512   ;;  %5085 = vmatprep.subr.msk.bf16.mxu0 %vm603_vm0, %v546_v0  ;;  %v605_v3 = vsel %vm603_vm0, %v546_v0, 0  ;;  %v5167_v17 = vld [vmem:[%s6678_s3 + $0x18] sm:$0xff]   ;;  %v5168_v51 = vld [vmem:[%s6678_s3 + $0x10] sm:$0xff]   ;;  %v5169_v52 = vld [vmem:[%s6678_s3 + $0x8] sm:$0xff]   ;;  %vm855_vm2 = vcmask 523264  }
  0x39   : > { %s5492_s23 = scalar_select %p477_p4, %s5308_s24, 1  ;;  %4932 = vmatpush3.bf16.msra.mxu0 %v605_v3  ;;  %4965 = vmatprep.subr.bf16.mxu1 %v5167_v17  ;;  %v5170_v53 = vld [vmem:[%s6678_s3] sm:$0xff]   ;;  %v5171_v54 = vld [vmem:[#allocation2 + $0x18] sm:$0xff]   ;;  %v5172_v55 = vld [vmem:[#allocation2 + $0x10] sm:$0xff]   ;;  %vm3271_vm3 = vcmask 519168  }
  0x3a   : > { %4966 = vmatpush3.bf16.msra.mxu1 %v5167_v17  ;;  %5005 = vmatprep.subr.bf16.mxu0 %v5171_v54  ;;  %v5173_v56 = vld [vmem:[#allocation2 + $0x8] sm:$0xff]   ;;  %v5174_v57 = vld [vmem:[#allocation2] sm:$0xff]   ;;  %s473_s18 = sand.u32 1, %s5300_s22   ;;  %s4853_s27 = sshll.u32 %s5308_s24, 14 }
  0x3b   : > { %s4691_s25 = sshll.u32 %s5492_s23, 8  ;;  %4967 = vmatprep.subr.bf16.mxu1 %v5168_v51  ;;  %v5566_v60 = vld [vmem:[%s6677_s2] ss:$0 sm:$0xff]  ;;  %s4692_s19 = sshll.u32 %s5492_s23, 7 }
  0x3c   : > { %s5498_s17 = scalar_lea.vmem %s6675_s0, %s4691_s25  ;;  %s5736_s25 = scalar_lea.vmem %s6686_s11, %s4692_s19 }
  0x3d   : > { %v498_v1 = vld [vmem:[%s5498_s17] sm:$0xff]  ;;  %v499_v2 = vld [vmem:[%s5498_s17 + $0x8] sm:$0xff]  ;;  %v500_v5 = vld [vmem:[%s5498_s17 + $0x10] sm:$0xff]  ;;  %s4377_s14 = sshll.u32 %s473_s18, 10  ;;  %s6630_s24 = scalar_lea.sflag [#allocation4], %s473_s18 }
  0x3e   : > { %v530_v4 = vpack.c.bf16 %v499_v2, %v498_v1  ;;  %v501_v6 = vld [vmem:[%s5498_s17 + $0x18] sm:$0xff]  ;;  %v502_v7 = vld [vmem:[%s5498_s17 + $0x20] sm:$0xff]  ;;  %v503_v9 = vld [vmem:[%s5498_s17 + $0x28] sm:$0xff]  ;;  %4968 = vmatpush3.bf16.msra.mxu1 %v5168_v51  ;;  %s6202_s19 = scalar_lea.vmem [#allocation7], %s4377_s14  ;;  %p6701_p10 = scmp.ne.s32.totalorder %s6695_s13, 0 }
  0x3f   : > { %v531_v8 = vpack.c.bf16 %v501_v6, %v500_v5  ;;  %v532_v10 = vpack.c.bf16 %v503_v9, %v502_v7  ;;  %v504_v11 = vld [vmem:[%s5498_s17 + $0x30] sm:$0xff]  ;;  %v505_v12 = vld [vmem:[%s5498_s17 + $0x38] sm:$0xff]  ;;  %v506_v13 = vld [vmem:[%s5498_s17 + $0x40] sm:$0xff]  ;;  %4969 = vmatprep.subr.bf16.mxu1 %v5169_v52  ;;  %s4230_s23 = sshll.u32 %s6202_s19, 4  ;;  %s5323_s28 = smov [#allocation7]   ;;  %s6624_s23 = int_to_ptr.vmem [resolvable:$true] %s4230_s23 }
  0x40   : > { %4933 = vmatprep.mubr.msk.bf16.mxu0 %vm554_vm1, %v530_v4  ;;  %v507_v14 = vld [vmem:[%s5498_s17 + $0x48] sm:$0xff]  ;;  %v533_v15 = vpack.c.bf16 %v505_v12, %v504_v11  ;;  %v508_v18 = vld [vmem:[%s5498_s17 + $0x50] sm:$0xff]  ;;  %v509_v19 = vld [vmem:[%s5498_s17 + $0x58] sm:$0xff]  ;;  %s5232_s20 = scalar_lea.vmem %s6624_s23, 16384  ;;  %s5236_s14 = sshll.u32 %s5323_s28, 4  ;;  %s5237_s14 = int_to_ptr.vmem [resolvable:$false] %s5236_s14 }
  0x41   : > { %4934 = vmatmul.mubr.msk.bf16.vlgmr.msra.gmra.mxu0 %vm554_vm1, %v531_v8  ;;  %v534_v16 = vpack.c.bf16 %v507_v14, %v506_v13  ;;  %v510_v20 = vld [vmem:[%s5498_s17 + $0x60] sm:$0xff]  ;;  %v511_v21 = vld [vmem:[%s5498_s17 + $0x68] sm:$0xff]  ;;  %v535_v22 = vpack.c.bf16 %v509_v19, %v508_v18  ;;  %v512_v24 = vld [vmem:[%s5498_s17 + $0x70] sm:$0xff]  ;;  %p5233_p8 = scmp.ne.s32.totalorder %s6624_s23, %s5232_s20  ;;  %s5238_s30 = scalar_lea.vmem %s5237_s14, 32768 }
  0x42   : > { %4937 = vmatprep.mubr.msk.bf16.mxu0 %vm554_vm1, %v532_v10  ;;  %v536_v23 = vpack.c.bf16 %v511_v21, %v510_v20  ;;  %v513_v25 = vld [vmem:[%s5498_s17 + $0x78] sm:$0xff]  ;;  %v514_v26 = vld [vmem:[%s5498_s17 + $0x80] sm:$0xff]  ;;  %v515_v27 = vld [vmem:[%s5498_s17 + $0x88] sm:$0xff]  ;;  %4970 = vmatpush3.bf16.msra.mxu1 %v5169_v52  ;;  %p5239_p0 = scmp.lt.s32.totalorder %s6624_s23, %s5237_s14  ;;  %p5240_p6 = scmp.lt.s32.totalorder %s5238_s30, %s5232_s20 }
  0x43   : > { %v537_v28 = vpack.c.bf16 %v513_v25, %v512_v24  ;;  %v538_v29 = vpack.c.bf16 %v515_v27, %v514_v26  ;;  %v516_v30 = vld [vmem:[%s5498_s17 + $0x90] sm:$0xff]  ;;  %v517_v31 = vld [vmem:[%s5498_s17 + $0x98] sm:$0xff]  ;;  %v518_v32 = vld [vmem:[%s5498_s17 + $0xa0] sm:$0xff]  ;;  %4971 = vmatprep.subr.bf16.mxu1 %v5170_v53  ;;  %5006 = vmatpush3.bf16.msra.mxu0 %v5171_v54  ;;  %p5234_p11 = pnand %p5233_p8, %p6701_p10 }
  0x44   : > { %v519_v33 = vld [vmem:[%s5498_s17 + $0xa8] sm:$0xff]  ;;  %v539_v34 = vpack.c.bf16 %v517_v31, %v516_v30  ;;  %v520_v36 = vld [vmem:[%s5498_s17 + $0xb0] sm:$0xff]  ;;  %v521_v37 = vld [vmem:[%s5498_s17 + $0xb8] sm:$0xff]  ;;  %5007 = vmatprep.subr.bf16.mxu0 %v5172_v55  ;;  %p5241_p7 = por %p5240_p6, %p5239_p0 }
  0x45   : > { %v540_v35 = vpack.c.bf16 %v519_v33, %v518_v32  ;;  %v522_v38 = vld [vmem:[%s5498_s17 + $0xc0] sm:$0xff]  ;;  %v523_v39 = vld [vmem:[%s5498_s17 + $0xc8] sm:$0xff]  ;;  %v541_v40 = vpack.c.bf16 %v521_v37, %v520_v36  ;;  %v524_v42 = vld [vmem:[%s5498_s17 + $0xd0] sm:$0xff]  ;;  %p5235_p13 = pneg %p5234_p11 }
  0x46   : > { %v542_v41 = vpack.c.bf16 %v523_v39, %v522_v38  ;;  %v525_v43 = vld [vmem:[%s5498_s17 + $0xd8] sm:$0xff]  ;;  %v526_v44 = vld [vmem:[%s5498_s17 + $0xe0] sm:$0xff]  ;;  %v527_v45 = vld [vmem:[%s5498_s17 + $0xe8] sm:$0xff]  ;;  %4972 = vmatpush3.bf16.msra.mxu1 %v5170_v53 }
  0x47   : > { %v543_v46 = vpack.c.bf16 %v525_v43, %v524_v42  ;;  %v544_v47 = vpack.c.bf16 %v527_v45, %v526_v44  ;;  %v528_v48 = vld [vmem:[%s5498_s17 + $0xf0] sm:$0xff]  ;;  %v529_v49 = vld [vmem:[%s5498_s17 + $0xf8] sm:$0xff]  ;;  %5008 = vmatpush3.bf16.msra.mxu0 %v5172_v55  ;;  %s6622_s17 = scalar_lea.hbm %s6687_s12, %s4853_s27  ;;  %p5242_p9 = pnand %p5241_p7, %p5235_p13 }
  0x48   : > { %v545_v50 = vpack.c.bf16 %v529_v49, %v528_v48  ;;  %5009 = vmatprep.subr.bf16.mxu0 %v5173_v56 }
  0x49   : > { %4938 = vmatmul.mubr.msk.bf16.gmra.mxu0 %vm554_vm1, %v533_v15 }
  0x4a   : > { %4941 = vmatprep.mubr.msk.bf16.mxu0 %vm554_vm1, %v534_v16 }
  0x4b   : > { %5010 = vmatpush3.bf16.msra.mxu0 %v5173_v56 }
  0x4c   : > { %5011 = vmatprep.subr.bf16.mxu0 %v5174_v57 }
  0x4f   : > { %5012 = vmatpush3.bf16.msra.mxu0 %v5174_v57 }
  0x51   : > { %4942 = vmatmul.mubr.msk.bf16.gmra.mxu0 %vm554_vm1, %v535_v22 }
  0x52   : > { %4945 = vmatprep.mubr.msk.bf16.mxu0 %vm554_vm1, %v536_v23 }
  0x59   : > { %4946 = vmatmul.mubr.msk.bf16.gmra.mxu0 %vm554_vm1, %v537_v28 }
  0x5a   : > { %4949 = vmatprep.mubr.msk.bf16.mxu0 %vm554_vm1, %v538_v29 }
  0x61   : > { %4950 = vmatmul.mubr.msk.bf16.gmra.mxu0 %vm554_vm1, %v539_v34 }
  0x62   : > { %4953 = vmatprep.mubr.msk.bf16.mxu0 %vm554_vm1, %v540_v35 }
  0x69   : > { %4954 = vmatmul.mubr.msk.bf16.gmra.mxu0 %vm554_vm1, %v541_v40 }
  0x6a   : > { %4957 = vmatprep.mubr.msk.bf16.mxu0 %vm554_vm1, %v542_v41 }
  0x71   : > { %4958 = vmatmul.mubr.msk.bf16.gmra.mxu0 %vm554_vm1, %v543_v46 }
  0x72   : > { %4961 = vmatprep.mubr.msk.bf16.mxu0 %vm554_vm1, %v544_v47 }
  0x79   : > { %4962 = vmatmul.mubr.msk.bf16.gmra.mxu0 %vm554_vm1, %v545_v50 }
 0x101   : > { %v4935_v58 = vpop.f32.mrf.mxu0 }
 0x102   : > { %v650_v0 = vadd.f32 %v4935_v58, %v5566_v60 }
 0x103   : > { %v641_v59 = vpop.f32.mrf.mxu0 }
 0x104   : > { %v642_v62 = vadd.f32 %v5566_v60, %v641_v59  ;;  %v770_v7 = vmax.f32 %v650_v0, 0.0 }
 0x105   : > { %v4936_v61 = vpop.f32.mrf.mxu0 }
 0x106   : > { %v653_v63 = vadd.f32 %v4936_v61, %v5566_v60  ;;  %v768_v5 = vmax.f32 %v642_v62, 0.0 }
 0x107   : > { %v644_v1 = vpop.f32.mrf.mxu0 }
 0x108   : > { %v645_v2 = vadd.f32 %v5566_v60, %v644_v1  ;;  %v771_v3 = vmax.f32 %v653_v63, 0.0 }
 0x109   : > { %v4939_v4 = vpop.f32.mrf.mxu0 }
 0x10a   : > { %v769_v6 = vmax.f32 %v645_v2, 0.0  ;;  %v666_v8 = vadd.f32 %v4939_v4, %v5566_v60  ;;  %v801_v12 = vpack.c.bf16 %v771_v3, %v770_v7 }
 0x10b   : > { %v657_v9 = vpop.f32.mrf.mxu0 }
 0x10c   : > { %v658_v10 = vadd.f32 %v5566_v60, %v657_v9  ;;  %v800_v11 = vpack.c.bf16 %v769_v6, %v768_v5  ;;  %v774_v15 = vmax.f32 %v666_v8, 0.0 }
 0x10d   : > { %v4940_v13 = vpop.f32.mrf.mxu0 }
 0x10e   : > { %v669_v14 = vadd.f32 %v4940_v13, %v5566_v60  ;;  %4973 = vmatprep.mubr.msk.bf16.mxu1 %vm855_vm2, %v800_v11  ;;  %v772_v17 = vmax.f32 %v658_v10, 0.0 }
 0x10f   : > { %v660_v16 = vpop.f32.mrf.mxu0  ;;  %4974 = vmatmul.mubr.msk.bf16.vlgmr.msra.gmra.mxu1 %vm855_vm2, %v801_v12 }
 0x110   : > { %v775_v18 = vmax.f32 %v669_v14, 0.0  ;;  %v661_v19 = vadd.f32 %v5566_v60, %v660_v16 }
 0x111   : > { %v4943_v20 = vpop.f32.mrf.mxu0 }
 0x112   : > { %v773_v21 = vmax.f32 %v661_v19, 0.0  ;;  %v803_v22 = vpack.c.bf16 %v775_v18, %v774_v15  ;;  %v682_v23 = vadd.f32 %v4943_v20, %v5566_v60 }
 0x113   : > { %v673_v24 = vpop.f32.mrf.mxu0 }
 0x114   : > { %v802_v25 = vpack.c.bf16 %v773_v21, %v772_v17  ;;  %v674_v26 = vadd.f32 %v5566_v60, %v673_v24  ;;  %v778_v29 = vmax.f32 %v682_v23, 0.0 }
 0x115   : > { %v4944_v27 = vpop.f32.mrf.mxu0 }
 0x116   : > { %v685_v28 = vadd.f32 %v4944_v27, %v5566_v60  ;;  %4977 = vmatprep.mubr.msk.bf16.mxu1 %vm855_vm2, %v802_v25  ;;  %v776_v31 = vmax.f32 %v674_v26, 0.0 }
 0x117   : > { %v676_v30 = vpop.f32.mrf.mxu0  ;;  %4978 = vmatmul.mubr.msk.bf16.gmra.mxu1 %vm855_vm2, %v803_v22 }
 0x118   : > { %v779_v32 = vmax.f32 %v685_v28, 0.0  ;;  %v677_v33 = vadd.f32 %v5566_v60, %v676_v30 }
 0x119   : > { %v4947_v34 = vpop.f32.mrf.mxu0 }
 0x11a   : > { %v777_v35 = vmax.f32 %v677_v33, 0.0  ;;  %v805_v36 = vpack.c.bf16 %v779_v32, %v778_v29  ;;  %v698_v37 = vadd.f32 %v4947_v34, %v5566_v60 }
 0x11b   : > { %v689_v38 = vpop.f32.mrf.mxu0 }
 0x11c   : > { %v804_v39 = vpack.c.bf16 %v777_v35, %v776_v31  ;;  %v690_v40 = vadd.f32 %v5566_v60, %v689_v38  ;;  %v782_v43 = vmax.f32 %v698_v37, 0.0 }
 0x11d   : > { %v4948_v41 = vpop.f32.mrf.mxu0 }
 0x11e   : > { %v701_v42 = vadd.f32 %v4948_v41, %v5566_v60  ;;  %4981 = vmatprep.mubr.msk.bf16.mxu1 %vm855_vm2, %v804_v39  ;;  %v780_v45 = vmax.f32 %v690_v40, 0.0 }
 0x11f   : > { %v692_v44 = vpop.f32.mrf.mxu0  ;;  %4982 = vmatmul.mubr.msk.bf16.gmra.mxu1 %vm855_vm2, %v805_v36 }
 0x120   : > { %v783_v46 = vmax.f32 %v701_v42, 0.0  ;;  %v693_v47 = vadd.f32 %v5566_v60, %v692_v44  ;;  %v5175_v44 = vld [vmem:[#allocation5 + $0x18] sm:$0xff]  }
 0x121   : > { %v4951_v48 = vpop.f32.mrf.mxu0  ;;  %5045 = vmatprep.subr.bf16.mxu1 %v5175_v44 }
 0x122   : > { %v781_v49 = vmax.f32 %v693_v47, 0.0  ;;  %v807_v50 = vpack.c.bf16 %v783_v46, %v782_v43  ;;  %v714_v51 = vadd.f32 %v4951_v48, %v5566_v60  ;;  %5046 = vmatpush3.bf16.msra.mxu1 %v5175_v44  ;;  %v5177_v46 = vld [vmem:[#allocation5 + $0x8] sm:$0xff]   ;;  %v5178_v47 = vld [vmem:[#allocation5] sm:$0xff]  }
 0x123   : > { %v705_v52 = vpop.f32.mrf.mxu0 }
 0x124   : > { %v806_v53 = vpack.c.bf16 %v781_v49, %v780_v45  ;;  %v706_v54 = vadd.f32 %v5566_v60, %v705_v52  ;;  %v786_v57 = vmax.f32 %v714_v51, 0.0  ;;  %v5176_v45 = vld [vmem:[#allocation5 + $0x10] sm:$0xff]   ;;  %v5619_v49 = vld [vmem:[%s6679_s4] ss:$0 sm:$0xff] }
 0x125   : > { %v4952_v55 = vpop.f32.mrf.mxu0  ;;  %5047 = vmatprep.subr.bf16.mxu1 %v5176_v45 }
 0x126   : > { %4985 = vmatprep.mubr.msk.bf16.mxu1 %vm855_vm2, %v806_v53  ;;  %v717_v56 = vadd.f32 %v4952_v55, %v5566_v60  ;;  %v784_v59 = vmax.f32 %v706_v54, 0.0  ;;  %5048 = vmatpush3.bf16.msra.mxu1 %v5176_v45 }
 0x127   : > { %4986 = vmatmul.mubr.msk.bf16.gmra.mxu1 %vm855_vm2, %v807_v50  ;;  %v708_v58 = vpop.f32.mrf.mxu0  ;;  %5049 = vmatprep.subr.bf16.mxu1 %v5177_v46 }
 0x128   : > { %v787_v61 = vmax.f32 %v717_v56, 0.0  ;;  %v709_v62 = vadd.f32 %v5566_v60, %v708_v58 }
 0x129   : > { %v4955_v63 = vpop.f32.mrf.mxu0 }
 0x12a   : > { %v785_v0 = vmax.f32 %v709_v62, 0.0  ;;  %v809_v1 = vpack.c.bf16 %v787_v61, %v786_v57  ;;  %v730_v2 = vadd.f32 %v4955_v63, %v5566_v60  ;;  %5050 = vmatpush3.bf16.msra.mxu1 %v5177_v46 }
 0x12b   : > { %v721_v3 = vpop.f32.mrf.mxu0  ;;  %5051 = vmatprep.subr.bf16.mxu1 %v5178_v47 }
 0x12c   : > { %v808_v4 = vpack.c.bf16 %v785_v0, %v784_v59  ;;  %v722_v5 = vadd.f32 %v5566_v60, %v721_v3  ;;  %v790_v8 = vmax.f32 %v730_v2, 0.0 }
 0x12d   : > { %v4956_v6 = vpop.f32.mrf.mxu0 }
 0x12e   : > { %4989 = vmatprep.mubr.msk.bf16.mxu1 %vm855_vm2, %v808_v4  ;;  %v733_v7 = vadd.f32 %v4956_v6, %v5566_v60  ;;  %v788_v10 = vmax.f32 %v722_v5, 0.0  ;;  %5052 = vmatpush3.bf16.msra.mxu1 %v5178_v47 }
 0x12f   : > { %4990 = vmatmul.mubr.msk.bf16.gmra.mxu1 %vm855_vm2, %v809_v1  ;;  %v724_v9 = vpop.f32.mrf.mxu0 }
 0x130   : > { %v791_v11 = vmax.f32 %v733_v7, 0.0  ;;  %v725_v12 = vadd.f32 %v5566_v60, %v724_v9 }
 0x131   : > { %v4959_v13 = vpop.f32.mrf.mxu0 }
 0x132   : > { %v789_v14 = vmax.f32 %v725_v12, 0.0  ;;  %v811_v15 = vpack.c.bf16 %v791_v11, %v790_v8  ;;  %v746_v16 = vadd.f32 %v4959_v13, %v5566_v60 }
 0x133   : > { %v737_v17 = vpop.f32.mrf.mxu0 }
 0x134   : > { %v810_v18 = vpack.c.bf16 %v789_v14, %v788_v10  ;;  %v738_v19 = vadd.f32 %v5566_v60, %v737_v17  ;;  %v794_v22 = vmax.f32 %v746_v16, 0.0 }
 0x135   : > { %v4960_v20 = vpop.f32.mrf.mxu0 }
 0x136   : > { %4993 = vmatprep.mubr.msk.bf16.mxu1 %vm855_vm2, %v810_v18  ;;  %v749_v21 = vadd.f32 %v4960_v20, %v5566_v60  ;;  %v792_v24 = vmax.f32 %v738_v19, 0.0 }
 0x137   : > { %4994 = vmatmul.mubr.msk.bf16.gmra.mxu1 %vm855_vm2, %v811_v15  ;;  %v740_v23 = vpop.f32.mrf.mxu0 }
 0x138   : > { %v795_v25 = vmax.f32 %v749_v21, 0.0  ;;  %v741_v26 = vadd.f32 %v5566_v60, %v740_v23 }
 0x139   : > { %v4963_v27 = vpop.f32.mrf.mxu0 }
 0x13a   : > { %v793_v28 = vmax.f32 %v741_v26, 0.0  ;;  %v813_v29 = vpack.c.bf16 %v795_v25, %v794_v22  ;;  %v762_v30 = vadd.f32 %v4963_v27, %v5566_v60 }
 0x13b   : > { %v753_v31 = vpop.f32.mrf.mxu0 }
 0x13c   : > { %v812_v32 = vpack.c.bf16 %v793_v28, %v792_v24  ;;  %v754_v33 = vadd.f32 %v5566_v60, %v753_v31  ;;  %v798_v36 = vmax.f32 %v762_v30, 0.0 }
 0x13d   : > { %v4964_v34 = vpop.f32.mrf.mxu0 }
 0x13e   : > { %4997 = vmatprep.mubr.msk.bf16.mxu1 %vm855_vm2, %v812_v32  ;;  %v765_v35 = vadd.f32 %v4964_v34, %v5566_v60  ;;  %v796_v38 = vmax.f32 %v754_v33, 0.0 }
 0x13f   : > { %4998 = vmatmul.mubr.msk.bf16.gmra.mxu1 %vm855_vm2, %v813_v29  ;;  %v756_v37 = vpop.f32.mrf.mxu0 }
 0x140   : > { %v799_v39 = vmax.f32 %v765_v35, 0.0  ;;  %v757_v40 = vadd.f32 %v5566_v60, %v756_v37 }
 0x142   : > { %v797_v41 = vmax.f32 %v757_v40, 0.0  ;;  %v815_v42 = vpack.c.bf16 %v799_v39, %v798_v36 }
 0x144   : > { %v814_v43 = vpack.c.bf16 %v797_v41, %v796_v38 }
 0x146   : > { %5001 = vmatprep.mubr.msk.bf16.mxu1 %vm855_vm2, %v814_v43 }
 0x147   : > { %5002 = vmatmul.mubr.msk.bf16.gmra.mxu1 %vm855_vm2, %v815_v42 }
 0x1cf   : > { %v4975_v60 = vpop.f32.mrf.mxu1 }
 0x1d0   : > { %v947_v53 = vadd.f32 %v4975_v60, %v5619_v49 }
 0x1d1   : > { %v938_v48 = vpop.f32.mrf.mxu1 }
 0x1d2   : > { %v939_v51 = vadd.f32 %v5619_v49, %v938_v48  ;;  %v1067_v61 = vmax.f32 %v947_v53, 0.0 }
 0x1d3   : > { %v4976_v50 = vpop.f32.mrf.mxu1 }
 0x1d4   : > { %v950_v52 = vadd.f32 %v4976_v50, %v5619_v49  ;;  %v1065_v58 = vmax.f32 %v939_v51, 0.0 }
 0x1d5   : > { %v941_v54 = vpop.f32.mrf.mxu1 }
 0x1d6   : > { %v942_v55 = vadd.f32 %v5619_v49, %v941_v54  ;;  %v1068_v56 = vmax.f32 %v950_v52, 0.0 }
 0x1d7   : > { %v4979_v57 = vpop.f32.mrf.mxu1 }
 0x1d8   : > { %v1066_v59 = vmax.f32 %v942_v55, 0.0  ;;  %v1098_v0 = vpack.c.bf16 %v1068_v56, %v1067_v61  ;;  %v963_v4 = vadd.f32 %v4979_v57, %v5619_v49 }
 0x1d9   : > { %v954_v62 = vpop.f32.mrf.mxu1 }
 0x1da   : > { %v1097_v63 = vpack.c.bf16 %v1066_v59, %v1065_v58  ;;  %v955_v2 = vadd.f32 %v5619_v49, %v954_v62  ;;  %v1071_v11 = vmax.f32 %v963_v4, 0.0 }
 0x1db   : > { %v4980_v1 = vpop.f32.mrf.mxu1 }
 0x1dc   : > { %v966_v3 = vadd.f32 %v4980_v1, %v5619_v49  ;;  %5013 = vmatprep.mubr.msk.bf16.mxu0 %vm855_vm2, %v1097_v63  ;;  %v1069_v9 = vmax.f32 %v955_v2, 0.0 }
 0x1dd   : > { %v957_v5 = vpop.f32.mrf.mxu1  ;;  %5014 = vmatmul.mubr.msk.bf16.vlgmr.msra.gmra.mxu0 %vm855_vm2, %v1098_v0 }
 0x1de   : > { %v958_v6 = vadd.f32 %v5619_v49, %v957_v5  ;;  %v1072_v7 = vmax.f32 %v966_v3, 0.0 }
 0x1df   : > { %v4983_v8 = vpop.f32.mrf.mxu1 }
 0x1e0   : > { %v1070_v10 = vmax.f32 %v958_v6, 0.0  ;;  %v979_v12 = vadd.f32 %v4983_v8, %v5619_v49  ;;  %v1100_v16 = vpack.c.bf16 %v1072_v7, %v1071_v11 }
 0x1e1   : > { %v970_v13 = vpop.f32.mrf.mxu1 }
 0x1e2   : > { %v1099_v14 = vpack.c.bf16 %v1070_v10, %v1069_v9  ;;  %v971_v15 = vadd.f32 %v5619_v49, %v970_v13  ;;  %v1075_v19 = vmax.f32 %v979_v12, 0.0 }
 0x1e3   : > { %v4984_v17 = vpop.f32.mrf.mxu1 }
 0x1e4   : > { %v982_v18 = vadd.f32 %v4984_v17, %v5619_v49  ;;  %5017 = vmatprep.mubr.msk.bf16.mxu0 %vm855_vm2, %v1099_v14  ;;  %v1073_v21 = vmax.f32 %v971_v15, 0.0 }
 0x1e5   : > { %v973_v20 = vpop.f32.mrf.mxu1  ;;  %5018 = vmatmul.mubr.msk.bf16.gmra.mxu0 %vm855_vm2, %v1100_v16 }
 0x1e6   : > { %v1076_v22 = vmax.f32 %v982_v18, 0.0  ;;  %v974_v23 = vadd.f32 %v5619_v49, %v973_v20 }
 0x1e7   : > { %v4987_v24 = vpop.f32.mrf.mxu1 }
 0x1e8   : > { %v1074_v25 = vmax.f32 %v974_v23, 0.0  ;;  %v1102_v26 = vpack.c.bf16 %v1076_v22, %v1075_v19  ;;  %v995_v27 = vadd.f32 %v4987_v24, %v5619_v49 }
 0x1e9   : > { %v986_v28 = vpop.f32.mrf.mxu1 }
 0x1ea   : > { %v1101_v29 = vpack.c.bf16 %v1074_v25, %v1073_v21  ;;  %v987_v30 = vadd.f32 %v5619_v49, %v986_v28  ;;  %v1079_v33 = vmax.f32 %v995_v27, 0.0 }
 0x1eb   : > { %v4988_v31 = vpop.f32.mrf.mxu1 }
 0x1ec   : > { %v998_v32 = vadd.f32 %v4988_v31, %v5619_v49  ;;  %5021 = vmatprep.mubr.msk.bf16.mxu0 %vm855_vm2, %v1101_v29  ;;  %v1077_v35 = vmax.f32 %v987_v30, 0.0 }
 0x1ed   : > { %v989_v34 = vpop.f32.mrf.mxu1  ;;  %5022 = vmatmul.mubr.msk.bf16.gmra.mxu0 %vm855_vm2, %v1102_v26 }
 0x1ee   : > { %v1080_v36 = vmax.f32 %v998_v32, 0.0  ;;  %v990_v37 = vadd.f32 %v5619_v49, %v989_v34  ;;  %v1761_v34 = vld [vmem:[%s6684_s9 + $0x1c0] sm:$0xff] }
 0x1ef   : > { %v4991_v38 = vpop.f32.mrf.mxu1 }
 0x1f0   : > { %v1078_v39 = vmax.f32 %v990_v37, 0.0  ;;  %v1104_v40 = vpack.c.bf16 %v1080_v36, %v1079_v33  ;;  %v1011_v41 = vadd.f32 %v4991_v38, %v5619_v49  ;;  %v5678_v36 = vld [vmem:[%s6684_s9 + $0x1c8] sm:$0xff] }
 0x1f1   : > { %v1002_v42 = vpop.f32.mrf.mxu1  ;;  %v5683_v38 = vld [vmem:[%s6684_s9 + $0x1e8] sm:$0xff] }
 0x1f2   : > { %v1103_v43 = vpack.c.bf16 %v1078_v39, %v1077_v35  ;;  %v1003_v44 = vadd.f32 %v5619_v49, %v1002_v42  ;;  %v1083_v47 = vmax.f32 %v1011_v41, 0.0  ;;  %v1765_v35 = vld [vmem:[%s6684_s9 + $0x1e0] sm:$0xff]  ;;  %v4520_v41 = vcombine.low %v5678_v36, %v5683_v38 }
 0x1f3   : > { %v4992_v45 = vpop.f32.mrf.mxu1  ;;  %v4519_v37 = vcombine.high %v1761_v34, %v1765_v35  ;;  %v1753_v39 = vld [vmem:[%s6684_s9 + $0x180] sm:$0xff]  ;;  %v4521_v42 = vcombine.high %v5678_v36, %v5683_v38  ;;  %v1742_v36 = vld [vmem:[%s6684_s9 + $0x128] sm:$0xff] }
 0x1f4   : > { %5025 = vmatprep.mubr.msk.bf16.mxu0 %vm855_vm2, %v1103_v43  ;;  %v1014_v46 = vadd.f32 %v4992_v45, %v5619_v49  ;;  %v1081_v48 = vmax.f32 %v1003_v44, 0.0  ;;  %v1745_v44 = vld [vmem:[%s6684_s9 + $0x140] sm:$0xff] }
 0x1f5   : > { %5026 = vmatmul.mubr.msk.bf16.gmra.mxu0 %vm855_vm2, %v1104_v40  ;;  %v1005_v60 = vpop.f32.mrf.mxu1  ;;  %v1757_v40 = vld [vmem:[%s6684_s9 + $0x1a0] sm:$0xff]  ;;  %2131 = vmatprep.subr.bf16.mxu0 %v4519_v37 }
 0x1f6   : > { %v1084_v50 = vmax.f32 %v1014_v46, 0.0  ;;  %v1006_v51 = vadd.f32 %v5619_v49, %v1005_v60  ;;  %v4511_v43 = vcombine.high %v1753_v39, %v1757_v40  ;;  %v1749_v45 = vld [vmem:[%s6684_s9 + $0x160] sm:$0xff]  ;;  %2324 = vmatprep.subr.bf16.mxu1 %v4521_v42  ;;  %v4510_v46 = vcombine.low %v1753_v39, %v1757_v40 }
 0x1f7   : > { %v4995_v52 = vpop.f32.mrf.mxu1  ;;  %v1737_v60 = vld [vmem:[%s6684_s9 + $0x100] sm:$0xff] }
 0x1f8   : > { %v1082_v53 = vmax.f32 %v1006_v51, 0.0  ;;  %v1106_v54 = vpack.c.bf16 %v1084_v50, %v1083_v47  ;;  %v1027_v55 = vadd.f32 %v4995_v52, %v5619_v49  ;;  %v4503_v47 = vcombine.high %v1745_v44, %v1749_v45  ;;  %v1729_v52 = vld [vmem:[%s6684_s9 + $0xc0] sm:$0xff] }
 0x1f9   : > { %v1018_v56 = vpop.f32.mrf.mxu1  ;;  %v4502_v50 = vcombine.low %v1745_v44, %v1749_v45 }
 0x1fa   : > { %v1105_v57 = vpack.c.bf16 %v1082_v53, %v1081_v48  ;;  %v1019_v58 = vadd.f32 %v5619_v49, %v1018_v56  ;;  %v1087_v62 = vmax.f32 %v1027_v55, 0.0  ;;  %v1741_v48 = vld [vmem:[%s6684_s9 + $0x120] sm:$0xff] }
 0x1fb   : > { %v4996_v59 = vpop.f32.mrf.mxu1  ;;  %v4495_v51 = vcombine.high %v1737_v60, %v1741_v48  ;;  %v1733_v53 = vld [vmem:[%s6684_s9 + $0xe0] sm:$0xff] }
 0x1fc   : > { %5029 = vmatprep.mubr.msk.bf16.mxu0 %vm855_vm2, %v1105_v57  ;;  %v1030_v61 = vadd.f32 %v4996_v59, %v5619_v49  ;;  %v1085_v0 = vmax.f32 %v1019_v58, 0.0  ;;  %v4487_v55 = vcombine.high %v1729_v52, %v1733_v53  ;;  %v1721_v56 = vld [vmem:[%s6684_s9 + $0x80] sm:$0xff]  ;;  %v4486_v58 = vcombine.low %v1729_v52, %v1733_v53 }
 0x1fd   : > { %5030 = vmatmul.mubr.msk.bf16.gmra.mxu0 %vm855_vm2, %v1106_v54  ;;  %v1021_v63 = vpop.f32.mrf.mxu1  ;;  %v4494_v54 = vcombine.low %v1737_v60, %v1741_v48  ;;  %v1725_v57 = vld [vmem:[%s6684_s9 + $0xa0] sm:$0xff] }
 0x1fe   : > { %v1088_v1 = vmax.f32 %v1030_v61, 0.0  ;;  %v1022_v2 = vadd.f32 %v5619_v49, %v1021_v63  ;;  %v4479_v59 = vcombine.high %v1721_v56, %v1725_v57  ;;  %v1713_v61 = vld [vmem:[%s6684_s9 + $0x40] sm:$0xff]  ;;  %v4478_v63 = vcombine.low %v1721_v56, %v1725_v57 }
 0x1ff   : > { %v4999_v3 = vpop.f32.mrf.mxu1 }
 0x200   : > { %v1086_v4 = vmax.f32 %v1022_v2, 0.0  ;;  %v1108_v5 = vpack.c.bf16 %v1088_v1, %v1087_v62  ;;  %v1043_v6 = vadd.f32 %v4999_v3, %v5619_v49  ;;  %v1717_v62 = vld [vmem:[%s6684_s9 + $0x60] sm:$0xff] }
 0x201   : > { %v1034_v7 = vpop.f32.mrf.mxu1  ;;  %v4470_v1 = vcombine.low %v1713_v61, %v1717_v62  ;;  %v5728_v2 = vld [vmem:[%s6681_s6] ss:$0 sm:$0xff] }
 0x202   : > { %v1107_v8 = vpack.c.bf16 %v1086_v4, %v1085_v0  ;;  %v1035_v9 = vadd.f32 %v5619_v49, %v1034_v7  ;;  %v1091_v12 = vmax.f32 %v1043_v6, 0.0  ;;  %v4471_v0 = vcombine.high %v1713_v61, %v1717_v62 }
 0x203   : > { %v5000_v10 = vpop.f32.mrf.mxu1 }
 0x204   : > { %5033 = vmatprep.mubr.msk.bf16.mxu0 %vm855_vm2, %v1107_v8  ;;  %v1046_v11 = vadd.f32 %v5000_v10, %v5619_v49  ;;  %v1089_v14 = vmax.f32 %v1035_v9, 0.0 }
 0x205   : > { %5034 = vmatmul.mubr.msk.bf16.gmra.mxu0 %vm855_vm2, %v1108_v5  ;;  %v1037_v13 = vpop.f32.mrf.mxu1 }
 0x206   : > { %v1092_v15 = vmax.f32 %v1046_v11, 0.0  ;;  %v1038_v16 = vadd.f32 %v5619_v49, %v1037_v13 }
 0x207   : > { %v5003_v17 = vpop.f32.mrf.mxu1 }
 0x208   : > { %v1090_v18 = vmax.f32 %v1038_v16, 0.0  ;;  %v1110_v19 = vpack.c.bf16 %v1092_v15, %v1091_v12  ;;  %v1059_v20 = vadd.f32 %v5003_v17, %v5619_v49 }
 0x209   : > { %v1050_v21 = vpop.f32.mrf.mxu1 }
 0x20a   : > { %v1109_v22 = vpack.c.bf16 %v1090_v18, %v1089_v14  ;;  %v1051_v23 = vadd.f32 %v5619_v49, %v1050_v21  ;;  %v1095_v26 = vmax.f32 %v1059_v20, 0.0  ;;  %v1754_v20 = vld [vmem:[%s6684_s9 + $0x188] sm:$0xff] }
 0x20b   : > { %v5004_v24 = vpop.f32.mrf.mxu1  ;;  %v1758_v21 = vld [vmem:[%s6684_s9 + $0x1a8] sm:$0xff] }
 0x20c   : > { %5037 = vmatprep.mubr.msk.bf16.mxu0 %vm855_vm2, %v1109_v22  ;;  %v1062_v25 = vadd.f32 %v5004_v24, %v5619_v49  ;;  %v1093_v28 = vmax.f32 %v1051_v23, 0.0  ;;  %v4512_v40 = vcombine.low %v1754_v20, %v1758_v21 }
 0x20d   : > { %5038 = vmatmul.mubr.msk.bf16.gmra.mxu0 %vm855_vm2, %v1110_v19  ;;  %v1053_v27 = vpop.f32.mrf.mxu1 }
 0x20e   : > { %v1096_v29 = vmax.f32 %v1062_v25, 0.0  ;;  %v1054_v30 = vadd.f32 %v5619_v49, %v1053_v27  ;;  %v4518_v49 = vcombine.low %v1761_v34, %v1765_v35  ;;  %v1750_v34 = vld [vmem:[%s6684_s9 + $0x168] sm:$0xff] }
 0x210   : > { %v1094_v31 = vmax.f32 %v1054_v30, 0.0  ;;  %v1112_v32 = vpack.c.bf16 %v1096_v29, %v1095_v26  ;;  %2132 = vmatpush1.bf16.msra.mxu0 %v4518_v49  ;;  %v4513_v29 = vcombine.high %v1754_v20, %v1758_v21 }
 0x211   : > { %2133 = vmatprep.subr.bf16.mxu0 %v4511_v43 }
 0x212   : > { %v1111_v33 = vpack.c.bf16 %v1094_v31, %v1093_v28 }
 0x214   : > { %5041 = vmatprep.mubr.msk.bf16.mxu0 %vm855_vm2, %v1111_v33  ;;  %2134 = vmatpush1.bf16.msra.mxu0 %v4510_v46  ;;  %v1746_v33 = vld [vmem:[%s6684_s9 + $0x148] sm:$0xff] }
 0x215   : > { %5042 = vmatmul.mubr.msk.bf16.gmra.mxu0 %vm855_vm2, %v1112_v32  ;;  %2135 = vmatprep.subr.bf16.mxu0 %v4503_v47  ;;  %v4505_v43 = vcombine.high %v1746_v33, %v1750_v34  ;;  %v1738_v47 = vld [vmem:[%s6684_s9 + $0x108] sm:$0xff] }
 0x218   : > { %2136 = vmatpush1.bf16.msra.mxu0 %v4502_v50 }
 0x219   : > { %2137 = vmatprep.subr.bf16.mxu0 %v4495_v51 }
 0x21c   : > { %2138 = vmatpush1.bf16.msra.mxu0 %v4494_v54  ;;  %v4497_v54 = vcombine.high %v1738_v47, %v1742_v36 }
 0x21d   : > { %2139 = vmatprep.subr.bf16.mxu0 %v4487_v55 }
 0x220   : > { %2140 = vmatpush1.bf16.msra.mxu0 %v4486_v58  ;;  %v1730_v58 = vld [vmem:[%s6684_s9 + $0xc8] sm:$0xff] }
 0x221   : > { %2141 = vmatprep.subr.bf16.mxu0 %v4479_v59  ;;  %v1734_v59 = vld [vmem:[%s6684_s9 + $0xe8] sm:$0xff] }
 0x224   : > { %2142 = vmatpush1.bf16.msra.mxu0 %v4478_v63 }
 0x225   : > { %2143 = vmatprep.subr.bf16.mxu0 %v4471_v0 }
 0x228   : > { %2144 = vmatpush1.bf16.msra.mxu0 %v4470_v1  ;;  %v4496_v1 = vcombine.low %v1738_v47, %v1742_v36 }
 0x29d   : > { %v5015_v3 = vpop.f32.mrf.mxu0 }
 0x29e   : > { %v1243_v4 = vadd.f32 %v5015_v3, %v5728_v2 }
 0x29f   : > { %v1234_v5 = vpop.f32.mrf.mxu0 }
 0x2a0   : > { %v1363_v6 = vmax.f32 %v1243_v4, 0.0  ;;  %v1235_v7 = vadd.f32 %v5728_v2, %v1234_v5  ;;  %v4489_v4 = vcombine.high %v1730_v58, %v1734_v59 }
 0x2a1   : > { %v5016_v8 = vpop.f32.mrf.mxu0 }
 0x2a2   : > { %v4695_v9 = vpack.c.bf16 %v1363_v6, %v1363_v6  ;;  %v1361_v10 = vmax.f32 %v1235_v7, 0.0  ;;  %v1246_v11 = vadd.f32 %v5016_v8, %v5728_v2  ;;  %v1722_v8 = vld [vmem:[%s6684_s9 + $0x88] sm:$0xff] }
 0x2a3   : > { %v1237_v12 = vpop.f32.mrf.mxu0 }
 0x2a4   : > { %3274 = vst.msk [vmem:[%s5736_s25 + $0x8] sm:$0xf] %vm3271_vm3, %v4695_v9  ;;  %v4693_v13 = vpack.c.bf16 %v1361_v10, %v1361_v10  ;;  %v1364_v14 = vmax.f32 %v1246_v11, 0.0  ;;  %v1238_v15 = vadd.f32 %v5728_v2, %v1237_v12  ;;  %v1726_v9 = vld [vmem:[%s6684_s9 + $0xa8] sm:$0xff]  ;;  %v4488_v11 = vcombine.low %v1730_v58, %v1734_v59 }
 0x2a5   : > { %v5019_v16 = vpop.f32.mrf.mxu0 }
 0x2a6   : > { %3272 = vst.msk [vmem:[%s5736_s25] sm:$0xf] %vm3271_vm3, %v4693_v13  ;;  %v4696_v17 = vpack.c.bf16 %v1364_v14, %v1364_v14  ;;  %v1362_v18 = vmax.f32 %v1238_v15, 0.0  ;;  %v1259_v19 = vadd.f32 %v5019_v16, %v5728_v2  ;;  %v1394_v27 = vpack.c.bf16 %v1364_v14, %v1363_v6 }
 0x2a7   : > { %v1250_v22 = vpop.f32.mrf.mxu0 }
 0x2a8   : > { %3275 = vst.msk [vmem:[%s5736_s25 + $0xc] sm:$0xf] %vm3271_vm3, %v4696_v17  ;;  %v1393_v23 = vpack.c.bf16 %v1362_v18, %v1361_v10  ;;  %v4694_v24 = vpack.c.bf16 %v1362_v18, %v1362_v18  ;;  %v1367_v25 = vmax.f32 %v1259_v19, 0.0  ;;  %v1251_v26 = vadd.f32 %v5728_v2, %v1250_v22  ;;  %v1714_v22 = vld [vmem:[%s6684_s9 + $0x48] sm:$0xff] }
 0x2a9   : > { %v5020_v28 = vpop.f32.mrf.mxu0  ;;  %v4481_v18 = vcombine.high %v1722_v8, %v1726_v9 }
 0x2aa   : > { %3273 = vst.msk [vmem:[%s5736_s25 + $0x4] sm:$0xf] %vm3271_vm3, %v4694_v24  ;;  %v4699_v30 = vpack.c.bf16 %v1367_v25, %v1367_v25  ;;  %v1365_v31 = vmax.f32 %v1251_v26, 0.0  ;;  %v1262_v32 = vadd.f32 %v5020_v28, %v5728_v2  ;;  %5053 = vmatprep.mubr.msk.bf16.mxu1 %vm855_vm2, %v1393_v23  ;;  %v1718_v23 = vld [vmem:[%s6684_s9 + $0x68] sm:$0xff]  ;;  %v4480_v28 = vcombine.low %v1722_v8, %v1726_v9 }
 0x2ab   : > { %v1253_v35 = vpop.f32.mrf.mxu0  ;;  %5054 = vmatmul.mubr.msk.bf16.vlgmr.msra.gmra.mxu1 %vm855_vm2, %v1394_v27 }
 0x2ac   : > { %3278 = vst.msk [vmem:[%s5736_s25 + $0x18] sm:$0xf] %vm3271_vm3, %v4699_v30  ;;  %v4697_v49 = vpack.c.bf16 %v1365_v31, %v1365_v31  ;;  %v1368_v37 = vmax.f32 %v1262_v32, 0.0  ;;  %v1254_v39 = vadd.f32 %v5728_v2, %v1253_v35  ;;  %2325 = vmatpush1.bf16.msra.mxu1 %v4520_v41  ;;  %v4504_v41 = vcombine.low %v1746_v33, %v1750_v34 }
 0x2ad   : > { %v5023_v42 = vpop.f32.mrf.mxu0  ;;  %2326 = vmatprep.subr.bf16.mxu1 %v4513_v29  ;;  %v4473_v30 = vcombine.high %v1714_v22, %v1718_v23 }
 0x2ae   : > { %3276 = vst.msk [vmem:[%s5736_s25 + $0x10] sm:$0xf] %vm3271_vm3, %v4697_v49  ;;  %v4700_v44 = vpack.c.bf16 %v1368_v37, %v1368_v37  ;;  %v1366_v45 = vmax.f32 %v1254_v39, 0.0  ;;  %v1275_v46 = vadd.f32 %v5023_v42, %v5728_v2  ;;  %v1396_v52 = vpack.c.bf16 %v1368_v37, %v1367_v25 }
 0x2af   : > { %v1266_v38 = vpop.f32.mrf.mxu0  ;;  %v4472_v49 = vcombine.low %v1714_v22, %v1718_v23 }
 0x2b0   : > { %3279 = vst.msk [vmem:[%s5736_s25 + $0x1c] sm:$0xf] %vm3271_vm3, %v4700_v44  ;;  %v1395_v60 = vpack.c.bf16 %v1366_v45, %v1365_v31  ;;  %v4698_v48 = vpack.c.bf16 %v1366_v45, %v1366_v45  ;;  %v1371_v50 = vmax.f32 %v1275_v46, 0.0  ;;  %v1267_v51 = vadd.f32 %v5728_v2, %v1266_v38  ;;  %2327 = vmatpush1.bf16.msra.mxu1 %v4512_v40 }
 0x2b1   : > { %v5024_v53 = vpop.f32.mrf.mxu0  ;;  %2328 = vmatprep.subr.bf16.mxu1 %v4505_v43 }
 0x2b2   : > { %3277 = vst.msk [vmem:[%s5736_s25 + $0x14] sm:$0xf] %vm3271_vm3, %v4698_v48  ;;  %v4703_v55 = vpack.c.bf16 %v1371_v50, %v1371_v50  ;;  %v1369_v56 = vmax.f32 %v1267_v51, 0.0  ;;  %v1278_v57 = vadd.f32 %v5024_v53, %v5728_v2  ;;  %5057 = vmatprep.mubr.msk.bf16.mxu1 %vm855_vm2, %v1395_v60 }
 0x2b3   : > { %v1269_v61 = vpop.f32.mrf.mxu0  ;;  %5058 = vmatmul.mubr.msk.bf16.gmra.mxu1 %vm855_vm2, %v1396_v52 }
 0x2b4   : > { %3282 = vst.msk [vmem:[%s5736_s25 + $0x28] sm:$0xf] %vm3271_vm3, %v4703_v55  ;;  %v4701_v62 = vpack.c.bf16 %v1369_v56, %v1369_v56  ;;  %v1372_v63 = vmax.f32 %v1278_v57, 0.0  ;;  %v1270_v0 = vadd.f32 %v5728_v2, %v1269_v61  ;;  %2329 = vmatpush1.bf16.msra.mxu1 %v4504_v41 }
 0x2b5   : > { %v5027_v3 = vpop.f32.mrf.mxu0  ;;  %2330 = vmatprep.subr.bf16.mxu1 %v4497_v54 }
 0x2b6   : > { %3280 = vst.msk [vmem:[%s5736_s25 + $0x20] sm:$0xf] %vm3271_vm3, %v4701_v62  ;;  %v4704_v5 = vpack.c.bf16 %v1372_v63, %v1372_v63  ;;  %v1370_v6 = vmax.f32 %v1270_v0, 0.0  ;;  %v1291_v7 = vadd.f32 %v5027_v3, %v5728_v2  ;;  %v1398_v16 = vpack.c.bf16 %v1372_v63, %v1371_v50 }
 0x2b7   : > { %v1282_v10 = vpop.f32.mrf.mxu0 }
 0x2b8   : > { %3283 = vst.msk [vmem:[%s5736_s25 + $0x2c] sm:$0xf] %vm3271_vm3, %v4704_v5  ;;  %v1397_v12 = vpack.c.bf16 %v1370_v6, %v1369_v56  ;;  %v4702_v13 = vpack.c.bf16 %v1370_v6, %v1370_v6  ;;  %v1375_v14 = vmax.f32 %v1291_v7, 0.0  ;;  %v1283_v15 = vadd.f32 %v5728_v2, %v1282_v10  ;;  %2331 = vmatpush1.bf16.msra.mxu1 %v4496_v1 }
 0x2b9   : > { %v5028_v17 = vpop.f32.mrf.mxu0  ;;  %2332 = vmatprep.subr.bf16.mxu1 %v4489_v4 }
 0x2ba   : > { %3281 = vst.msk [vmem:[%s5736_s25 + $0x24] sm:$0xf] %vm3271_vm3, %v4702_v13  ;;  %v4707_v19 = vpack.c.bf16 %v1375_v14, %v1375_v14  ;;  %v1373_v20 = vmax.f32 %v1283_v15, 0.0  ;;  %v1294_v21 = vadd.f32 %v5028_v17, %v5728_v2  ;;  %5061 = vmatprep.mubr.msk.bf16.mxu1 %vm855_vm2, %v1397_v12 }
 0x2bb   : > { %v1285_v24 = vpop.f32.mrf.mxu0  ;;  %5062 = vmatmul.mubr.msk.bf16.gmra.mxu1 %vm855_vm2, %v1398_v16 }
 0x2bc   : > { %3286 = vst.msk [vmem:[%s5736_s25 + $0x38] sm:$0xf] %vm3271_vm3, %v4707_v19  ;;  %v4705_v25 = vpack.c.bf16 %v1373_v20, %v1373_v20  ;;  %v1376_v26 = vmax.f32 %v1294_v21, 0.0  ;;  %v1286_v27 = vadd.f32 %v5728_v2, %v1285_v24  ;;  %2333 = vmatpush1.bf16.msra.mxu1 %v4488_v11 }
 0x2bd   : > { %v5031_v29 = vpop.f32.mrf.mxu0  ;;  %2334 = vmatprep.subr.bf16.mxu1 %v4481_v18 }
 0x2be   : > { %3284 = vst.msk [vmem:[%s5736_s25 + $0x30] sm:$0xf] %vm3271_vm3, %v4705_v25  ;;  %v4708_v31 = vpack.c.bf16 %v1376_v26, %v1376_v26  ;;  %v1374_v32 = vmax.f32 %v1286_v27, 0.0  ;;  %v1307_v33 = vadd.f32 %v5031_v29, %v5728_v2  ;;  %v1400_v34 = vpack.c.bf16 %v1376_v26, %v1375_v14 }
 0x2bf   : > { %v1298_v35 = vpop.f32.mrf.mxu0 }
 0x2c0   : > { %3287 = vst.msk [vmem:[%s5736_s25 + $0x3c] sm:$0xf] %vm3271_vm3, %v4708_v31  ;;  %v1399_v37 = vpack.c.bf16 %v1374_v32, %v1373_v20  ;;  %v4706_v39 = vpack.c.bf16 %v1374_v32, %v1374_v32  ;;  %v1379_v40 = vmax.f32 %v1307_v33, 0.0  ;;  %v1299_v42 = vadd.f32 %v5728_v2, %v1298_v35  ;;  %2335 = vmatpush1.bf16.msra.mxu1 %v4480_v28 }
 0x2c1   : > { %v5032_v43 = vpop.f32.mrf.mxu0  ;;  %2336 = vmatprep.subr.bf16.mxu1 %v4473_v30 }
 0x2c2   : > { %3285 = vst.msk [vmem:[%s5736_s25 + $0x34] sm:$0xf] %vm3271_vm3, %v4706_v39  ;;  %v4711_v44 = vpack.c.bf16 %v1379_v40, %v1379_v40  ;;  %5065 = vmatprep.mubr.msk.bf16.mxu1 %vm855_vm2, %v1399_v37  ;;  %v1377_v45 = vmax.f32 %v1299_v42, 0.0  ;;  %v1310_v46 = vadd.f32 %v5032_v43, %v5728_v2 }
 0x2c3   : > { %5066 = vmatmul.mubr.msk.bf16.gmra.mxu1 %vm855_vm2, %v1400_v34  ;;  %v1301_v47 = vpop.f32.mrf.mxu0 }
 0x2c4   : > { %3290 = vst.msk [vmem:[%s5736_s25 + $0x48] sm:$0xf] %vm3271_vm3, %v4711_v44  ;;  %v4709_v36 = vpack.c.bf16 %v1377_v45, %v1377_v45  ;;  %v1380_v38 = vmax.f32 %v1310_v46, 0.0  ;;  %v1302_v41 = vadd.f32 %v5728_v2, %v1301_v47  ;;  %2337 = vmatpush1.bf16.msra.mxu1 %v4472_v49  ;;  %v1705_v47 = vld [vmem:[%s6684_s9] sm:$0xff] }
 0x2c5   : > { %v5035_v60 = vpop.f32.mrf.mxu0 }
 0x2c6   : > { %3288 = vst.msk [vmem:[%s5736_s25 + $0x40] sm:$0xf] %vm3271_vm3, %v4709_v36  ;;  %v4712_v48 = vpack.c.bf16 %v1380_v38, %v1380_v38  ;;  %v1378_v50 = vmax.f32 %v1302_v41, 0.0  ;;  %v1323_v51 = vadd.f32 %v5035_v60, %v5728_v2  ;;  %v1402_v52 = vpack.c.bf16 %v1380_v38, %v1379_v40  ;;  %v1706_v36 = vld [vmem:[%s6684_s9 + $0x8] sm:$0xff] }
 0x2c7   : > { %v1314_v53 = vpop.f32.mrf.mxu0  ;;  %v1710_v41 = vld [vmem:[%s6684_s9 + $0x28] sm:$0xff] }
 0x2c8   : > { %3291 = vst.msk [vmem:[%s5736_s25 + $0x4c] sm:$0xf] %vm3271_vm3, %v4712_v48  ;;  %v1401_v54 = vpack.c.bf16 %v1378_v50, %v1377_v45  ;;  %v4710_v55 = vpack.c.bf16 %v1378_v50, %v1378_v50  ;;  %v1383_v56 = vmax.f32 %v1323_v51, 0.0  ;;  %v1315_v57 = vadd.f32 %v5728_v2, %v1314_v53  ;;  %v1767_v53 = vld [vmem:[%s6684_s9 + $0x1f0] sm:$0xff] }
 0x2c9   : > { %v5036_v58 = vpop.f32.mrf.mxu0  ;;  %v4464_v48 = vcombine.low %v1706_v36, %v1710_v41  ;;  %v4465_v50 = vcombine.high %v1706_v36, %v1710_v41  ;;  %v5322_v51 = vmov 0  }
 0x2ca   : > { %3289 = vst.msk [vmem:[%s5736_s25 + $0x44] sm:$0xf] %vm3271_vm3, %v4710_v55  ;;  %5069 = vmatprep.mubr.msk.bf16.mxu1 %vm855_vm2, %v1401_v54  ;;  %v4715_v59 = vpack.c.bf16 %v1383_v56, %v1383_v56  ;;  %v1381_v61 = vmax.f32 %v1315_v57, 0.0  ;;  %v1326_v62 = vadd.f32 %v5036_v58, %v5728_v2  ;;  %2163 = vmatprep.mubr.bf16.mxu0 %v5322_v51  ;;  %v1764_v54 = vld [vmem:[%s6684_s9 + $0x1d8] sm:$0xff] }
 0x2cb   : > { %5070 = vmatmul.mubr.msk.bf16.gmra.mxu1 %vm855_vm2, %v1402_v52  ;;  %v1317_v63 = vpop.f32.mrf.mxu0  ;;  %2338 = vmatprep.subr.bf16.mxu1 %v4465_v50  ;;  %v1763_v52 = vld [vmem:[%s6684_s9 + $0x1d0] sm:$0xff]  ;;  %v1768_v57 = vld [vmem:[%s6684_s9 + $0x1f8] sm:$0xff] }
 0x2cc   : > { %3294 = vst.msk [vmem:[%s5736_s25 + $0x58] sm:$0xf] %vm3271_vm3, %v4715_v59  ;;  %v4713_v0 = vpack.c.bf16 %v1381_v61, %v1381_v61  ;;  %v1384_v1 = vmax.f32 %v1326_v62, 0.0  ;;  %v1318_v3 = vadd.f32 %v5728_v2, %v1317_v63  ;;  %2339 = vmatpush1.bf16.msra.mxu1 %v4464_v48  ;;  %v4522_v55 = vcombine.low %v1763_v52, %v1767_v53  ;;  %v5916_v63 = vld [vmem:[%s6683_s8] ss:$0 sm:$0xff]  ;;  %v1723_v50 = vld [vmem:[%s6684_s9 + $0x90] sm:$0xff] }
 0x2cd   : > { %v5039_v4 = vpop.f32.mrf.mxu0  ;;  %v4524_v58 = vcombine.low %v1764_v54, %v1768_v57  ;;  %v4525_v59 = vcombine.high %v1764_v54, %v1768_v57  ;;  %v1724_v54 = vld [vmem:[%s6684_s9 + $0x98] sm:$0xff] }
 0x2ce   : > { %3292 = vst.msk [vmem:[%s5736_s25 + $0x50] sm:$0xf] %vm3271_vm3, %v4713_v0  ;;  %v4716_v5 = vpack.c.bf16 %v1384_v1, %v1384_v1  ;;  %v1382_v6 = vmax.f32 %v1318_v3, 0.0  ;;  %v1339_v7 = vadd.f32 %v5039_v4, %v5728_v2  ;;  %v1404_v8 = vpack.c.bf16 %v1384_v1, %v1383_v56 }
 0x2cf   : > { %v1330_v9 = vpop.f32.mrf.mxu0  ;;  %v4523_v56 = vcombine.high %v1763_v52, %v1767_v53  ;;  %2710 = vmatprep.subr.bf16.mxu1 %v4525_v59  ;;  %v1727_v53 = vld [vmem:[%s6684_s9 + $0xb0] sm:$0xff] }
 0x2d0   : > { %3295 = vst.msk [vmem:[%s5736_s25 + $0x5c] sm:$0xf] %vm3271_vm3, %v4716_v5  ;;  %v1403_v10 = vpack.c.bf16 %v1382_v6, %v1381_v61  ;;  %v4714_v11 = vpack.c.bf16 %v1382_v6, %v1382_v6  ;;  %v1387_v12 = vmax.f32 %v1339_v7, 0.0  ;;  %v1331_v13 = vadd.f32 %v5728_v2, %v1330_v9  ;;  %v1755_v6 = vld [vmem:[%s6684_s9 + $0x190] sm:$0xff] }
 0x2d1   : > { %v5040_v14 = vpop.f32.mrf.mxu0  ;;  %v1759_v9 = vld [vmem:[%s6684_s9 + $0x1b0] sm:$0xff] }
 0x2d2   : > { %3293 = vst.msk [vmem:[%s5736_s25 + $0x54] sm:$0xf] %vm3271_vm3, %v4714_v11  ;;  %5073 = vmatprep.mubr.msk.bf16.mxu1 %vm855_vm2, %v1403_v10  ;;  %v4719_v15 = vpack.c.bf16 %v1387_v12, %v1387_v12  ;;  %v1385_v16 = vmax.f32 %v1331_v13, 0.0  ;;  %v1342_v17 = vadd.f32 %v5040_v14, %v5728_v2  ;;  %v1756_v10 = vld [vmem:[%s6684_s9 + $0x198] sm:$0xff] }
 0x2d3   : > { %5074 = vmatmul.mubr.msk.bf16.gmra.mxu1 %vm855_vm2, %v1404_v8  ;;  %v1333_v18 = vpop.f32.mrf.mxu0  ;;  %v1760_v11 = vld [vmem:[%s6684_s9 + $0x1b8] sm:$0xff] }
 0x2d4   : > { %3298 = vst.msk [vmem:[%s5736_s25 + $0x68] sm:$0xf] %vm3271_vm3, %v4719_v15  ;;  %v4717_v19 = vpack.c.bf16 %v1385_v16, %v1385_v16  ;;  %v1388_v20 = vmax.f32 %v1342_v17, 0.0  ;;  %v1334_v21 = vadd.f32 %v5728_v2, %v1333_v18  ;;  %v1747_v15 = vld [vmem:[%s6684_s9 + $0x150] sm:$0xff]  ;;  %v4515_v17 = vcombine.high %v1755_v6, %v1759_v9 }
 0x2d5   : > { %v5043_v22 = vpop.f32.mrf.mxu0  ;;  %v4517_v18 = vcombine.high %v1756_v10, %v1760_v11 }
 0x2d6   : > { %3296 = vst.msk [vmem:[%s5736_s25 + $0x60] sm:$0xf] %vm3271_vm3, %v4717_v19  ;;  %v4720_v23 = vpack.c.bf16 %v1388_v20, %v1388_v20  ;;  %v1386_v24 = vmax.f32 %v1334_v21, 0.0  ;;  %v1355_v25 = vadd.f32 %v5043_v22, %v5728_v2  ;;  %v1406_v26 = vpack.c.bf16 %v1388_v20, %v1387_v12  ;;  %v1751_v19 = vld [vmem:[%s6684_s9 + $0x170] sm:$0xff]  ;;  %v1748_v20 = vld [vmem:[%s6684_s9 + $0x158] sm:$0xff] }
 0x2d7   : > { %v1346_v27 = vpop.f32.mrf.mxu0  ;;  %v1752_v21 = vld [vmem:[%s6684_s9 + $0x178] sm:$0xff] }
 0x2d8   : > { %3299 = vst.msk [vmem:[%s5736_s25 + $0x6c] sm:$0xf] %vm3271_vm3, %v4720_v23  ;;  %v1405_v28 = vpack.c.bf16 %v1386_v24, %v1385_v16  ;;  %v4718_v29 = vpack.c.bf16 %v1386_v24, %v1386_v24  ;;  %v1391_v30 = vmax.f32 %v1355_v25, 0.0  ;;  %v1347_v31 = vadd.f32 %v5728_v2, %v1346_v27 }
 0x2d9   : > { %v5044_v32 = vpop.f32.mrf.mxu0  ;;  %v4514_v23 = vcombine.low %v1755_v6, %v1759_v9  ;;  %v4516_v24 = vcombine.low %v1756_v10, %v1760_v11  ;;  %v4509_v27 = vcombine.high %v1748_v20, %v1752_v21  ;;  %v1716_v6 = vld [vmem:[%s6684_s9 + $0x58] sm:$0xff] }
 0x2da   : > { %3297 = vst.msk [vmem:[%s5736_s25 + $0x64] sm:$0xf] %vm3271_vm3, %v4718_v29  ;;  %5077 = vmatprep.mubr.msk.bf16.mxu1 %vm855_vm2, %v1405_v28  ;;  %v4723_v33 = vpack.c.bf16 %v1391_v30, %v1391_v30  ;;  %v1389_v34 = vmax.f32 %v1347_v31, 0.0  ;;  %v1358_v35 = vadd.f32 %v5044_v32, %v5728_v2  ;;  %v1739_v29 = vld [vmem:[%s6684_s9 + $0x110] sm:$0xff]  ;;  %v1740_v32 = vld [vmem:[%s6684_s9 + $0x118] sm:$0xff] }
 0x2db   : > { %5078 = vmatmul.mubr.msk.bf16.gmra.mxu1 %vm855_vm2, %v1406_v26  ;;  %v1349_v49 = vpop.f32.mrf.mxu0  ;;  %v4507_v26 = vcombine.high %v1747_v15, %v1751_v19  ;;  %v1743_v31 = vld [vmem:[%s6684_s9 + $0x130] sm:$0xff] }
 0x2dc   : > { %3302 = vst.msk [vmem:[%s5736_s25 + $0x78] sm:$0xf] %vm3271_vm3, %v4723_v33  ;;  %v4721_v37 = vpack.c.bf16 %v1389_v34, %v1389_v34  ;;  %v1392_v39 = vmax.f32 %v1358_v35, 0.0  ;;  %v1350_v40 = vadd.f32 %v5728_v2, %v1349_v49  ;;  %v1709_v2 = vld [vmem:[%s6684_s9 + $0x20] sm:$0xff]  ;;  %v1744_v33 = vld [vmem:[%s6684_s9 + $0x138] sm:$0xff]  ;;  %v4498_v36 = vcombine.low %v1739_v29, %v1743_v31 }
 0x2dd   : > { %v4463_v38 = vcombine.high %v1705_v47, %v1709_v2  ;;  %v4462_v60 = vcombine.low %v1705_v47, %v1709_v2  ;;  %v1736_v47 = vld [vmem:[%s6684_s9 + $0xf8] sm:$0xff] }
 0x2de   : > { %3300 = vst.msk [vmem:[%s5736_s25 + $0x70] sm:$0xf] %vm3271_vm3, %v4721_v37  ;;  %v4724_v42 = vpack.c.bf16 %v1392_v39, %v1392_v39  ;;  %v1390_v43 = vmax.f32 %v1350_v40, 0.0  ;;  %v1408_v44 = vpack.c.bf16 %v1392_v39, %v1391_v30  ;;  %v4508_v37 = vcombine.low %v1748_v20, %v1752_v21 }
 0x2df   : > { %2145 = vmatprep.subr.bf16.mxu0 %v4463_v38  ;;  %v4499_v40 = vcombine.high %v1739_v29, %v1743_v31  ;;  %v4500_v38 = vcombine.low %v1740_v32, %v1744_v33 }
 0x2e0   : > { %3303 = vst.msk [vmem:[%s5736_s25 + $0x7c] sm:$0xf] %vm3271_vm3, %v4724_v42  ;;  %v1407_v45 = vpack.c.bf16 %v1390_v43, %v1389_v34  ;;  %v4722_v46 = vpack.c.bf16 %v1390_v43, %v1390_v43  ;;  %2146 = vmatpush1.bf16.msra.mxu0 %v4462_v60  ;;  %v4506_v34 = vcombine.low %v1747_v15, %v1751_v19  ;;  %v1731_v43 = vld [vmem:[%s6684_s9 + $0xd0] sm:$0xff] }
 0x2e1   : > { %2517 = vmatprep.subr.bf16.mxu0 %v4523_v56  ;;  %v4501_v42 = vcombine.high %v1740_v32, %v1744_v33 }
 0x2e2   : > { %3301 = vst.msk [vmem:[%s5736_s25 + $0x74] sm:$0xf] %vm3271_vm3, %v4722_v46  ;;  %5081 = vmatprep.mubr.msk.bf16.mxu1 %vm855_vm2, %v1407_v45  ;;  %v1735_v45 = vld [vmem:[%s6684_s9 + $0xf0] sm:$0xff]  ;;  %v1732_v46 = vld [vmem:[%s6684_s9 + $0xd8] sm:$0xff] }
 0x2e3   : > { %5082 = vmatmul.mubr.msk.bf16.gmra.mxu1 %vm855_vm2, %v1408_v44  ;;  %v4491_v60 = vcombine.high %v1731_v43, %v1735_v45  ;;  %v4493_v48 = vcombine.high %v1732_v46, %v1736_v47  ;;  %v4490_v56 = vcombine.low %v1731_v43, %v1735_v45  ;;  %v4492_v59 = vcombine.low %v1732_v46, %v1736_v47 }
 0x2e4   : > { %2356 = vmatprep.mubr.bf16.mxu1 %v5322_v51 }
 0x36b   : > { %v5055_v61 = vpop.f32.mrf.mxu1 }
 0x36c   : > { %v1539_v22 = vadd.f32 %v5055_v61, %v5916_v63 }
 0x36d   : > { %v1530_v62 = vpop.f32.mrf.mxu1 }
 0x36e   : > { %v1531_v1 = vadd.f32 %v5916_v63, %v1530_v62  ;;  %v1659_v30 = vmax.f32 %v1539_v22, 0.0  ;;  %v4483_v62 = vcombine.high %v1723_v50, %v1727_v53 }
 0x36f   : > { %v5056_v0 = vpop.f32.mrf.mxu1 }
 0x370   : > { %v1657_v7 = vmax.f32 %v1531_v1, 0.0  ;;  %v1542_v13 = vadd.f32 %v5056_v0, %v5916_v63  ;;  %v1715_v1 = vld [vmem:[%s6684_s9 + $0x50] sm:$0xff] }
 0x371   : > { %v1533_v3 = vpop.f32.mrf.mxu1 }
 0x372   : > { %v1534_v4 = vadd.f32 %v5916_v63, %v1533_v3  ;;  %v1660_v25 = vmax.f32 %v1542_v13, 0.0  ;;  %v1707_v13 = vld [vmem:[%s6684_s9 + $0x10] sm:$0xff] }
 0x373   : > { %v5920_v5 = vpop.f32.mrf.mxu1 }
 0x374   : > { %v1658_v8 = vmax.f32 %v1534_v4, 0.0  ;;  %v5966_v35 = vpack.c.bf16 %v1660_v25, %v1659_v30  ;;  %v1555_v3 = vadd.f32 %v5920_v5, %v5916_v63  ;;  %v1719_v4 = vld [vmem:[%s6684_s9 + $0x70] sm:$0xff] }
 0x375   : > { %v1546_v12 = vpop.f32.mrf.mxu1  ;;  %v4475_v11 = vcombine.high %v1715_v1, %v1719_v4  ;;  %v4474_v19 = vcombine.low %v1715_v1, %v1719_v4 }
 0x376   : > { %v5935_v14 = vpack.c.bf16 %v1658_v8, %v1657_v7  ;;  %v1547_v44 = vadd.f32 %v5916_v63, %v1546_v12  ;;  %v1720_v7 = vld [vmem:[%s6684_s9 + $0x78] sm:$0xff]  ;;  %v4482_v8 = vcombine.low %v1723_v50, %v1727_v53  ;;  %v1663_v15 = vmax.f32 %v1555_v3, 0.0 }
 0x377   : > { %v5060_v16 = vpop.f32.mrf.mxu1  ;;  %v4477_v12 = vcombine.high %v1716_v6, %v1720_v7  ;;  %v4476_v22 = vcombine.low %v1716_v6, %v1720_v7 }
 0x378   : > { %2164 = vmatmul.mubr.bf16.vlgmr.msra.gmra.mxu0 %v5935_v14  ;;  %2357 = vmatmul.mubr.bf16.vlgmr.msra.gmra.mxu1 %v5935_v14  ;;  %v1661_v52 = vmax.f32 %v1547_v44, 0.0  ;;  %v1558_v57 = vadd.f32 %v5060_v16, %v5916_v63  ;;  %v1711_v16 = vld [vmem:[%s6684_s9 + $0x30] sm:$0xff] }
 0x379   : > { %2518 = vmatpush1.bf16.msra.mxu0 %v4522_v55  ;;  %2711 = vmatpush1.bf16.msra.mxu1 %v4524_v58  ;;  %v1549_v28 = vpop.f32.mrf.mxu1  ;;  %v1728_v55 = vld [vmem:[%s6684_s9 + $0xb8] sm:$0xff] }
 0x37a   : > { %2173 = vmatprep.mubr.bf16.mxu0 %v5322_v51  ;;  %2366 = vmatprep.mubr.bf16.mxu1 %v5322_v51  ;;  %v1550_v49 = vadd.f32 %v5916_v63, %v1549_v28  ;;  %v4485_v0 = vcombine.high %v1724_v54, %v1728_v55  ;;  %v1664_v5 = vmax.f32 %v1558_v57, 0.0  ;;  %v4484_v9 = vcombine.low %v1724_v54, %v1728_v55 }
 0x37b   : > { %2519 = vmatprep.subr.bf16.mxu0 %v4515_v17  ;;  %2712 = vmatprep.subr.bf16.mxu1 %v4517_v18  ;;  %v5969_v39 = vpop.f32.mrf.mxu1  ;;  %v1708_v17 = vld [vmem:[%s6684_s9 + $0x18] sm:$0xff]  ;;  %v4466_v28 = vcombine.low %v1707_v13, %v1711_v16 }
 0x37c   : > { %v1662_v2 = vmax.f32 %v1550_v49, 0.0  ;;  %v1712_v18 = vld [vmem:[%s6684_s9 + $0x38] sm:$0xff]  ;;  %v6033_v20 = vpack.c.bf16 %v1664_v5, %v1663_v15  ;;  %v1571_v49 = vadd.f32 %v5969_v39, %v5916_v63 }
 0x37d   : > { %2520 = vmatpush1.bf16.msra.mxu0 %v4514_v23  ;;  %2713 = vmatpush1.bf16.msra.mxu1 %v4516_v24  ;;  %v1562_v41 = vpop.f32.mrf.mxu1  ;;  %v4467_v24 = vcombine.high %v1707_v13, %v1711_v16  ;;  %v4469_v25 = vcombine.high %v1708_v17, %v1712_v18  ;;  %v4468_v29 = vcombine.low %v1708_v17, %v1712_v18 }
 0x37e   : > { %2521 = vmatprep.subr.bf16.mxu0 %v4507_v26  ;;  %2714 = vmatprep.subr.bf16.mxu1 %v4509_v27  ;;  %v6001_v58 = vpack.c.bf16 %v1662_v2, %v1661_v52  ;;  %v1563_v26 = vadd.f32 %v5916_v63, %v1562_v41 }
 0x37f   : > { %v5064_v61 = vpop.f32.mrf.mxu1 }
 0x380   : > { %2174 = vmatmul.mubr.bf16.gmra.mxu0 %v5966_v35  ;;  %2367 = vmatmul.mubr.bf16.gmra.mxu1 %v5966_v35  ;;  %v1665_v31 = vmax.f32 %v1563_v26, 0.0  ;;  %v1574_v32 = vadd.f32 %v5064_v61, %v5916_v63 }
 0x381   : > { %2183 = vmatprep.mubr.bf16.mxu0 %v5322_v51  ;;  %2376 = vmatprep.mubr.bf16.mxu1 %v5322_v51  ;;  %v1565_v10 = vpop.f32.mrf.mxu1 }
 0x382   : > { %2522 = vmatpush1.bf16.msra.mxu0 %v4506_v34  ;;  %2715 = vmatpush1.bf16.msra.mxu1 %v4508_v37  ;;  %v1566_v21 = vadd.f32 %v5916_v63, %v1565_v10  ;;  %v1668_v37 = vmax.f32 %v1574_v32, 0.0 }
 0x383   : > { %2523 = vmatprep.subr.bf16.mxu0 %v4499_v40  ;;  %2716 = vmatprep.subr.bf16.mxu1 %v4501_v42  ;;  %v5067_v23 = vpop.f32.mrf.mxu1  ;;  %v1667_v42 = vmax.f32 %v1571_v49, 0.0 }
 0x384   : > { %v1666_v27 = vmax.f32 %v1566_v21, 0.0 }
 0x385   : > { %v1578_v30 = vpop.f32.mrf.mxu1  ;;  %v6050_v43 = vpack.c.bf16 %v1668_v37, %v1667_v42 }
 0x386   : > { %2524 = vmatpush1.bf16.msra.mxu0 %v4498_v36  ;;  %2717 = vmatpush1.bf16.msra.mxu1 %v4500_v38  ;;  %v6042_v33 = vpack.c.bf16 %v1666_v27, %v1665_v31  ;;  %v1579_v46 = vadd.f32 %v5916_v63, %v1578_v30  ;;  %v1587_v36 = vadd.f32 %v5067_v23, %v5916_v63 }
 0x387   : > { %2525 = vmatprep.subr.bf16.mxu0 %v4491_v60  ;;  %2718 = vmatprep.subr.bf16.mxu1 %v4493_v48  ;;  %v5068_v34 = vpop.f32.mrf.mxu1 }
 0x388   : > { %2184 = vmatmul.mubr.bf16.gmra.mxu0 %v6001_v58  ;;  %2377 = vmatmul.mubr.bf16.gmra.mxu1 %v6001_v58  ;;  %v1669_v2 = vmax.f32 %v1579_v46, 0.0  ;;  %v1590_v38 = vadd.f32 %v5068_v34, %v5916_v63  ;;  %v1671_v48 = vmax.f32 %v1587_v36, 0.0 }
 0x389   : > { %2193 = vmatprep.mubr.bf16.mxu0 %v5322_v51  ;;  %2386 = vmatprep.mubr.bf16.mxu1 %v5322_v51  ;;  %v1581_v40 = vpop.f32.mrf.mxu1 }
 0x38a   : > { %2526 = vmatpush1.bf16.msra.mxu0 %v4490_v56  ;;  %2719 = vmatpush1.bf16.msra.mxu1 %v4492_v59  ;;  %v1582_v44 = vadd.f32 %v5916_v63, %v1581_v40  ;;  %v1672_v50 = vmax.f32 %v1590_v38, 0.0 }
 0x38b   : > { %2527 = vmatprep.subr.bf16.mxu0 %v4483_v62  ;;  %2720 = vmatprep.subr.bf16.mxu1 %v4485_v0  ;;  %v5071_v45 = vpop.f32.mrf.mxu1 }
 0x38c   : > { %v1670_v39 = vmax.f32 %v1582_v44, 0.0  ;;  %v6066_v53 = vpack.c.bf16 %v1672_v50, %v1671_v48  ;;  %v1603_v62 = vadd.f32 %v5071_v45, %v5916_v63 }
 0x38d   : > { %v1594_v47 = vpop.f32.mrf.mxu1 }
 0x38e   : > { %2528 = vmatpush1.bf16.msra.mxu0 %v4482_v8  ;;  %2721 = vmatpush1.bf16.msra.mxu1 %v4484_v9  ;;  %v6060_v41 = vpack.c.bf16 %v1670_v39, %v1669_v2  ;;  %v1595_v54 = vadd.f32 %v5916_v63, %v1594_v47  ;;  %v1675_v4 = vmax.f32 %v1603_v62, 0.0 }
 0x38f   : > { %2529 = vmatprep.subr.bf16.mxu0 %v4475_v11  ;;  %2722 = vmatprep.subr.bf16.mxu1 %v4477_v12  ;;  %v5072_v60 = vpop.f32.mrf.mxu1 }
 0x390   : > { %2194 = vmatmul.mubr.bf16.gmra.mxu0 %v6033_v20  ;;  %2387 = vmatmul.mubr.bf16.gmra.mxu1 %v6033_v20  ;;  %v1673_v57 = vmax.f32 %v1595_v54, 0.0  ;;  %v1606_v0 = vadd.f32 %v5072_v60, %v5916_v63 }
 0x391   : > { %2203 = vmatprep.mubr.bf16.mxu0 %v5322_v51  ;;  %2396 = vmatprep.mubr.bf16.mxu1 %v5322_v51  ;;  %v1597_v52 = vpop.f32.mrf.mxu1 }
 0x392   : > { %2530 = vmatpush1.bf16.msra.mxu0 %v4474_v19  ;;  %2723 = vmatpush1.bf16.msra.mxu1 %v4476_v22  ;;  %v1598_v55 = vadd.f32 %v5916_v63, %v1597_v52  ;;  %v1676_v6 = vmax.f32 %v1606_v0, 0.0 }
 0x393   : > { %2531 = vmatprep.subr.bf16.mxu0 %v4467_v24  ;;  %2724 = vmatprep.subr.bf16.mxu1 %v4469_v25  ;;  %v5075_v56 = vpop.f32.mrf.mxu1 }
 0x394   : > { %v1674_v59 = vmax.f32 %v1598_v55, 0.0  ;;  %v6082_v5 = vpack.c.bf16 %v1676_v6, %v1675_v4  ;;  %v1619_v15 = vadd.f32 %v5075_v56, %v5916_v63 }
 0x395   : > { %v1610_v61 = vpop.f32.mrf.mxu1 }
 0x396   : > { %2532 = vmatpush1.bf16.msra.mxu0 %v4466_v28  ;;  %2725 = vmatpush1.bf16.msra.mxu1 %v4468_v29  ;;  %v6076_v1 = vpack.c.bf16 %v1674_v59, %v1673_v57  ;;  %v1611_v8 = vadd.f32 %v5916_v63, %v1610_v61  ;;  %v1679_v19 = vmax.f32 %v1619_v15, 0.0 }
 0x397   : > { %v5076_v3 = vpop.f32.mrf.mxu1 }
 0x398   : > { %2204 = vmatmul.mubr.bf16.gmra.mxu0 %v6042_v33  ;;  %2397 = vmatmul.mubr.bf16.gmra.mxu1 %v6042_v33  ;;  %v1677_v11 = vmax.f32 %v1611_v8, 0.0  ;;  %v1622_v16 = vadd.f32 %v5076_v3, %v5916_v63 }
 0x399   : > { %2213 = vmatprep.mubr.bf16.mxu0 %v5322_v51  ;;  %2406 = vmatprep.mubr.bf16.mxu1 %v5322_v51  ;;  %v1613_v7 = vpop.f32.mrf.mxu1 }
 0x39a   : > { %v1614_v9 = vadd.f32 %v5916_v63, %v1613_v7  ;;  %v1680_v21 = vmax.f32 %v1622_v16, 0.0 }
 0x39b   : > { %v5079_v10 = vpop.f32.mrf.mxu1 }
 0x39c   : > { %v1678_v12 = vmax.f32 %v1614_v9, 0.0  ;;  %v6098_v23 = vpack.c.bf16 %v1680_v21, %v1679_v19  ;;  %v1635_v30 = vadd.f32 %v5079_v10, %v5916_v63 }
 0x39d   : > { %v1626_v13 = vpop.f32.mrf.mxu1 }
 0x39e   : > { %v6092_v17 = vpack.c.bf16 %v1678_v12, %v1677_v11  ;;  %v1627_v24 = vadd.f32 %v5916_v63, %v1626_v13  ;;  %v1683_v49 = vmax.f32 %v1635_v30, 0.0 }
 0x39f   : > { %v5080_v18 = vpop.f32.mrf.mxu1 }
 0x3a0   : > { %2214 = vmatmul.mubr.bf16.gmra.mxu0 %v6050_v43  ;;  %2407 = vmatmul.mubr.bf16.gmra.mxu1 %v6050_v43  ;;  %v1681_v27 = vmax.f32 %v1627_v24, 0.0  ;;  %v1638_v31 = vadd.f32 %v5080_v18, %v5916_v63 }
 0x3a1   : > { %2223 = vmatprep.mubr.bf16.mxu0 %v5322_v51  ;;  %2416 = vmatprep.mubr.bf16.mxu1 %v5322_v51  ;;  %v1629_v22 = vpop.f32.mrf.mxu1 }
 0x3a2   : > { %v1630_v25 = vadd.f32 %v5916_v63, %v1629_v22  ;;  %v1684_v37 = vmax.f32 %v1638_v31, 0.0 }
 0x3a3   : > { %v5083_v26 = vpop.f32.mrf.mxu1 }
 0x3a4   : > { %v1682_v28 = vmax.f32 %v1630_v25, 0.0  ;;  %v6114_v42 = vpack.c.bf16 %v1684_v37, %v1683_v49  ;;  %v1651_v47 = vadd.f32 %v5083_v26, %v5916_v63 }
 0x3a5   : > { %v1642_v29 = vpop.f32.mrf.mxu1 }
 0x3a6   : > { %v6108_v32 = vpack.c.bf16 %v1682_v28, %v1681_v27  ;;  %v1643_v44 = vadd.f32 %v5916_v63, %v1642_v29  ;;  %v1687_v38 = vmax.f32 %v1651_v47, 0.0 }
 0x3a7   : > { %v5084_v34 = vpop.f32.mrf.mxu1 }
 0x3a8   : > { %2224 = vmatmul.mubr.bf16.gmra.mxu0 %v6060_v41  ;;  %2417 = vmatmul.mubr.bf16.gmra.mxu1 %v6060_v41  ;;  %v1685_v46 = vmax.f32 %v1643_v44, 0.0  ;;  %v1654_v2 = vadd.f32 %v5084_v34, %v5916_v63 }
 0x3a9   : > { %2233 = vmatprep.mubr.bf16.mxu0 %v5322_v51  ;;  %2426 = vmatprep.mubr.bf16.mxu1 %v5322_v51  ;;  %v1645_v40 = vpop.f32.mrf.mxu1 }
 0x3aa   : > { %v1646_v45 = vadd.f32 %v5916_v63, %v1645_v40  ;;  %v1688_v60 = vmax.f32 %v1654_v2, 0.0  ;;  %v1771_v63 = vlaneseq }
 0x3ac   : > { %v1686_v39 = vmax.f32 %v1646_v45, 0.0  ;;  %v6130_v48 = vpack.c.bf16 %v1688_v60, %v1687_v38 }
 0x3ae   : > { %v6124_v36 = vpack.c.bf16 %v1686_v39, %v1685_v46 }
 0x3b0   : > { %2234 = vmatmul.mubr.bf16.gmra.mxu0 %v6066_v53  ;;  %2427 = vmatmul.mubr.bf16.gmra.mxu1 %v6066_v53 }
 0x3b1   : > { %2243 = vmatprep.mubr.bf16.mxu0 %v5322_v51  ;;  %2436 = vmatprep.mubr.bf16.mxu1 %v5322_v51 }
 0x3b8   : > { %2244 = vmatmul.mubr.bf16.gmra.mxu0 %v6076_v1  ;;  %2437 = vmatmul.mubr.bf16.gmra.mxu1 %v6076_v1 }
 0x3b9   : > { %2253 = vmatprep.mubr.bf16.mxu0 %v5322_v51  ;;  %2446 = vmatprep.mubr.bf16.mxu1 %v5322_v51 }
 0x3c0   : > { %2254 = vmatmul.mubr.bf16.gmra.mxu0 %v6082_v5  ;;  %2447 = vmatmul.mubr.bf16.gmra.mxu1 %v6082_v5 }
 0x3c1   : > { %2263 = vmatprep.mubr.bf16.mxu0 %v5322_v51  ;;  %2456 = vmatprep.mubr.bf16.mxu1 %v5322_v51 }
 0x3c8   : > { %2264 = vmatmul.mubr.bf16.gmra.mxu0 %v6092_v17  ;;  %2457 = vmatmul.mubr.bf16.gmra.mxu1 %v6092_v17 }
 0x3c9   : > { %2273 = vmatprep.mubr.bf16.mxu0 %v5322_v51  ;;  %2466 = vmatprep.mubr.bf16.mxu1 %v5322_v51 }
 0x3d0   : > { %2274 = vmatmul.mubr.bf16.gmra.mxu0 %v6098_v23  ;;  %2467 = vmatmul.mubr.bf16.gmra.mxu1 %v6098_v23 }
 0x3d1   : > { %2283 = vmatprep.mubr.bf16.mxu0 %v5322_v51  ;;  %2476 = vmatprep.mubr.bf16.mxu1 %v5322_v51 }
 0x3d8   : > { %2284 = vmatmul.mubr.bf16.gmra.mxu0 %v6108_v32  ;;  %2477 = vmatmul.mubr.bf16.gmra.mxu1 %v6108_v32 }
 0x3d9   : > { %2293 = vmatprep.mubr.bf16.mxu0 %v5322_v51  ;;  %2486 = vmatprep.mubr.bf16.mxu1 %v5322_v51 }
 0x3e0   : > { %2294 = vmatmul.mubr.bf16.gmra.mxu0 %v6114_v42  ;;  %2487 = vmatmul.mubr.bf16.gmra.mxu1 %v6114_v42 }
 0x3e1   : > { %2303 = vmatprep.mubr.bf16.mxu0 %v5322_v51  ;;  %2496 = vmatprep.mubr.bf16.mxu1 %v5322_v51 }
 0x3e8   : > { %2304 = vmatmul.mubr.bf16.gmra.mxu0 %v6124_v36  ;;  %2497 = vmatmul.mubr.bf16.gmra.mxu1 %v6124_v36 }
 0x3e9   : > { %2313 = vmatprep.mubr.bf16.mxu0 %v5322_v51  ;;  %2506 = vmatprep.mubr.bf16.mxu1 %v5322_v51 }
 0x3f0   : > { %2314 = vmatmul.mubr.bf16.gmra.mxu0 %v6130_v48  ;;  %2507 = vmatmul.mubr.bf16.gmra.mxu1 %v6130_v48 }
 0x3f1   : > { %2549 = vmatprep.mubr.bf16.mxu0 %v5322_v51  ;;  %2742 = vmatprep.mubr.bf16.mxu1 %v5322_v51 }
 0x3f8   : > { %2550 = vmatmul.mubr.bf16.vlgmr.msra.gmra.mxu0 %v5935_v14  ;;  %2743 = vmatmul.mubr.bf16.vlgmr.msra.gmra.mxu1 %v5935_v14  ;;  %v6164_v14 = vshrl.u32 %v1771_v63, 7 }
 0x3f9   : > { %2559 = vmatprep.mubr.bf16.mxu0 %v5322_v51  ;;  %2752 = vmatprep.mubr.bf16.mxu1 %v5322_v51 }
 0x400   : > { %2560 = vmatmul.mubr.bf16.gmra.mxu0 %v5966_v35  ;;  %2753 = vmatmul.mubr.bf16.gmra.mxu1 %v5966_v35  ;;  %v1773_v35 = vsub.s32 0, %v6164_v14 }
 0x401   : > { %2569 = vmatprep.mubr.bf16.mxu0 %v5322_v51  ;;  %2762 = vmatprep.mubr.bf16.mxu1 %v5322_v51 }
 0x408   : > { %2570 = vmatmul.mubr.bf16.gmra.mxu0 %v6001_v58  ;;  %2763 = vmatmul.mubr.bf16.gmra.mxu1 %v6001_v58  ;;  %v1781_v58 = vsub.s32 2, %v6164_v14 }
 0x409   : > { %2579 = vmatprep.mubr.bf16.mxu0 %v5322_v51  ;;  %2772 = vmatprep.mubr.bf16.mxu1 %v5322_v51 }
 0x410   : > { %2580 = vmatmul.mubr.bf16.gmra.mxu0 %v6033_v20  ;;  %2773 = vmatmul.mubr.bf16.gmra.mxu1 %v6033_v20  ;;  %v1769_v20 = vld [vmem:[%s6685_s10] sm:$0xff] }
 0x411   : > { %2589 = vmatprep.mubr.bf16.mxu0 %v5322_v51  ;;  %2782 = vmatprep.mubr.bf16.mxu1 %v5322_v51  ;;  %v6179_v50 = vrot.slane %v1769_v20, %v1781_v58 }
 0x418   : > { %2590 = vmatmul.mubr.bf16.gmra.mxu0 %v6042_v33  ;;  %2783 = vmatmul.mubr.bf16.gmra.mxu1 %v6042_v33  ;;  %v1777_v33 = vsub.s32 1, %v6164_v14 }
 0x419   : > { %2599 = vmatprep.mubr.bf16.mxu0 %v5322_v51  ;;  %2792 = vmatprep.mubr.bf16.mxu1 %v5322_v51 }
 0x41a   : > { %v6181_v52 = vrot.slane %v1769_v20, %v1777_v33 }
 0x420   : > { %2600 = vmatmul.mubr.bf16.gmra.mxu0 %v6050_v43  ;;  %2793 = vmatmul.mubr.bf16.gmra.mxu1 %v6050_v43  ;;  %v1785_v43 = vsub.s32 3, %v6164_v14 }
 0x421   : > { %2609 = vmatprep.mubr.bf16.mxu0 %v5322_v51  ;;  %2802 = vmatprep.mubr.bf16.mxu1 %v5322_v51 }
 0x428   : > { %2610 = vmatmul.mubr.bf16.gmra.mxu0 %v6060_v41  ;;  %2803 = vmatmul.mubr.bf16.gmra.mxu1 %v6060_v41  ;;  %v6177_v41 = vrot.slane %v1769_v20, %v1773_v35 }
 0x429   : > { %2619 = vmatprep.mubr.bf16.mxu0 %v5322_v51  ;;  %2812 = vmatprep.mubr.bf16.mxu1 %v5322_v51 }
 0x430   : > { %2620 = vmatmul.mubr.bf16.gmra.mxu0 %v6066_v53  ;;  %2813 = vmatmul.mubr.bf16.gmra.mxu1 %v6066_v53  ;;  %v6183_v53 = vrot.slane %v1769_v20, %v1785_v43 }
 0x431   : > { %2629 = vmatprep.mubr.bf16.mxu0 %v5322_v51  ;;  %2822 = vmatprep.mubr.bf16.mxu1 %v5322_v51 }
 0x438   : > { %v2165_v54 = vpop.f32.mrf.mxu0  ;;  %v2358_v55 = vpop.f32.mrf.mxu1  ;;  %2630 = vmatmul.mubr.bf16.gmra.mxu0 %v6076_v1  ;;  %2823 = vmatmul.mubr.bf16.gmra.mxu1 %v6076_v1 }
 0x439   : > { %v2166_v56 = vadd.f32 %v2165_v54, %v6177_v41  ;;  %v2359_v57 = vadd.f32 %v2358_v55, %v6179_v50  ;;  %2639 = vmatprep.mubr.bf16.mxu0 %v5322_v51  ;;  %2832 = vmatprep.mubr.bf16.mxu1 %v5322_v51 }
 0x43a   : > { %v2167_v59 = vpop.f32.mrf.mxu0  ;;  %v2360_v61 = vpop.f32.mrf.mxu1 }
 0x43b   : > { %v2168_v62 = vadd.f32 %v2167_v59, %v6181_v52  ;;  %v2361_v0 = vadd.f32 %v2360_v61, %v6183_v53  ;;  %v2903_v1 = vmax.f32 %v2166_v56, 0.0  ;;  %v2905_v6 = vmax.f32 %v2359_v57, 0.0 }
 0x43c   : > { %v2169_v3 = vpop.f32.mrf.mxu0  ;;  %v2362_v4 = vpop.f32.mrf.mxu1 }
 0x43d   : > { %v2904_v7 = vmax.f32 %v2168_v62, 0.0  ;;  %v2906_v8 = vmax.f32 %v2361_v0, 0.0  ;;  %v2170_v9 = vadd.f32 %v2169_v3, %v6177_v41  ;;  %v2363_v10 = vadd.f32 %v2362_v4, %v6179_v50 }
 0x43e   : > { %v2171_v11 = vpop.f32.mrf.mxu0  ;;  %v2364_v12 = vpop.f32.mrf.mxu1 }
 0x43f   : > { %v4725_v13 = vpack.c.bf16 %v2904_v7, %v2903_v1  ;;  %v4726_v15 = vpack.c.bf16 %v2906_v8, %v2905_v6  ;;  %v2172_v16 = vadd.f32 %v2171_v11, %v6181_v52  ;;  %v2365_v18 = vadd.f32 %v2364_v12, %v6183_v53 }
 0x440   : > { %v2175_v19 = vpop.f32.mrf.mxu0  ;;  %v2368_v21 = vpop.f32.mrf.mxu1  ;;  %2640 = vmatmul.mubr.bf16.gmra.mxu0 %v6082_v5  ;;  %2833 = vmatmul.mubr.bf16.gmra.mxu1 %v6082_v5  ;;  %v2911_v25 = vmax.f32 %v2170_v9, 0.0  ;;  %v2913_v26 = vmax.f32 %v2363_v10, 0.0 }
 0x441   : > { %4072 = vst [vmem:[%s6202_s19] sm:$0xff] %v4725_v13  ;;  %4073 = vst [vmem:[%s6202_s19 + $0x8] sm:$0xff] %v4726_v15  ;;  %v2176_v22 = vadd.f32 %v2175_v19, %v6177_v41  ;;  %v2369_v24 = vadd.f32 %v2368_v21, %v6179_v50  ;;  %2649 = vmatprep.mubr.bf16.mxu0 %v5322_v51  ;;  %2842 = vmatprep.mubr.bf16.mxu1 %v5322_v51  ;;  %v2912_v27 = vmax.f32 %v2172_v16, 0.0 }
 0x442   : > { %v2914_v5 = vmax.f32 %v2365_v18, 0.0  ;;  %v2177_v28 = vpop.f32.mrf.mxu0  ;;  %v2370_v29 = vpop.f32.mrf.mxu1 }
 0x443   : > { %v2178_v30 = vadd.f32 %v2177_v28, %v6181_v52  ;;  %v2371_v31 = vadd.f32 %v2370_v29, %v6183_v53  ;;  %v4729_v34 = vpack.c.bf16 %v2912_v27, %v2911_v25  ;;  %v2919_v44 = vmax.f32 %v2176_v22, 0.0 }
 0x444   : > { %v4730_v49 = vpack.c.bf16 %v2914_v5, %v2913_v26  ;;  %v2179_v37 = vpop.f32.mrf.mxu0  ;;  %v2372_v40 = vpop.f32.mrf.mxu1  ;;  %v2921_v45 = vmax.f32 %v2369_v24, 0.0 }
 0x445   : > { %v2920_v46 = vmax.f32 %v2178_v30, 0.0  ;;  %v2922_v39 = vmax.f32 %v2371_v31, 0.0  ;;  %4076 = vst [vmem:[%s6202_s19 + $0x20] sm:$0xff] %v4729_v34  ;;  %v2180_v47 = vadd.f32 %v2179_v37, %v6177_v41  ;;  %v2373_v2 = vadd.f32 %v2372_v40, %v6179_v50 }
 0x446   : > { %4077 = vst [vmem:[%s6202_s19 + $0x28] sm:$0xff] %v4730_v49  ;;  %v2181_v38 = vpop.f32.mrf.mxu0  ;;  %v2374_v60 = vpop.f32.mrf.mxu1 }
 0x447   : > { %v4733_v63 = vpack.c.bf16 %v2920_v46, %v2919_v44  ;;  %v4734_v35 = vpack.c.bf16 %v2922_v39, %v2921_v45  ;;  %v2182_v58 = vadd.f32 %v2181_v38, %v6181_v52  ;;  %v2375_v20 = vadd.f32 %v2374_v60, %v6183_v53 }
 0x448   : > { %v2185_v33 = vpop.f32.mrf.mxu0  ;;  %v2378_v43 = vpop.f32.mrf.mxu1  ;;  %2650 = vmatmul.mubr.bf16.gmra.mxu0 %v6092_v17  ;;  %2843 = vmatmul.mubr.bf16.gmra.mxu1 %v6092_v17  ;;  %v2927_v56 = vmax.f32 %v2180_v47, 0.0  ;;  %v2929_v57 = vmax.f32 %v2373_v2, 0.0 }
 0x449   : > { %4080 = vst [vmem:[%s6202_s19 + $0x40] sm:$0xff] %v4733_v63  ;;  %4081 = vst [vmem:[%s6202_s19 + $0x48] sm:$0xff] %v4734_v35  ;;  %v2186_v54 = vadd.f32 %v2185_v33, %v6177_v41  ;;  %v2379_v55 = vadd.f32 %v2378_v43, %v6179_v50  ;;  %2659 = vmatprep.mubr.bf16.mxu0 %v5322_v51  ;;  %2852 = vmatprep.mubr.bf16.mxu1 %v5322_v51  ;;  %v2928_v59 = vmax.f32 %v2182_v58, 0.0 }
 0x44a   : > { %v2930_v61 = vmax.f32 %v2375_v20, 0.0  ;;  %v2187_v62 = vpop.f32.mrf.mxu0  ;;  %v2380_v0 = vpop.f32.mrf.mxu1 }
 0x44b   : > { %v2188_v17 = vadd.f32 %v2187_v62, %v6181_v52  ;;  %v2381_v3 = vadd.f32 %v2380_v0, %v6183_v53  ;;  %v4737_v4 = vpack.c.bf16 %v2928_v59, %v2927_v56  ;;  %v2935_v8 = vmax.f32 %v2186_v54, 0.0 }
 0x44c   : > { %v4738_v1 = vpack.c.bf16 %v2930_v61, %v2929_v57  ;;  %v2189_v6 = vpop.f32.mrf.mxu0  ;;  %v2382_v7 = vpop.f32.mrf.mxu1  ;;  %v2937_v9 = vmax.f32 %v2379_v55, 0.0 }
 0x44d   : > { %v2936_v10 = vmax.f32 %v2188_v17, 0.0  ;;  %v2938_v11 = vmax.f32 %v2381_v3, 0.0  ;;  %4084 = vst [vmem:[%s6202_s19 + $0x60] sm:$0xff] %v4737_v4  ;;  %v2190_v12 = vadd.f32 %v2189_v6, %v6177_v41  ;;  %v2383_v13 = vadd.f32 %v2382_v7, %v6179_v50 }
 0x44e   : > { %4085 = vst [vmem:[%s6202_s19 + $0x68] sm:$0xff] %v4738_v1  ;;  %v2191_v15 = vpop.f32.mrf.mxu0  ;;  %v2384_v16 = vpop.f32.mrf.mxu1 }
 0x44f   : > { %v4741_v18 = vpack.c.bf16 %v2936_v10, %v2935_v8  ;;  %v4742_v19 = vpack.c.bf16 %v2938_v11, %v2937_v9  ;;  %v2192_v21 = vadd.f32 %v2191_v15, %v6181_v52  ;;  %v2385_v22 = vadd.f32 %v2384_v16, %v6183_v53 }
 0x450   : > { %v2195_v24 = vpop.f32.mrf.mxu0  ;;  %v2388_v25 = vpop.f32.mrf.mxu1  ;;  %2660 = vmatmul.mubr.bf16.gmra.mxu0 %v6098_v23  ;;  %2853 = vmatmul.mubr.bf16.gmra.mxu1 %v6098_v23  ;;  %v2943_v5 = vmax.f32 %v2190_v12, 0.0  ;;  %v2945_v28 = vmax.f32 %v2383_v13, 0.0 }
 0x451   : > { %4088 = vst [vmem:[%s6202_s19 + $0x80] sm:$0xff] %v4741_v18  ;;  %4089 = vst [vmem:[%s6202_s19 + $0x88] sm:$0xff] %v4742_v19  ;;  %v2196_v26 = vadd.f32 %v2195_v24, %v6177_v41  ;;  %v2389_v27 = vadd.f32 %v2388_v25, %v6179_v50  ;;  %2669 = vmatprep.mubr.bf16.mxu0 %v5322_v51  ;;  %2862 = vmatprep.mubr.bf16.mxu1 %v5322_v51  ;;  %v2944_v29 = vmax.f32 %v2192_v21, 0.0 }
 0x452   : > { %v2946_v30 = vmax.f32 %v2385_v22, 0.0  ;;  %v2197_v31 = vpop.f32.mrf.mxu0  ;;  %v2390_v34 = vpop.f32.mrf.mxu1 }
 0x453   : > { %v2198_v23 = vadd.f32 %v2197_v31, %v6181_v52  ;;  %v2391_v49 = vadd.f32 %v2390_v34, %v6183_v53  ;;  %v4745_v37 = vpack.c.bf16 %v2944_v29, %v2943_v5  ;;  %v2951_v46 = vmax.f32 %v2196_v26, 0.0 }
 0x454   : > { %v4746_v40 = vpack.c.bf16 %v2946_v30, %v2945_v28  ;;  %v2199_v44 = vpop.f32.mrf.mxu0  ;;  %v2392_v45 = vpop.f32.mrf.mxu1  ;;  %v2953_v39 = vmax.f32 %v2389_v27, 0.0 }
 0x455   : > { %v2952_v47 = vmax.f32 %v2198_v23, 0.0  ;;  %v2954_v2 = vmax.f32 %v2391_v49, 0.0  ;;  %4092 = vst [vmem:[%s6202_s19 + $0xa0] sm:$0xff] %v4745_v37  ;;  %v2200_v38 = vadd.f32 %v2199_v44, %v6177_v41  ;;  %v2393_v60 = vadd.f32 %v2392_v45, %v6179_v50 }
 0x456   : > { %4093 = vst [vmem:[%s6202_s19 + $0xa8] sm:$0xff] %v4746_v40  ;;  %v2201_v63 = vpop.f32.mrf.mxu0  ;;  %v2394_v35 = vpop.f32.mrf.mxu1 }
 0x457   : > { %v4749_v58 = vpack.c.bf16 %v2952_v47, %v2951_v46  ;;  %v4750_v20 = vpack.c.bf16 %v2954_v2, %v2953_v39  ;;  %v2202_v33 = vadd.f32 %v2201_v63, %v6181_v52  ;;  %v2395_v43 = vadd.f32 %v2394_v35, %v6183_v53 }
 0x458   : > { %v2205_v54 = vpop.f32.mrf.mxu0  ;;  %v2398_v55 = vpop.f32.mrf.mxu1  ;;  %2670 = vmatmul.mubr.bf16.gmra.mxu0 %v6108_v32  ;;  %2863 = vmatmul.mubr.bf16.gmra.mxu1 %v6108_v32  ;;  %v2959_v59 = vmax.f32 %v2200_v38, 0.0  ;;  %v2961_v61 = vmax.f32 %v2393_v60, 0.0 }
 0x459   : > { %4096 = vst [vmem:[%s6202_s19 + $0xc0] sm:$0xff] %v4749_v58  ;;  %4097 = vst [vmem:[%s6202_s19 + $0xc8] sm:$0xff] %v4750_v20  ;;  %v2206_v56 = vadd.f32 %v2205_v54, %v6177_v41  ;;  %v2399_v57 = vadd.f32 %v2398_v55, %v6179_v50  ;;  %2679 = vmatprep.mubr.bf16.mxu0 %v5322_v51  ;;  %2872 = vmatprep.mubr.bf16.mxu1 %v5322_v51  ;;  %v2960_v62 = vmax.f32 %v2202_v33, 0.0 }
 0x45a   : > { %v2962_v0 = vmax.f32 %v2395_v43, 0.0  ;;  %v2207_v17 = vpop.f32.mrf.mxu0  ;;  %v2400_v3 = vpop.f32.mrf.mxu1 }
 0x45b   : > { %v2208_v32 = vadd.f32 %v2207_v17, %v6181_v52  ;;  %v2401_v4 = vadd.f32 %v2400_v3, %v6183_v53  ;;  %v4753_v1 = vpack.c.bf16 %v2960_v62, %v2959_v59  ;;  %v2967_v9 = vmax.f32 %v2206_v56, 0.0 }
 0x45c   : > { %v4754_v6 = vpack.c.bf16 %v2962_v0, %v2961_v61  ;;  %v2209_v7 = vpop.f32.mrf.mxu0  ;;  %v2402_v8 = vpop.f32.mrf.mxu1  ;;  %v2969_v10 = vmax.f32 %v2399_v57, 0.0 }
 0x45d   : > { %v2968_v11 = vmax.f32 %v2208_v32, 0.0  ;;  %v2970_v12 = vmax.f32 %v2401_v4, 0.0  ;;  %4100 = vst [vmem:[%s6202_s19 + $0xe0] sm:$0xff] %v4753_v1  ;;  %v2210_v13 = vadd.f32 %v2209_v7, %v6177_v41  ;;  %v2403_v15 = vadd.f32 %v2402_v8, %v6179_v50 }
 0x45e   : > { %4101 = vst [vmem:[%s6202_s19 + $0xe8] sm:$0xff] %v4754_v6  ;;  %v2211_v16 = vpop.f32.mrf.mxu0  ;;  %v2404_v18 = vpop.f32.mrf.mxu1 }
 0x45f   : > { %v4757_v19 = vpack.c.bf16 %v2968_v11, %v2967_v9  ;;  %v4758_v21 = vpack.c.bf16 %v2970_v12, %v2969_v10  ;;  %v2212_v22 = vadd.f32 %v2211_v16, %v6181_v52  ;;  %v2405_v24 = vadd.f32 %v2404_v18, %v6183_v53 }
 0x460   : > { %v2215_v25 = vpop.f32.mrf.mxu0  ;;  %v2408_v26 = vpop.f32.mrf.mxu1  ;;  %2680 = vmatmul.mubr.bf16.gmra.mxu0 %v6114_v42  ;;  %2873 = vmatmul.mubr.bf16.gmra.mxu1 %v6114_v42  ;;  %v2975_v28 = vmax.f32 %v2210_v13, 0.0  ;;  %v2977_v29 = vmax.f32 %v2403_v15, 0.0 }
 0x461   : > { %4104 = vst [vmem:[%s6202_s19 + $0x100] sm:$0xff] %v4757_v19  ;;  %4105 = vst [vmem:[%s6202_s19 + $0x108] sm:$0xff] %v4758_v21  ;;  %v2216_v27 = vadd.f32 %v2215_v25, %v6177_v41  ;;  %v2409_v5 = vadd.f32 %v2408_v26, %v6179_v50  ;;  %2689 = vmatprep.mubr.bf16.mxu0 %v5322_v51  ;;  %2882 = vmatprep.mubr.bf16.mxu1 %v5322_v51  ;;  %v2976_v30 = vmax.f32 %v2212_v22, 0.0 }
 0x462   : > { %v2978_v31 = vmax.f32 %v2405_v24, 0.0  ;;  %v2217_v34 = vpop.f32.mrf.mxu0  ;;  %v2410_v23 = vpop.f32.mrf.mxu1 }
 0x463   : > { %v2218_v42 = vadd.f32 %v2217_v34, %v6181_v52  ;;  %v2411_v49 = vadd.f32 %v2410_v23, %v6183_v53  ;;  %v4761_v37 = vpack.c.bf16 %v2976_v30, %v2975_v28  ;;  %v2983_v46 = vmax.f32 %v2216_v27, 0.0 }
 0x464   : > { %v4762_v40 = vpack.c.bf16 %v2978_v31, %v2977_v29  ;;  %v2219_v44 = vpop.f32.mrf.mxu0  ;;  %v2412_v45 = vpop.f32.mrf.mxu1  ;;  %v2985_v39 = vmax.f32 %v2409_v5, 0.0 }
 0x465   : > { %v2984_v47 = vmax.f32 %v2218_v42, 0.0  ;;  %v2986_v2 = vmax.f32 %v2411_v49, 0.0  ;;  %4108 = vst [vmem:[%s6202_s19 + $0x120] sm:$0xff] %v4761_v37  ;;  %v2220_v38 = vadd.f32 %v2219_v44, %v6177_v41  ;;  %v2413_v60 = vadd.f32 %v2412_v45, %v6179_v50 }
 0x466   : > { %4109 = vst [vmem:[%s6202_s19 + $0x128] sm:$0xff] %v4762_v40  ;;  %v2221_v63 = vpop.f32.mrf.mxu0  ;;  %v2414_v35 = vpop.f32.mrf.mxu1 }
 0x467   : > { %v4765_v58 = vpack.c.bf16 %v2984_v47, %v2983_v46  ;;  %v4766_v20 = vpack.c.bf16 %v2986_v2, %v2985_v39  ;;  %v2222_v33 = vadd.f32 %v2221_v63, %v6181_v52  ;;  %v2415_v43 = vadd.f32 %v2414_v35, %v6183_v53 }
 0x468   : > { %v2225_v54 = vpop.f32.mrf.mxu0  ;;  %v2418_v55 = vpop.f32.mrf.mxu1  ;;  %2690 = vmatmul.mubr.bf16.gmra.mxu0 %v6124_v36  ;;  %2883 = vmatmul.mubr.bf16.gmra.mxu1 %v6124_v36  ;;  %v2991_v59 = vmax.f32 %v2220_v38, 0.0  ;;  %v2993_v61 = vmax.f32 %v2413_v60, 0.0 }
 0x469   : > { %4112 = vst [vmem:[%s6202_s19 + $0x140] sm:$0xff] %v4765_v58  ;;  %4113 = vst [vmem:[%s6202_s19 + $0x148] sm:$0xff] %v4766_v20  ;;  %v2226_v56 = vadd.f32 %v2225_v54, %v6177_v41  ;;  %v2419_v57 = vadd.f32 %v2418_v55, %v6179_v50  ;;  %2699 = vmatprep.mubr.bf16.mxu0 %v5322_v51  ;;  %2892 = vmatprep.mubr.bf16.mxu1 %v5322_v51  ;;  %v2992_v62 = vmax.f32 %v2222_v33, 0.0 }
 0x46a   : > { %v2994_v0 = vmax.f32 %v2415_v43, 0.0  ;;  %v2227_v17 = vpop.f32.mrf.mxu0  ;;  %v2420_v3 = vpop.f32.mrf.mxu1 }
 0x46b   : > { %v2228_v36 = vadd.f32 %v2227_v17, %v6181_v52  ;;  %v2421_v32 = vadd.f32 %v2420_v3, %v6183_v53  ;;  %v4769_v4 = vpack.c.bf16 %v2992_v62, %v2991_v59  ;;  %v2999_v8 = vmax.f32 %v2226_v56, 0.0 }
 0x46c   : > { %v4770_v1 = vpack.c.bf16 %v2994_v0, %v2993_v61  ;;  %v2229_v6 = vpop.f32.mrf.mxu0  ;;  %v2422_v7 = vpop.f32.mrf.mxu1  ;;  %v3001_v9 = vmax.f32 %v2419_v57, 0.0 }
 0x46d   : > { %v3000_v10 = vmax.f32 %v2228_v36, 0.0  ;;  %v3002_v51 = vmax.f32 %v2421_v32, 0.0  ;;  %4116 = vst [vmem:[%s6202_s19 + $0x160] sm:$0xff] %v4769_v4  ;;  %v2230_v11 = vadd.f32 %v2229_v6, %v6177_v41  ;;  %v2423_v12 = vadd.f32 %v2422_v7, %v6179_v50 }
 0x46e   : > { %4117 = vst [vmem:[%s6202_s19 + $0x168] sm:$0xff] %v4770_v1  ;;  %v2231_v13 = vpop.f32.mrf.mxu0  ;;  %v2424_v15 = vpop.f32.mrf.mxu1 }
 0x46f   : > { %v4773_v16 = vpack.c.bf16 %v3000_v10, %v2999_v8  ;;  %v4774_v18 = vpack.c.bf16 %v3002_v51, %v3001_v9  ;;  %v2232_v19 = vadd.f32 %v2231_v13, %v6181_v52  ;;  %v2425_v21 = vadd.f32 %v2424_v15, %v6183_v53 }
 0x470   : > { %v2235_v22 = vpop.f32.mrf.mxu0  ;;  %v2428_v24 = vpop.f32.mrf.mxu1  ;;  %2700 = vmatmul.mubr.bf16.gmra.mxu0 %v6130_v48  ;;  %2893 = vmatmul.mubr.bf16.gmra.mxu1 %v6130_v48  ;;  %v3007_v27 = vmax.f32 %v2230_v11, 0.0  ;;  %v3009_v5 = vmax.f32 %v2423_v12, 0.0 }
 0x471   : > { %4120 = vst [vmem:[%s6202_s19 + $0x180] sm:$0xff] %v4773_v16  ;;  %4121 = vst [vmem:[%s6202_s19 + $0x188] sm:$0xff] %v4774_v18  ;;  %v2236_v25 = vadd.f32 %v2235_v22, %v6177_v41  ;;  %v2429_v26 = vadd.f32 %v2428_v24, %v6179_v50  ;;  %v3008_v28 = vmax.f32 %v2232_v19, 0.0  ;;  %v3010_v29 = vmax.f32 %v2425_v21, 0.0 }
 0x472   : > { %v2237_v30 = vpop.f32.mrf.mxu0  ;;  %v2430_v31 = vpop.f32.mrf.mxu1 }
 0x473   : > { %v2238_v34 = vadd.f32 %v2237_v30, %v6181_v52  ;;  %v2431_v23 = vadd.f32 %v2430_v31, %v6183_v53  ;;  %v4777_v42 = vpack.c.bf16 %v3008_v28, %v3007_v27  ;;  %v4778_v48 = vpack.c.bf16 %v3010_v29, %v3009_v5 }
 0x474   : > { %v2239_v49 = vpop.f32.mrf.mxu0  ;;  %v2432_v37 = vpop.f32.mrf.mxu1  ;;  %v3015_v40 = vmax.f32 %v2236_v25, 0.0  ;;  %v3017_v44 = vmax.f32 %v2429_v26, 0.0 }
 0x475   : > { %v3016_v45 = vmax.f32 %v2238_v34, 0.0  ;;  %v3018_v46 = vmax.f32 %v2431_v23, 0.0  ;;  %4124 = vst [vmem:[%s6202_s19 + $0x1a0] sm:$0xff] %v4777_v42  ;;  %4125 = vst [vmem:[%s6202_s19 + $0x1a8] sm:$0xff] %v4778_v48  ;;  %v2240_v39 = vadd.f32 %v2239_v49, %v6177_v41  ;;  %v2433_v47 = vadd.f32 %v2432_v37, %v6179_v50 }
 0x476   : > { %v2241_v2 = vpop.f32.mrf.mxu0  ;;  %v2434_v38 = vpop.f32.mrf.mxu1 }
 0x477   : > { %v4781_v60 = vpack.c.bf16 %v3016_v45, %v3015_v40  ;;  %v4782_v63 = vpack.c.bf16 %v3018_v46, %v3017_v44  ;;  %v2242_v35 = vadd.f32 %v2241_v2, %v6181_v52  ;;  %v2435_v58 = vadd.f32 %v2434_v38, %v6183_v53 }
 0x478   : > { %v2245_v20 = vpop.f32.mrf.mxu0  ;;  %v2438_v33 = vpop.f32.mrf.mxu1  ;;  %v3023_v55 = vmax.f32 %v2240_v39, 0.0  ;;  %v3025_v56 = vmax.f32 %v2433_v47, 0.0 }
 0x479   : > { %4128 = vst [vmem:[%s6202_s19 + $0x1c0] sm:$0xff] %v4781_v60  ;;  %4129 = vst [vmem:[%s6202_s19 + $0x1c8] sm:$0xff] %v4782_v63  ;;  %v2246_v43 = vadd.f32 %v2245_v20, %v6177_v41  ;;  %v2439_v54 = vadd.f32 %v2438_v33, %v6179_v50  ;;  %v3024_v57 = vmax.f32 %v2242_v35, 0.0  ;;  %v3026_v59 = vmax.f32 %v2435_v58, 0.0 }
 0x47a   : > { %v2247_v61 = vpop.f32.mrf.mxu0  ;;  %v2440_v62 = vpop.f32.mrf.mxu1 }
 0x47b   : > { %v2248_v0 = vadd.f32 %v2247_v61, %v6181_v52  ;;  %v2441_v17 = vadd.f32 %v2440_v62, %v6183_v53  ;;  %v4785_v3 = vpack.c.bf16 %v3024_v57, %v3023_v55  ;;  %v4786_v36 = vpack.c.bf16 %v3026_v59, %v3025_v56 }
 0x47c   : > { %v2249_v32 = vpop.f32.mrf.mxu0  ;;  %v2442_v4 = vpop.f32.mrf.mxu1  ;;  %v3031_v1 = vmax.f32 %v2246_v43, 0.0  ;;  %v3033_v6 = vmax.f32 %v2439_v54, 0.0 }
 0x47d   : > { %v3032_v7 = vmax.f32 %v2248_v0, 0.0  ;;  %v3034_v8 = vmax.f32 %v2441_v17, 0.0  ;;  %4132 = vst [vmem:[%s6202_s19 + $0x1e0] sm:$0xff] %v4785_v3  ;;  %4133 = vst [vmem:[%s6202_s19 + $0x1e8] sm:$0xff] %v4786_v36  ;;  %v2250_v9 = vadd.f32 %v2249_v32, %v6177_v41  ;;  %v2443_v10 = vadd.f32 %v2442_v4, %v6179_v50 }
 0x47e   : > { %v2251_v51 = vpop.f32.mrf.mxu0  ;;  %v2444_v11 = vpop.f32.mrf.mxu1 }
 0x47f   : > { %v4789_v12 = vpack.c.bf16 %v3032_v7, %v3031_v1  ;;  %v4790_v13 = vpack.c.bf16 %v3034_v8, %v3033_v6  ;;  %v2252_v15 = vadd.f32 %v2251_v51, %v6181_v52  ;;  %v2445_v16 = vadd.f32 %v2444_v11, %v6183_v53 }
 0x480   : > { %v2255_v18 = vpop.f32.mrf.mxu0  ;;  %v2448_v19 = vpop.f32.mrf.mxu1  ;;  %v3039_v24 = vmax.f32 %v2250_v9, 0.0  ;;  %v3041_v25 = vmax.f32 %v2443_v10, 0.0 }
 0x481   : > { %4136 = vst [vmem:[%s6202_s19 + $0x200] sm:$0xff] %v4789_v12  ;;  %4137 = vst [vmem:[%s6202_s19 + $0x208] sm:$0xff] %v4790_v13  ;;  %v2256_v21 = vadd.f32 %v2255_v18, %v6177_v41  ;;  %v2449_v22 = vadd.f32 %v2448_v19, %v6179_v50  ;;  %v3040_v26 = vmax.f32 %v2252_v15, 0.0  ;;  %v3042_v27 = vmax.f32 %v2445_v16, 0.0 }
 0x482   : > { %v2257_v5 = vpop.f32.mrf.mxu0  ;;  %v2450_v28 = vpop.f32.mrf.mxu1 }
 0x483   : > { %v2258_v29 = vadd.f32 %v2257_v5, %v6181_v52  ;;  %v2451_v30 = vadd.f32 %v2450_v28, %v6183_v53  ;;  %v4793_v31 = vpack.c.bf16 %v3040_v26, %v3039_v24  ;;  %v4794_v34 = vpack.c.bf16 %v3042_v27, %v3041_v25 }
 0x484   : > { %v2259_v23 = vpop.f32.mrf.mxu0  ;;  %v2452_v42 = vpop.f32.mrf.mxu1  ;;  %v3047_v48 = vmax.f32 %v2256_v21, 0.0  ;;  %v3049_v49 = vmax.f32 %v2449_v22, 0.0 }
 0x485   : > { %v3048_v37 = vmax.f32 %v2258_v29, 0.0  ;;  %v3050_v40 = vmax.f32 %v2451_v30, 0.0  ;;  %4140 = vst [vmem:[%s6202_s19 + $0x220] sm:$0xff] %v4793_v31  ;;  %4141 = vst [vmem:[%s6202_s19 + $0x228] sm:$0xff] %v4794_v34  ;;  %v2260_v44 = vadd.f32 %v2259_v23, %v6177_v41  ;;  %v2453_v45 = vadd.f32 %v2452_v42, %v6179_v50 }
 0x486   : > { %v2261_v46 = vpop.f32.mrf.mxu0  ;;  %v2454_v39 = vpop.f32.mrf.mxu1 }
 0x487   : > { %v4797_v47 = vpack.c.bf16 %v3048_v37, %v3047_v48  ;;  %v4798_v2 = vpack.c.bf16 %v3050_v40, %v3049_v49  ;;  %v2262_v38 = vadd.f32 %v2261_v46, %v6181_v52  ;;  %v2455_v60 = vadd.f32 %v2454_v39, %v6183_v53 }
 0x488   : > { %v2265_v63 = vpop.f32.mrf.mxu0  ;;  %v2458_v35 = vpop.f32.mrf.mxu1  ;;  %v3055_v33 = vmax.f32 %v2260_v44, 0.0  ;;  %v3057_v43 = vmax.f32 %v2453_v45, 0.0 }
 0x489   : > { %4144 = vst [vmem:[%s6202_s19 + $0x240] sm:$0xff] %v4797_v47  ;;  %4145 = vst [vmem:[%s6202_s19 + $0x248] sm:$0xff] %v4798_v2  ;;  %v2266_v58 = vadd.f32 %v2265_v63, %v6177_v41  ;;  %v2459_v20 = vadd.f32 %v2458_v35, %v6179_v50  ;;  %v3056_v54 = vmax.f32 %v2262_v38, 0.0  ;;  %v3058_v55 = vmax.f32 %v2455_v60, 0.0 }
 0x48a   : > { %v2267_v56 = vpop.f32.mrf.mxu0  ;;  %v2460_v57 = vpop.f32.mrf.mxu1 }
 0x48b   : > { %v2268_v59 = vadd.f32 %v2267_v56, %v6181_v52  ;;  %v2461_v61 = vadd.f32 %v2460_v57, %v6183_v53  ;;  %v4801_v62 = vpack.c.bf16 %v3056_v54, %v3055_v33  ;;  %v4802_v0 = vpack.c.bf16 %v3058_v55, %v3057_v43 }
 0x48c   : > { %v2269_v17 = vpop.f32.mrf.mxu0  ;;  %v2462_v3 = vpop.f32.mrf.mxu1  ;;  %v3063_v36 = vmax.f32 %v2266_v58, 0.0  ;;  %v3065_v32 = vmax.f32 %v2459_v20, 0.0 }
 0x48d   : > { %v3064_v4 = vmax.f32 %v2268_v59, 0.0  ;;  %v3066_v1 = vmax.f32 %v2461_v61, 0.0  ;;  %4148 = vst [vmem:[%s6202_s19 + $0x260] sm:$0xff] %v4801_v62  ;;  %4149 = vst [vmem:[%s6202_s19 + $0x268] sm:$0xff] %v4802_v0  ;;  %v2270_v6 = vadd.f32 %v2269_v17, %v6177_v41  ;;  %v2463_v7 = vadd.f32 %v2462_v3, %v6179_v50 }
 0x48e   : > { %v2271_v8 = vpop.f32.mrf.mxu0  ;;  %v2464_v9 = vpop.f32.mrf.mxu1 }
 0x48f   : > { %v4805_v10 = vpack.c.bf16 %v3064_v4, %v3063_v36  ;;  %v4806_v51 = vpack.c.bf16 %v3066_v1, %v3065_v32  ;;  %v2272_v11 = vadd.f32 %v2271_v8, %v6181_v52  ;;  %v2465_v12 = vadd.f32 %v2464_v9, %v6183_v53 }
 0x490   : > { %v2275_v13 = vpop.f32.mrf.mxu0  ;;  %v2468_v15 = vpop.f32.mrf.mxu1  ;;  %v3071_v19 = vmax.f32 %v2270_v6, 0.0  ;;  %v3073_v21 = vmax.f32 %v2463_v7, 0.0 }
 0x491   : > { %4152 = vst [vmem:[%s6202_s19 + $0x280] sm:$0xff] %v4805_v10  ;;  %4153 = vst [vmem:[%s6202_s19 + $0x288] sm:$0xff] %v4806_v51  ;;  %v2276_v16 = vadd.f32 %v2275_v13, %v6177_v41  ;;  %v2469_v18 = vadd.f32 %v2468_v15, %v6179_v50  ;;  %v3072_v22 = vmax.f32 %v2272_v11, 0.0  ;;  %v3074_v24 = vmax.f32 %v2465_v12, 0.0 }
 0x492   : > { %v2277_v25 = vpop.f32.mrf.mxu0  ;;  %v2470_v26 = vpop.f32.mrf.mxu1 }
 0x493   : > { %v2278_v27 = vadd.f32 %v2277_v25, %v6181_v52  ;;  %v2471_v5 = vadd.f32 %v2470_v26, %v6183_v53  ;;  %v4809_v28 = vpack.c.bf16 %v3072_v22, %v3071_v19  ;;  %v4810_v29 = vpack.c.bf16 %v3074_v24, %v3073_v21 }
 0x494   : > { %v2279_v30 = vpop.f32.mrf.mxu0  ;;  %v2472_v31 = vpop.f32.mrf.mxu1  ;;  %v3079_v34 = vmax.f32 %v2276_v16, 0.0  ;;  %v3081_v23 = vmax.f32 %v2469_v18, 0.0 }
 0x495   : > { %v3080_v42 = vmax.f32 %v2278_v27, 0.0  ;;  %v3082_v48 = vmax.f32 %v2471_v5, 0.0  ;;  %4156 = vst [vmem:[%s6202_s19 + $0x2a0] sm:$0xff] %v4809_v28  ;;  %4157 = vst [vmem:[%s6202_s19 + $0x2a8] sm:$0xff] %v4810_v29  ;;  %v2280_v49 = vadd.f32 %v2279_v30, %v6177_v41  ;;  %v2473_v37 = vadd.f32 %v2472_v31, %v6179_v50 }
 0x496   : > { %v2281_v40 = vpop.f32.mrf.mxu0  ;;  %v2474_v44 = vpop.f32.mrf.mxu1 }
 0x497   : > { %v4813_v45 = vpack.c.bf16 %v3080_v42, %v3079_v34  ;;  %v4814_v46 = vpack.c.bf16 %v3082_v48, %v3081_v23  ;;  %v2282_v39 = vadd.f32 %v2281_v40, %v6181_v52  ;;  %v2475_v47 = vadd.f32 %v2474_v44, %v6183_v53 }
 0x498   : > { %v2285_v2 = vpop.f32.mrf.mxu0  ;;  %v2478_v38 = vpop.f32.mrf.mxu1  ;;  %v3087_v35 = vmax.f32 %v2280_v49, 0.0  ;;  %v3089_v58 = vmax.f32 %v2473_v37, 0.0 }
 0x499   : > { %4160 = vst [vmem:[%s6202_s19 + $0x2c0] sm:$0xff] %v4813_v45  ;;  %4161 = vst [vmem:[%s6202_s19 + $0x2c8] sm:$0xff] %v4814_v46  ;;  %v2286_v60 = vadd.f32 %v2285_v2, %v6177_v41  ;;  %v2479_v63 = vadd.f32 %v2478_v38, %v6179_v50  ;;  %v3088_v20 = vmax.f32 %v2282_v39, 0.0  ;;  %v3090_v33 = vmax.f32 %v2475_v47, 0.0 }
 0x49a   : > { %v2287_v43 = vpop.f32.mrf.mxu0  ;;  %v2480_v54 = vpop.f32.mrf.mxu1 }
 0x49b   : > { %v2288_v55 = vadd.f32 %v2287_v43, %v6181_v52  ;;  %v2481_v56 = vadd.f32 %v2480_v54, %v6183_v53  ;;  %v4817_v57 = vpack.c.bf16 %v3088_v20, %v3087_v35  ;;  %v4818_v59 = vpack.c.bf16 %v3090_v33, %v3089_v58 }
 0x49c   : > { %v2289_v61 = vpop.f32.mrf.mxu0  ;;  %v2482_v62 = vpop.f32.mrf.mxu1  ;;  %v3095_v0 = vmax.f32 %v2286_v60, 0.0  ;;  %v3097_v17 = vmax.f32 %v2479_v63, 0.0 }
 0x49d   : > { %v3096_v3 = vmax.f32 %v2288_v55, 0.0  ;;  %v3098_v36 = vmax.f32 %v2481_v56, 0.0  ;;  %4164 = vst [vmem:[%s6202_s19 + $0x2e0] sm:$0xff] %v4817_v57  ;;  %4165 = vst [vmem:[%s6202_s19 + $0x2e8] sm:$0xff] %v4818_v59  ;;  %v2290_v32 = vadd.f32 %v2289_v61, %v6177_v41  ;;  %v2483_v4 = vadd.f32 %v2482_v62, %v6179_v50 }
 0x49e   : > { %v2291_v1 = vpop.f32.mrf.mxu0  ;;  %v2484_v6 = vpop.f32.mrf.mxu1 }
 0x49f   : > { %v4821_v7 = vpack.c.bf16 %v3096_v3, %v3095_v0  ;;  %v4822_v8 = vpack.c.bf16 %v3098_v36, %v3097_v17  ;;  %v2292_v9 = vadd.f32 %v2291_v1, %v6181_v52  ;;  %v2485_v10 = vadd.f32 %v2484_v6, %v6183_v53 }
 0x4a0   : > { %v2295_v51 = vpop.f32.mrf.mxu0  ;;  %v2488_v11 = vpop.f32.mrf.mxu1  ;;  %v3103_v15 = vmax.f32 %v2290_v32, 0.0  ;;  %v3105_v16 = vmax.f32 %v2483_v4, 0.0 }
 0x4a1   : > { %4168 = vst [vmem:[%s6202_s19 + $0x300] sm:$0xff] %v4821_v7  ;;  %4169 = vst [vmem:[%s6202_s19 + $0x308] sm:$0xff] %v4822_v8  ;;  %v2296_v12 = vadd.f32 %v2295_v51, %v6177_v41  ;;  %v2489_v13 = vadd.f32 %v2488_v11, %v6179_v50  ;;  %v3104_v18 = vmax.f32 %v2292_v9, 0.0  ;;  %v3106_v19 = vmax.f32 %v2485_v10, 0.0 }
 0x4a2   : > { %v2297_v21 = vpop.f32.mrf.mxu0  ;;  %v2490_v22 = vpop.f32.mrf.mxu1  ;;  %v1789_v10 = vsub.s32 4, %v6164_v14  ;;  %v1797_v51 = vsub.s32 6, %v6164_v14 }
 0x4a3   : > { %v2298_v24 = vadd.f32 %v2297_v21, %v6181_v52  ;;  %v2491_v25 = vadd.f32 %v2490_v22, %v6183_v53  ;;  %v4825_v26 = vpack.c.bf16 %v3104_v18, %v3103_v15  ;;  %v4826_v27 = vpack.c.bf16 %v3106_v19, %v3105_v16 }
 0x4a4   : > { %v2299_v5 = vpop.f32.mrf.mxu0  ;;  %v2492_v28 = vpop.f32.mrf.mxu1  ;;  %v3111_v29 = vmax.f32 %v2296_v12, 0.0  ;;  %v3113_v30 = vmax.f32 %v2489_v13, 0.0 }
 0x4a5   : > { %v3112_v31 = vmax.f32 %v2298_v24, 0.0  ;;  %v3114_v34 = vmax.f32 %v2491_v25, 0.0  ;;  %4172 = vst [vmem:[%s6202_s19 + $0x320] sm:$0xff] %v4825_v26  ;;  %4173 = vst [vmem:[%s6202_s19 + $0x328] sm:$0xff] %v4826_v27  ;;  %v2300_v23 = vadd.f32 %v2299_v5, %v6177_v41  ;;  %v2493_v42 = vadd.f32 %v2492_v28, %v6179_v50 }
 0x4a6   : > { %v2301_v48 = vpop.f32.mrf.mxu0  ;;  %v2494_v49 = vpop.f32.mrf.mxu1  ;;  %v1793_v25 = vsub.s32 5, %v6164_v14  ;;  %v1801_v26 = vsub.s32 7, %v6164_v14 }
 0x4a7   : > { %v4829_v37 = vpack.c.bf16 %v3112_v31, %v3111_v29  ;;  %v4830_v40 = vpack.c.bf16 %v3114_v34, %v3113_v30  ;;  %v2302_v44 = vadd.f32 %v2301_v48, %v6181_v52  ;;  %v2495_v45 = vadd.f32 %v2494_v49, %v6183_v53  ;;  %v5179_v30 = vld [vmem:[%s6685_s10] sm:$0xff] }
 0x4a8   : > { %v2305_v46 = vpop.f32.mrf.mxu0  ;;  %v2498_v39 = vpop.f32.mrf.mxu1  ;;  %v3119_v38 = vmax.f32 %v2300_v23, 0.0  ;;  %v3121_v60 = vmax.f32 %v2493_v42, 0.0  ;;  %v6409_v31 = vrot.slane %v5179_v30, %v1789_v10  ;;  %v6411_v34 = vrot.slane %v5179_v30, %v1797_v51 }
 0x4a9   : > { %4176 = vst [vmem:[%s6202_s19 + $0x340] sm:$0xff] %v4829_v37  ;;  %4177 = vst [vmem:[%s6202_s19 + $0x348] sm:$0xff] %v4830_v40  ;;  %v2306_v47 = vadd.f32 %v2305_v46, %v6177_v41  ;;  %v2499_v2 = vadd.f32 %v2498_v39, %v6179_v50  ;;  %v3120_v63 = vmax.f32 %v2302_v44, 0.0  ;;  %v3122_v35 = vmax.f32 %v2495_v45, 0.0 }
 0x4aa   : > { %v2307_v58 = vpop.f32.mrf.mxu0  ;;  %v2500_v20 = vpop.f32.mrf.mxu1  ;;  %v6417_v39 = vrot.slane %v5179_v30, %v1793_v25 }
 0x4ab   : > { %v2308_v33 = vadd.f32 %v2307_v58, %v6181_v52  ;;  %v2501_v43 = vadd.f32 %v2500_v20, %v6183_v53  ;;  %v4833_v54 = vpack.c.bf16 %v3120_v63, %v3119_v38  ;;  %v4834_v55 = vpack.c.bf16 %v3122_v35, %v3121_v60 }
 0x4ac   : > { %v2309_v56 = vpop.f32.mrf.mxu0  ;;  %v2502_v57 = vpop.f32.mrf.mxu1  ;;  %v3127_v59 = vmax.f32 %v2306_v47, 0.0  ;;  %v3129_v61 = vmax.f32 %v2499_v2, 0.0  ;;  %v6419_v47 = vrot.slane %v5179_v30, %v1801_v26 }
 0x4ad   : > { %v3128_v62 = vmax.f32 %v2308_v33, 0.0  ;;  %v3130_v0 = vmax.f32 %v2501_v43, 0.0  ;;  %4180 = vst [vmem:[%s6202_s19 + $0x360] sm:$0xff] %v4833_v54  ;;  %4181 = vst [vmem:[%s6202_s19 + $0x368] sm:$0xff] %v4834_v55  ;;  %v2310_v17 = vadd.f32 %v2309_v56, %v6177_v41  ;;  %v2503_v3 = vadd.f32 %v2502_v57, %v6179_v50 }
 0x4ae   : > { %v2311_v36 = vpop.f32.mrf.mxu0  ;;  %v2504_v32 = vpop.f32.mrf.mxu1 }
 0x4af   : > { %v4837_v4 = vpack.c.bf16 %v3128_v62, %v3127_v59  ;;  %v4838_v1 = vpack.c.bf16 %v3130_v0, %v3129_v61  ;;  %v2312_v6 = vadd.f32 %v2311_v36, %v6181_v52  ;;  %v2505_v7 = vadd.f32 %v2504_v32, %v6183_v53 }
 0x4b0   : > { %v2315_v8 = vpop.f32.mrf.mxu0  ;;  %v2508_v9 = vpop.f32.mrf.mxu1  ;;  %v3135_v13 = vmax.f32 %v2310_v17, 0.0  ;;  %v3137_v15 = vmax.f32 %v2503_v3, 0.0 }
 0x4b1   : > { %4184 = vst [vmem:[%s6202_s19 + $0x380] sm:$0xff] %v4837_v4  ;;  %4185 = vst [vmem:[%s6202_s19 + $0x388] sm:$0xff] %v4838_v1  ;;  %v2316_v11 = vadd.f32 %v2315_v8, %v6177_v41  ;;  %v2509_v12 = vadd.f32 %v2508_v9, %v6179_v50  ;;  %v3136_v16 = vmax.f32 %v2312_v6, 0.0  ;;  %v3138_v18 = vmax.f32 %v2505_v7, 0.0 }
 0x4b2   : > { %v2317_v19 = vpop.f32.mrf.mxu0  ;;  %v2510_v21 = vpop.f32.mrf.mxu1 }
 0x4b3   : > { %v2318_v22 = vadd.f32 %v2317_v19, %v6181_v52  ;;  %v2511_v24 = vadd.f32 %v2510_v21, %v6183_v53  ;;  %v4841_v27 = vpack.c.bf16 %v3136_v16, %v3135_v13  ;;  %v4842_v5 = vpack.c.bf16 %v3138_v18, %v3137_v15 }
 0x4b4   : > { %v2319_v28 = vpop.f32.mrf.mxu0  ;;  %v2512_v29 = vpop.f32.mrf.mxu1  ;;  %v3143_v23 = vmax.f32 %v2316_v11, 0.0  ;;  %v3145_v42 = vmax.f32 %v2509_v12, 0.0 }
 0x4b5   : > { %v3144_v48 = vmax.f32 %v2318_v22, 0.0  ;;  %v3146_v49 = vmax.f32 %v2511_v24, 0.0  ;;  %4188 = vst [vmem:[%s6202_s19 + $0x3a0] sm:$0xff] %v4841_v27  ;;  %4189 = vst [vmem:[%s6202_s19 + $0x3a8] sm:$0xff] %v4842_v5  ;;  %v2320_v14 = vadd.f32 %v2319_v28, %v6177_v41  ;;  %v2513_v37 = vadd.f32 %v2512_v29, %v6179_v50 }
 0x4b6   : > { %v2321_v40 = vpop.f32.mrf.mxu0  ;;  %v2514_v44 = vpop.f32.mrf.mxu1 }
 0x4b7   : > { %v4845_v45 = vpack.c.bf16 %v3144_v48, %v3143_v23  ;;  %v4846_v46 = vpack.c.bf16 %v3146_v49, %v3145_v42  ;;  %v2322_v2 = vadd.f32 %v2321_v40, %v6181_v52  ;;  %v2515_v38 = vadd.f32 %v2514_v44, %v6183_v53 }
 0x4b8   : > { %v2551_v60 = vpop.f32.mrf.mxu0  ;;  %v2744_v63 = vpop.f32.mrf.mxu1  ;;  %v3151_v35 = vmax.f32 %v2320_v14, 0.0  ;;  %v3153_v58 = vmax.f32 %v2513_v37, 0.0 }
 0x4b9   : > { %4192 = vst [vmem:[%s6202_s19 + $0x3c0] sm:$0xff] %v4845_v45  ;;  %4193 = vst [vmem:[%s6202_s19 + $0x3c8] sm:$0xff] %v4846_v46  ;;  %v2552_v41 = vadd.f32 %v2551_v60, %v6409_v31  ;;  %v2745_v50 = vadd.f32 %v2744_v63, %v6411_v34  ;;  %v3152_v20 = vmax.f32 %v2322_v2, 0.0  ;;  %v3154_v33 = vmax.f32 %v2515_v38, 0.0 }
 0x4ba   : > { %v2553_v43 = vpop.f32.mrf.mxu0  ;;  %v2746_v54 = vpop.f32.mrf.mxu1 }
 0x4bb   : > { %v2554_v52 = vadd.f32 %v2553_v43, %v6417_v39  ;;  %v2747_v53 = vadd.f32 %v2746_v54, %v6419_v47  ;;  %v4849_v55 = vpack.c.bf16 %v3152_v20, %v3151_v35  ;;  %v4850_v56 = vpack.c.bf16 %v3154_v33, %v3153_v58 }
 0x4bc   : > { %v2555_v57 = vpop.f32.mrf.mxu0  ;;  %v2748_v59 = vpop.f32.mrf.mxu1  ;;  %v2907_v61 = vmax.f32 %v2552_v41, 0.0  ;;  %v2909_v62 = vmax.f32 %v2745_v50, 0.0 }
 0x4bd   : > { %v2908_v0 = vmax.f32 %v2554_v52, 0.0  ;;  %v2910_v17 = vmax.f32 %v2747_v53, 0.0  ;;  %4196 = vst [vmem:[%s6202_s19 + $0x3e0] sm:$0xff] %v4849_v55  ;;  %4197 = vst [vmem:[%s6202_s19 + $0x3e8] sm:$0xff] %v4850_v56  ;;  %v2556_v3 = vadd.f32 %v2555_v57, %v6409_v31  ;;  %v2749_v36 = vadd.f32 %v2748_v59, %v6411_v34 }
 0x4be   : > { %v2557_v32 = vpop.f32.mrf.mxu0  ;;  %v2750_v4 = vpop.f32.mrf.mxu1 }
 0x4bf   : > { %v4727_v1 = vpack.c.bf16 %v2908_v0, %v2907_v61  ;;  %v4728_v6 = vpack.c.bf16 %v2910_v17, %v2909_v62  ;;  %v2558_v7 = vadd.f32 %v2557_v32, %v6417_v39  ;;  %v2751_v8 = vadd.f32 %v2750_v4, %v6419_v47 }
 0x4c0   : > { %v2561_v9 = vpop.f32.mrf.mxu0  ;;  %v2754_v10 = vpop.f32.mrf.mxu1  ;;  %v2915_v12 = vmax.f32 %v2556_v3, 0.0  ;;  %v2917_v13 = vmax.f32 %v2749_v36, 0.0 }
 0x4c1   : > { %4074 = vst [vmem:[%s6202_s19 + $0x10] sm:$0xff] %v4727_v1  ;;  %4075 = vst [vmem:[%s6202_s19 + $0x18] sm:$0xff] %v4728_v6  ;;  %v2562_v51 = vadd.f32 %v2561_v9, %v6409_v31  ;;  %v2755_v11 = vadd.f32 %v2754_v10, %v6411_v34  ;;  %v2916_v15 = vmax.f32 %v2558_v7, 0.0  ;;  %v2918_v16 = vmax.f32 %v2751_v8, 0.0 }
 0x4c2   : > { %v2563_v18 = vpop.f32.mrf.mxu0  ;;  %v2756_v19 = vpop.f32.mrf.mxu1 }
 0x4c3   : > { %v2564_v21 = vadd.f32 %v2563_v18, %v6417_v39  ;;  %v2757_v22 = vadd.f32 %v2756_v19, %v6419_v47  ;;  %v4731_v24 = vpack.c.bf16 %v2916_v15, %v2915_v12  ;;  %v4732_v25 = vpack.c.bf16 %v2918_v16, %v2917_v13 }
 0x4c4   : > { %v2565_v26 = vpop.f32.mrf.mxu0  ;;  %v2758_v27 = vpop.f32.mrf.mxu1  ;;  %v2923_v5 = vmax.f32 %v2562_v51, 0.0  ;;  %v2925_v28 = vmax.f32 %v2755_v11, 0.0 }
 0x4c5   : > { %v2924_v29 = vmax.f32 %v2564_v21, 0.0  ;;  %v2926_v30 = vmax.f32 %v2757_v22, 0.0  ;;  %4078 = vst [vmem:[%s6202_s19 + $0x30] sm:$0xff] %v4731_v24  ;;  %4079 = vst [vmem:[%s6202_s19 + $0x38] sm:$0xff] %v4732_v25  ;;  %v2566_v23 = vadd.f32 %v2565_v26, %v6409_v31  ;;  %v2759_v42 = vadd.f32 %v2758_v27, %v6411_v34 }
 0x4c6   : > { %v2567_v48 = vpop.f32.mrf.mxu0  ;;  %v2760_v49 = vpop.f32.mrf.mxu1 }
 0x4c7   : > { %v4735_v14 = vpack.c.bf16 %v2924_v29, %v2923_v5  ;;  %v4736_v37 = vpack.c.bf16 %v2926_v30, %v2925_v28  ;;  %v2568_v40 = vadd.f32 %v2567_v48, %v6417_v39  ;;  %v2761_v44 = vadd.f32 %v2760_v49, %v6419_v47 }
 0x4c8   : > { %v2571_v45 = vpop.f32.mrf.mxu0  ;;  %v2764_v46 = vpop.f32.mrf.mxu1  ;;  %v2931_v60 = vmax.f32 %v2566_v23, 0.0  ;;  %v2933_v63 = vmax.f32 %v2759_v42, 0.0 }
 0x4c9   : > { %4082 = vst [vmem:[%s6202_s19 + $0x50] sm:$0xff] %v4735_v14  ;;  %4083 = vst [vmem:[%s6202_s19 + $0x58] sm:$0xff] %v4736_v37  ;;  %v2572_v2 = vadd.f32 %v2571_v45, %v6409_v31  ;;  %v2765_v38 = vadd.f32 %v2764_v46, %v6411_v34  ;;  %v2932_v41 = vmax.f32 %v2568_v40, 0.0  ;;  %v2934_v50 = vmax.f32 %v2761_v44, 0.0 }
 0x4ca   : > { %v2573_v35 = vpop.f32.mrf.mxu0  ;;  %v2766_v58 = vpop.f32.mrf.mxu1 }
 0x4cb   : > { %v2574_v20 = vadd.f32 %v2573_v35, %v6417_v39  ;;  %v2767_v33 = vadd.f32 %v2766_v58, %v6419_v47  ;;  %v4739_v43 = vpack.c.bf16 %v2932_v41, %v2931_v60  ;;  %v4740_v54 = vpack.c.bf16 %v2934_v50, %v2933_v63 }
 0x4cc   : > { %v2575_v52 = vpop.f32.mrf.mxu0  ;;  %v2768_v53 = vpop.f32.mrf.mxu1  ;;  %v2939_v55 = vmax.f32 %v2572_v2, 0.0  ;;  %v2941_v56 = vmax.f32 %v2765_v38, 0.0 }
 0x4cd   : > { %v2940_v57 = vmax.f32 %v2574_v20, 0.0  ;;  %v2942_v59 = vmax.f32 %v2767_v33, 0.0  ;;  %4086 = vst [vmem:[%s6202_s19 + $0x70] sm:$0xff] %v4739_v43  ;;  %4087 = vst [vmem:[%s6202_s19 + $0x78] sm:$0xff] %v4740_v54  ;;  %v2576_v61 = vadd.f32 %v2575_v52, %v6409_v31  ;;  %v2769_v62 = vadd.f32 %v2768_v53, %v6411_v34 }
 0x4ce   : > { %v2577_v0 = vpop.f32.mrf.mxu0  ;;  %v2770_v17 = vpop.f32.mrf.mxu1 }
 0x4cf   : > { %v4743_v3 = vpack.c.bf16 %v2940_v57, %v2939_v55  ;;  %v4744_v36 = vpack.c.bf16 %v2942_v59, %v2941_v56  ;;  %v2578_v32 = vadd.f32 %v2577_v0, %v6417_v39  ;;  %v2771_v4 = vadd.f32 %v2770_v17, %v6419_v47 }
 0x4d0   : > { %v2581_v1 = vpop.f32.mrf.mxu0  ;;  %v2774_v6 = vpop.f32.mrf.mxu1  ;;  %v2947_v9 = vmax.f32 %v2576_v61, 0.0  ;;  %v2949_v10 = vmax.f32 %v2769_v62, 0.0 }
 0x4d1   : > { %4090 = vst [vmem:[%s6202_s19 + $0x90] sm:$0xff] %v4743_v3  ;;  %4091 = vst [vmem:[%s6202_s19 + $0x98] sm:$0xff] %v4744_v36  ;;  %v2582_v7 = vadd.f32 %v2581_v1, %v6409_v31  ;;  %v2775_v8 = vadd.f32 %v2774_v6, %v6411_v34  ;;  %v2948_v51 = vmax.f32 %v2578_v32, 0.0  ;;  %v2950_v11 = vmax.f32 %v2771_v4, 0.0 }
 0x4d2   : > { %v2583_v12 = vpop.f32.mrf.mxu0  ;;  %v2776_v13 = vpop.f32.mrf.mxu1 }
 0x4d3   : > { %v2584_v15 = vadd.f32 %v2583_v12, %v6417_v39  ;;  %v2777_v16 = vadd.f32 %v2776_v13, %v6419_v47  ;;  %v4747_v18 = vpack.c.bf16 %v2948_v51, %v2947_v9  ;;  %v4748_v19 = vpack.c.bf16 %v2950_v11, %v2949_v10 }
 0x4d4   : > { %v2585_v21 = vpop.f32.mrf.mxu0  ;;  %v2778_v22 = vpop.f32.mrf.mxu1  ;;  %v2955_v24 = vmax.f32 %v2582_v7, 0.0  ;;  %v2957_v25 = vmax.f32 %v2775_v8, 0.0 }
 0x4d5   : > { %v2956_v26 = vmax.f32 %v2584_v15, 0.0  ;;  %v2958_v27 = vmax.f32 %v2777_v16, 0.0  ;;  %4094 = vst [vmem:[%s6202_s19 + $0xb0] sm:$0xff] %v4747_v18  ;;  %4095 = vst [vmem:[%s6202_s19 + $0xb8] sm:$0xff] %v4748_v19  ;;  %v2586_v5 = vadd.f32 %v2585_v21, %v6409_v31  ;;  %v2779_v28 = vadd.f32 %v2778_v22, %v6411_v34 }
 0x4d6   : > { %v2587_v29 = vpop.f32.mrf.mxu0  ;;  %v2780_v30 = vpop.f32.mrf.mxu1 }
 0x4d7   : > { %v4751_v23 = vpack.c.bf16 %v2956_v26, %v2955_v24  ;;  %v4752_v42 = vpack.c.bf16 %v2958_v27, %v2957_v25  ;;  %v2588_v48 = vadd.f32 %v2587_v29, %v6417_v39  ;;  %v2781_v49 = vadd.f32 %v2780_v30, %v6419_v47 }
 0x4d8   : > { %v2591_v14 = vpop.f32.mrf.mxu0  ;;  %v2784_v37 = vpop.f32.mrf.mxu1  ;;  %v2963_v45 = vmax.f32 %v2586_v5, 0.0  ;;  %v2965_v46 = vmax.f32 %v2779_v28, 0.0 }
 0x4d9   : > { %4098 = vst [vmem:[%s6202_s19 + $0xd0] sm:$0xff] %v4751_v23  ;;  %4099 = vst [vmem:[%s6202_s19 + $0xd8] sm:$0xff] %v4752_v42  ;;  %v2592_v40 = vadd.f32 %v2591_v14, %v6409_v31  ;;  %v2785_v44 = vadd.f32 %v2784_v37, %v6411_v34  ;;  %v2964_v2 = vmax.f32 %v2588_v48, 0.0  ;;  %v2966_v38 = vmax.f32 %v2781_v49, 0.0 }
 0x4da   : > { %v2593_v60 = vpop.f32.mrf.mxu0  ;;  %v2786_v63 = vpop.f32.mrf.mxu1 }
 0x4db   : > { %v2594_v41 = vadd.f32 %v2593_v60, %v6417_v39  ;;  %v2787_v50 = vadd.f32 %v2786_v63, %v6419_v47  ;;  %v4755_v35 = vpack.c.bf16 %v2964_v2, %v2963_v45  ;;  %v4756_v58 = vpack.c.bf16 %v2966_v38, %v2965_v46 }
 0x4dc   : > { %v2595_v20 = vpop.f32.mrf.mxu0  ;;  %v2788_v33 = vpop.f32.mrf.mxu1  ;;  %v2971_v43 = vmax.f32 %v2592_v40, 0.0  ;;  %v2973_v54 = vmax.f32 %v2785_v44, 0.0 }
 0x4dd   : > { %v2972_v52 = vmax.f32 %v2594_v41, 0.0  ;;  %v2974_v53 = vmax.f32 %v2787_v50, 0.0  ;;  %4102 = vst [vmem:[%s6202_s19 + $0xf0] sm:$0xff] %v4755_v35  ;;  %4103 = vst [vmem:[%s6202_s19 + $0xf8] sm:$0xff] %v4756_v58  ;;  %v2596_v55 = vadd.f32 %v2595_v20, %v6409_v31  ;;  %v2789_v56 = vadd.f32 %v2788_v33, %v6411_v34 }
 0x4de   : > { %v2597_v57 = vpop.f32.mrf.mxu0  ;;  %v2790_v59 = vpop.f32.mrf.mxu1 }
 0x4df   : > { %v4759_v61 = vpack.c.bf16 %v2972_v52, %v2971_v43  ;;  %v4760_v62 = vpack.c.bf16 %v2974_v53, %v2973_v54  ;;  %v2598_v0 = vadd.f32 %v2597_v57, %v6417_v39  ;;  %v2791_v17 = vadd.f32 %v2790_v59, %v6419_v47 }
 0x4e0   : > { %v2601_v3 = vpop.f32.mrf.mxu0  ;;  %v2794_v36 = vpop.f32.mrf.mxu1  ;;  %v2979_v1 = vmax.f32 %v2596_v55, 0.0  ;;  %v2981_v6 = vmax.f32 %v2789_v56, 0.0 }
 0x4e1   : > { %4106 = vst [vmem:[%s6202_s19 + $0x110] sm:$0xff] %v4759_v61  ;;  %4107 = vst [vmem:[%s6202_s19 + $0x118] sm:$0xff] %v4760_v62  ;;  %v2602_v32 = vadd.f32 %v2601_v3, %v6409_v31  ;;  %v2795_v4 = vadd.f32 %v2794_v36, %v6411_v34  ;;  %v2980_v7 = vmax.f32 %v2598_v0, 0.0  ;;  %v2982_v8 = vmax.f32 %v2791_v17, 0.0 }
 0x4e2   : > { %v2603_v9 = vpop.f32.mrf.mxu0  ;;  %v2796_v10 = vpop.f32.mrf.mxu1 }
 0x4e3   : > { %v2604_v51 = vadd.f32 %v2603_v9, %v6417_v39  ;;  %v2797_v11 = vadd.f32 %v2796_v10, %v6419_v47  ;;  %v4763_v12 = vpack.c.bf16 %v2980_v7, %v2979_v1  ;;  %v4764_v13 = vpack.c.bf16 %v2982_v8, %v2981_v6 }
 0x4e4   : > { %v2605_v15 = vpop.f32.mrf.mxu0  ;;  %v2798_v16 = vpop.f32.mrf.mxu1  ;;  %v2987_v18 = vmax.f32 %v2602_v32, 0.0  ;;  %v2989_v19 = vmax.f32 %v2795_v4, 0.0 }
 0x4e5   : > { %v2988_v21 = vmax.f32 %v2604_v51, 0.0  ;;  %v2990_v22 = vmax.f32 %v2797_v11, 0.0  ;;  %4110 = vst [vmem:[%s6202_s19 + $0x130] sm:$0xff] %v4763_v12  ;;  %4111 = vst [vmem:[%s6202_s19 + $0x138] sm:$0xff] %v4764_v13  ;;  %v2606_v24 = vadd.f32 %v2605_v15, %v6409_v31  ;;  %v2799_v25 = vadd.f32 %v2798_v16, %v6411_v34 }
 0x4e6   : > { %v2607_v26 = vpop.f32.mrf.mxu0  ;;  %v2800_v27 = vpop.f32.mrf.mxu1 }
 0x4e7   : > { %v4767_v5 = vpack.c.bf16 %v2988_v21, %v2987_v18  ;;  %v4768_v28 = vpack.c.bf16 %v2990_v22, %v2989_v19  ;;  %v2608_v29 = vadd.f32 %v2607_v26, %v6417_v39  ;;  %v2801_v30 = vadd.f32 %v2800_v27, %v6419_v47 }
 0x4e8   : > { %v2611_v23 = vpop.f32.mrf.mxu0  ;;  %v2804_v42 = vpop.f32.mrf.mxu1  ;;  %v2995_v14 = vmax.f32 %v2606_v24, 0.0  ;;  %v2997_v37 = vmax.f32 %v2799_v25, 0.0 }
 0x4e9   : > { %4114 = vst [vmem:[%s6202_s19 + $0x150] sm:$0xff] %v4767_v5  ;;  %4115 = vst [vmem:[%s6202_s19 + $0x158] sm:$0xff] %v4768_v28  ;;  %v2612_v48 = vadd.f32 %v2611_v23, %v6409_v31  ;;  %v2805_v49 = vadd.f32 %v2804_v42, %v6411_v34  ;;  %v2996_v40 = vmax.f32 %v2608_v29, 0.0  ;;  %v2998_v44 = vmax.f32 %v2801_v30, 0.0 }
 0x4ea   : > { %v2613_v45 = vpop.f32.mrf.mxu0  ;;  %v2806_v46 = vpop.f32.mrf.mxu1 }
 0x4eb   : > { %v2614_v2 = vadd.f32 %v2613_v45, %v6417_v39  ;;  %v2807_v38 = vadd.f32 %v2806_v46, %v6419_v47  ;;  %v4771_v60 = vpack.c.bf16 %v2996_v40, %v2995_v14  ;;  %v4772_v63 = vpack.c.bf16 %v2998_v44, %v2997_v37 }
 0x4ec   : > { %v2615_v41 = vpop.f32.mrf.mxu0  ;;  %v2808_v50 = vpop.f32.mrf.mxu1  ;;  %v3003_v35 = vmax.f32 %v2612_v48, 0.0  ;;  %v3005_v58 = vmax.f32 %v2805_v49, 0.0 }
 0x4ed   : > { %v3004_v20 = vmax.f32 %v2614_v2, 0.0  ;;  %v3006_v33 = vmax.f32 %v2807_v38, 0.0  ;;  %4118 = vst [vmem:[%s6202_s19 + $0x170] sm:$0xff] %v4771_v60  ;;  %4119 = vst [vmem:[%s6202_s19 + $0x178] sm:$0xff] %v4772_v63  ;;  %v2616_v43 = vadd.f32 %v2615_v41, %v6409_v31  ;;  %v2809_v54 = vadd.f32 %v2808_v50, %v6411_v34 }
 0x4ee   : > { %v2617_v52 = vpop.f32.mrf.mxu0  ;;  %v2810_v53 = vpop.f32.mrf.mxu1 }
 0x4ef   : > { %v4775_v55 = vpack.c.bf16 %v3004_v20, %v3003_v35  ;;  %v4776_v56 = vpack.c.bf16 %v3006_v33, %v3005_v58  ;;  %v2618_v57 = vadd.f32 %v2617_v52, %v6417_v39  ;;  %v2811_v59 = vadd.f32 %v2810_v53, %v6419_v47 }
 0x4f0   : > { %v2621_v61 = vpop.f32.mrf.mxu0  ;;  %v2814_v62 = vpop.f32.mrf.mxu1  ;;  %v3011_v3 = vmax.f32 %v2616_v43, 0.0  ;;  %v3013_v36 = vmax.f32 %v2809_v54, 0.0 }
 0x4f1   : > { %4122 = vst [vmem:[%s6202_s19 + $0x190] sm:$0xff] %v4775_v55  ;;  %4123 = vst [vmem:[%s6202_s19 + $0x198] sm:$0xff] %v4776_v56  ;;  %v2622_v0 = vadd.f32 %v2621_v61, %v6409_v31  ;;  %v2815_v17 = vadd.f32 %v2814_v62, %v6411_v34  ;;  %v3012_v32 = vmax.f32 %v2618_v57, 0.0  ;;  %v3014_v4 = vmax.f32 %v2811_v59, 0.0 }
 0x4f2   : > { %v2623_v1 = vpop.f32.mrf.mxu0  ;;  %v2816_v6 = vpop.f32.mrf.mxu1 }
 0x4f3   : > { %v2624_v7 = vadd.f32 %v2623_v1, %v6417_v39  ;;  %v2817_v8 = vadd.f32 %v2816_v6, %v6419_v47  ;;  %v4779_v9 = vpack.c.bf16 %v3012_v32, %v3011_v3  ;;  %v4780_v10 = vpack.c.bf16 %v3014_v4, %v3013_v36 }
 0x4f4   : > { %v2625_v51 = vpop.f32.mrf.mxu0  ;;  %v2818_v11 = vpop.f32.mrf.mxu1  ;;  %v3019_v12 = vmax.f32 %v2622_v0, 0.0  ;;  %v3021_v13 = vmax.f32 %v2815_v17, 0.0 }
 0x4f5   : > { %v3020_v15 = vmax.f32 %v2624_v7, 0.0  ;;  %v3022_v16 = vmax.f32 %v2817_v8, 0.0  ;;  %4126 = vst [vmem:[%s6202_s19 + $0x1b0] sm:$0xff] %v4779_v9  ;;  %4127 = vst [vmem:[%s6202_s19 + $0x1b8] sm:$0xff] %v4780_v10  ;;  %v2626_v18 = vadd.f32 %v2625_v51, %v6409_v31  ;;  %v2819_v19 = vadd.f32 %v2818_v11, %v6411_v34 }
 0x4f6   : > { %v2627_v21 = vpop.f32.mrf.mxu0  ;;  %v2820_v22 = vpop.f32.mrf.mxu1 }
 0x4f7   : > { %v4783_v24 = vpack.c.bf16 %v3020_v15, %v3019_v12  ;;  %v4784_v25 = vpack.c.bf16 %v3022_v16, %v3021_v13  ;;  %v2628_v26 = vadd.f32 %v2627_v21, %v6417_v39  ;;  %v2821_v27 = vadd.f32 %v2820_v22, %v6419_v47 }
 0x4f8   : > { %v2631_v5 = vpop.f32.mrf.mxu0  ;;  %v2824_v28 = vpop.f32.mrf.mxu1  ;;  %v3027_v23 = vmax.f32 %v2626_v18, 0.0  ;;  %v3029_v42 = vmax.f32 %v2819_v19, 0.0 }
 0x4f9   : > { %4130 = vst [vmem:[%s6202_s19 + $0x1d0] sm:$0xff] %v4783_v24  ;;  %4131 = vst [vmem:[%s6202_s19 + $0x1d8] sm:$0xff] %v4784_v25  ;;  %v2632_v29 = vadd.f32 %v2631_v5, %v6409_v31  ;;  %v2825_v30 = vadd.f32 %v2824_v28, %v6411_v34  ;;  %v3028_v48 = vmax.f32 %v2628_v26, 0.0  ;;  %v3030_v49 = vmax.f32 %v2821_v27, 0.0 }
 0x4fa   : > { %v2633_v14 = vpop.f32.mrf.mxu0  ;;  %v2826_v37 = vpop.f32.mrf.mxu1 }
 0x4fb   : > { %v2634_v40 = vadd.f32 %v2633_v14, %v6417_v39  ;;  %v2827_v44 = vadd.f32 %v2826_v37, %v6419_v47  ;;  %v4787_v45 = vpack.c.bf16 %v3028_v48, %v3027_v23  ;;  %v4788_v46 = vpack.c.bf16 %v3030_v49, %v3029_v42 }
 0x4fc   : > { %v2635_v2 = vpop.f32.mrf.mxu0  ;;  %v2828_v38 = vpop.f32.mrf.mxu1  ;;  %v3035_v60 = vmax.f32 %v2632_v29, 0.0  ;;  %v3037_v63 = vmax.f32 %v2825_v30, 0.0 }
 0x4fd   : > { %v3036_v41 = vmax.f32 %v2634_v40, 0.0  ;;  %v3038_v50 = vmax.f32 %v2827_v44, 0.0  ;;  %4134 = vst [vmem:[%s6202_s19 + $0x1f0] sm:$0xff] %v4787_v45  ;;  %4135 = vst [vmem:[%s6202_s19 + $0x1f8] sm:$0xff] %v4788_v46  ;;  %v2636_v35 = vadd.f32 %v2635_v2, %v6409_v31  ;;  %v2829_v58 = vadd.f32 %v2828_v38, %v6411_v34 }
 0x4fe   : > { %v2637_v20 = vpop.f32.mrf.mxu0  ;;  %v2830_v33 = vpop.f32.mrf.mxu1 }
 0x4ff   : > { %v4791_v43 = vpack.c.bf16 %v3036_v41, %v3035_v60  ;;  %v4792_v54 = vpack.c.bf16 %v3038_v50, %v3037_v63  ;;  %v2638_v52 = vadd.f32 %v2637_v20, %v6417_v39  ;;  %v2831_v53 = vadd.f32 %v2830_v33, %v6419_v47 }
 0x500   : > { %v2641_v55 = vpop.f32.mrf.mxu0  ;;  %v2834_v56 = vpop.f32.mrf.mxu1  ;;  %v3043_v61 = vmax.f32 %v2636_v35, 0.0  ;;  %v3045_v62 = vmax.f32 %v2829_v58, 0.0 }
 0x501   : > { %4138 = vst [vmem:[%s6202_s19 + $0x210] sm:$0xff] %v4791_v43  ;;  %4139 = vst [vmem:[%s6202_s19 + $0x218] sm:$0xff] %v4792_v54  ;;  %v2642_v57 = vadd.f32 %v2641_v55, %v6409_v31  ;;  %v2835_v59 = vadd.f32 %v2834_v56, %v6411_v34  ;;  %v3044_v0 = vmax.f32 %v2638_v52, 0.0  ;;  %v3046_v17 = vmax.f32 %v2831_v53, 0.0 }
 0x502   : > { %v2643_v3 = vpop.f32.mrf.mxu0  ;;  %v2836_v36 = vpop.f32.mrf.mxu1 }
 0x503   : > { %v2644_v32 = vadd.f32 %v2643_v3, %v6417_v39  ;;  %v2837_v4 = vadd.f32 %v2836_v36, %v6419_v47  ;;  %v4795_v1 = vpack.c.bf16 %v3044_v0, %v3043_v61  ;;  %v4796_v6 = vpack.c.bf16 %v3046_v17, %v3045_v62 }
 0x504   : > { %v2645_v7 = vpop.f32.mrf.mxu0  ;;  %v2838_v8 = vpop.f32.mrf.mxu1  ;;  %v3051_v9 = vmax.f32 %v2642_v57, 0.0  ;;  %v3053_v10 = vmax.f32 %v2835_v59, 0.0 }
 0x505   : > { %v3052_v51 = vmax.f32 %v2644_v32, 0.0  ;;  %v3054_v11 = vmax.f32 %v2837_v4, 0.0  ;;  %4142 = vst [vmem:[%s6202_s19 + $0x230] sm:$0xff] %v4795_v1  ;;  %4143 = vst [vmem:[%s6202_s19 + $0x238] sm:$0xff] %v4796_v6  ;;  %v2646_v12 = vadd.f32 %v2645_v7, %v6409_v31  ;;  %v2839_v13 = vadd.f32 %v2838_v8, %v6411_v34 }
 0x506   : > { %v2647_v15 = vpop.f32.mrf.mxu0  ;;  %v2840_v16 = vpop.f32.mrf.mxu1 }
 0x507   : > { %v4799_v18 = vpack.c.bf16 %v3052_v51, %v3051_v9  ;;  %v4800_v19 = vpack.c.bf16 %v3054_v11, %v3053_v10  ;;  %v2648_v21 = vadd.f32 %v2647_v15, %v6417_v39  ;;  %v2841_v22 = vadd.f32 %v2840_v16, %v6419_v47 }
 0x508   : > { %v2651_v24 = vpop.f32.mrf.mxu0  ;;  %v2844_v25 = vpop.f32.mrf.mxu1  ;;  %v3059_v5 = vmax.f32 %v2646_v12, 0.0  ;;  %v3061_v28 = vmax.f32 %v2839_v13, 0.0 }
 0x509   : > { %4146 = vst [vmem:[%s6202_s19 + $0x250] sm:$0xff] %v4799_v18  ;;  %4147 = vst [vmem:[%s6202_s19 + $0x258] sm:$0xff] %v4800_v19  ;;  %v2652_v26 = vadd.f32 %v2651_v24, %v6409_v31  ;;  %v2845_v27 = vadd.f32 %v2844_v25, %v6411_v34  ;;  %v3060_v29 = vmax.f32 %v2648_v21, 0.0  ;;  %v3062_v30 = vmax.f32 %v2841_v22, 0.0 }
 0x50a   : > { %v2653_v23 = vpop.f32.mrf.mxu0  ;;  %v2846_v42 = vpop.f32.mrf.mxu1 }
 0x50b   : > { %v2654_v48 = vadd.f32 %v2653_v23, %v6417_v39  ;;  %v2847_v49 = vadd.f32 %v2846_v42, %v6419_v47  ;;  %v4803_v14 = vpack.c.bf16 %v3060_v29, %v3059_v5  ;;  %v4804_v37 = vpack.c.bf16 %v3062_v30, %v3061_v28 }
 0x50c   : > { %v2655_v40 = vpop.f32.mrf.mxu0  ;;  %v2848_v44 = vpop.f32.mrf.mxu1  ;;  %v3067_v45 = vmax.f32 %v2652_v26, 0.0  ;;  %v3069_v46 = vmax.f32 %v2845_v27, 0.0 }
 0x50d   : > { %v3068_v2 = vmax.f32 %v2654_v48, 0.0  ;;  %v3070_v38 = vmax.f32 %v2847_v49, 0.0  ;;  %4150 = vst [vmem:[%s6202_s19 + $0x270] sm:$0xff] %v4803_v14  ;;  %4151 = vst [vmem:[%s6202_s19 + $0x278] sm:$0xff] %v4804_v37  ;;  %v2656_v60 = vadd.f32 %v2655_v40, %v6409_v31  ;;  %v2849_v63 = vadd.f32 %v2848_v44, %v6411_v34 }
 0x50e   : > { %v2657_v41 = vpop.f32.mrf.mxu0  ;;  %v2850_v50 = vpop.f32.mrf.mxu1 }
 0x50f   : > { %v4807_v35 = vpack.c.bf16 %v3068_v2, %v3067_v45  ;;  %v4808_v58 = vpack.c.bf16 %v3070_v38, %v3069_v46  ;;  %v2658_v20 = vadd.f32 %v2657_v41, %v6417_v39  ;;  %v2851_v33 = vadd.f32 %v2850_v50, %v6419_v47 }
 0x510   : > { %v2661_v43 = vpop.f32.mrf.mxu0  ;;  %v2854_v54 = vpop.f32.mrf.mxu1  ;;  %v3075_v55 = vmax.f32 %v2656_v60, 0.0  ;;  %v3077_v56 = vmax.f32 %v2849_v63, 0.0 }
 0x511   : > { %4154 = vst [vmem:[%s6202_s19 + $0x290] sm:$0xff] %v4807_v35  ;;  %4155 = vst [vmem:[%s6202_s19 + $0x298] sm:$0xff] %v4808_v58  ;;  %v2662_v52 = vadd.f32 %v2661_v43, %v6409_v31  ;;  %v2855_v53 = vadd.f32 %v2854_v54, %v6411_v34  ;;  %v3076_v57 = vmax.f32 %v2658_v20, 0.0  ;;  %v3078_v59 = vmax.f32 %v2851_v33, 0.0 }
 0x512   : > { %v2663_v61 = vpop.f32.mrf.mxu0  ;;  %v2856_v62 = vpop.f32.mrf.mxu1 }
 0x513   : > { %v2664_v0 = vadd.f32 %v2663_v61, %v6417_v39  ;;  %v2857_v17 = vadd.f32 %v2856_v62, %v6419_v47  ;;  %v4811_v3 = vpack.c.bf16 %v3076_v57, %v3075_v55  ;;  %v4812_v36 = vpack.c.bf16 %v3078_v59, %v3077_v56 }
 0x514   : > { %v2665_v32 = vpop.f32.mrf.mxu0  ;;  %v2858_v4 = vpop.f32.mrf.mxu1  ;;  %v3083_v1 = vmax.f32 %v2662_v52, 0.0  ;;  %v3085_v6 = vmax.f32 %v2855_v53, 0.0 }
 0x515   : > { %v3084_v7 = vmax.f32 %v2664_v0, 0.0  ;;  %v3086_v8 = vmax.f32 %v2857_v17, 0.0  ;;  %4158 = vst [vmem:[%s6202_s19 + $0x2b0] sm:$0xff] %v4811_v3  ;;  %4159 = vst [vmem:[%s6202_s19 + $0x2b8] sm:$0xff] %v4812_v36  ;;  %v2666_v9 = vadd.f32 %v2665_v32, %v6409_v31  ;;  %v2859_v10 = vadd.f32 %v2858_v4, %v6411_v34 }
 0x516   : > { %v2667_v51 = vpop.f32.mrf.mxu0  ;;  %v2860_v11 = vpop.f32.mrf.mxu1 }
 0x517   : > { %v4815_v12 = vpack.c.bf16 %v3084_v7, %v3083_v1  ;;  %v4816_v13 = vpack.c.bf16 %v3086_v8, %v3085_v6  ;;  %v2668_v15 = vadd.f32 %v2667_v51, %v6417_v39  ;;  %v2861_v16 = vadd.f32 %v2860_v11, %v6419_v47 }
 0x518   : > { %v2671_v18 = vpop.f32.mrf.mxu0  ;;  %v2864_v19 = vpop.f32.mrf.mxu1  ;;  %v3091_v24 = vmax.f32 %v2666_v9, 0.0  ;;  %v3093_v25 = vmax.f32 %v2859_v10, 0.0 }
 0x519   : > { %4162 = vst [vmem:[%s6202_s19 + $0x2d0] sm:$0xff] %v4815_v12  ;;  %4163 = vst [vmem:[%s6202_s19 + $0x2d8] sm:$0xff] %v4816_v13  ;;  %v2672_v21 = vadd.f32 %v2671_v18, %v6409_v31  ;;  %v2865_v22 = vadd.f32 %v2864_v19, %v6411_v34  ;;  %v3092_v26 = vmax.f32 %v2668_v15, 0.0  ;;  %v3094_v27 = vmax.f32 %v2861_v16, 0.0 }
 0x51a   : > { %v2673_v5 = vpop.f32.mrf.mxu0  ;;  %v2866_v28 = vpop.f32.mrf.mxu1 }
 0x51b   : > { %v2674_v29 = vadd.f32 %v2673_v5, %v6417_v39  ;;  %v2867_v30 = vadd.f32 %v2866_v28, %v6419_v47  ;;  %v4819_v23 = vpack.c.bf16 %v3092_v26, %v3091_v24  ;;  %v4820_v42 = vpack.c.bf16 %v3094_v27, %v3093_v25 }
 0x51c   : > { %v2675_v48 = vpop.f32.mrf.mxu0  ;;  %v2868_v49 = vpop.f32.mrf.mxu1  ;;  %v3099_v14 = vmax.f32 %v2672_v21, 0.0  ;;  %v3101_v37 = vmax.f32 %v2865_v22, 0.0 }
 0x51d   : > { %v3100_v40 = vmax.f32 %v2674_v29, 0.0  ;;  %v3102_v44 = vmax.f32 %v2867_v30, 0.0  ;;  %4166 = vst [vmem:[%s6202_s19 + $0x2f0] sm:$0xff] %v4819_v23  ;;  %4167 = vst [vmem:[%s6202_s19 + $0x2f8] sm:$0xff] %v4820_v42  ;;  %v2676_v45 = vadd.f32 %v2675_v48, %v6409_v31  ;;  %v2869_v46 = vadd.f32 %v2868_v49, %v6411_v34 }
 0x51e   : > { %v2677_v2 = vpop.f32.mrf.mxu0  ;;  %v2870_v38 = vpop.f32.mrf.mxu1 }
 0x51f   : > { %v4823_v60 = vpack.c.bf16 %v3100_v40, %v3099_v14  ;;  %v4824_v63 = vpack.c.bf16 %v3102_v44, %v3101_v37  ;;  %v2678_v41 = vadd.f32 %v2677_v2, %v6417_v39  ;;  %v2871_v50 = vadd.f32 %v2870_v38, %v6419_v47 }
 0x520   : > { %v2681_v35 = vpop.f32.mrf.mxu0  ;;  %v2874_v58 = vpop.f32.mrf.mxu1  ;;  %v3107_v43 = vmax.f32 %v2676_v45, 0.0  ;;  %v3109_v54 = vmax.f32 %v2869_v46, 0.0 }
 0x521   : > { %4170 = vst [vmem:[%s6202_s19 + $0x310] sm:$0xff] %v4823_v60  ;;  %4171 = vst [vmem:[%s6202_s19 + $0x318] sm:$0xff] %v4824_v63  ;;  %v2682_v20 = vadd.f32 %v2681_v35, %v6409_v31  ;;  %v2875_v33 = vadd.f32 %v2874_v58, %v6411_v34  ;;  %v3108_v52 = vmax.f32 %v2678_v41, 0.0  ;;  %v3110_v53 = vmax.f32 %v2871_v50, 0.0 }
 0x522   : > { %v2683_v55 = vpop.f32.mrf.mxu0  ;;  %v2876_v56 = vpop.f32.mrf.mxu1 }
 0x523   : > { %v2684_v57 = vadd.f32 %v2683_v55, %v6417_v39  ;;  %v2877_v59 = vadd.f32 %v2876_v56, %v6419_v47  ;;  %v4827_v61 = vpack.c.bf16 %v3108_v52, %v3107_v43  ;;  %v4828_v62 = vpack.c.bf16 %v3110_v53, %v3109_v54 }
 0x524   : > { %v2685_v0 = vpop.f32.mrf.mxu0  ;;  %v2878_v17 = vpop.f32.mrf.mxu1  ;;  %v3115_v3 = vmax.f32 %v2682_v20, 0.0  ;;  %v3117_v36 = vmax.f32 %v2875_v33, 0.0 }
 0x525   : > { %v3116_v32 = vmax.f32 %v2684_v57, 0.0  ;;  %v3118_v4 = vmax.f32 %v2877_v59, 0.0  ;;  %4174 = vst [vmem:[%s6202_s19 + $0x330] sm:$0xff] %v4827_v61  ;;  %4175 = vst [vmem:[%s6202_s19 + $0x338] sm:$0xff] %v4828_v62  ;;  %v2686_v1 = vadd.f32 %v2685_v0, %v6409_v31  ;;  %v2879_v6 = vadd.f32 %v2878_v17, %v6411_v34 }
 0x526   : > { %v2687_v7 = vpop.f32.mrf.mxu0  ;;  %v2880_v8 = vpop.f32.mrf.mxu1 }
 0x527   : > { %v4831_v9 = vpack.c.bf16 %v3116_v32, %v3115_v3  ;;  %v4832_v10 = vpack.c.bf16 %v3118_v4, %v3117_v36  ;;  %v2688_v51 = vadd.f32 %v2687_v7, %v6417_v39  ;;  %v2881_v11 = vadd.f32 %v2880_v8, %v6419_v47 }
 0x528   : > { %v2691_v12 = vpop.f32.mrf.mxu0  ;;  %v2884_v13 = vpop.f32.mrf.mxu1  ;;  %v3123_v18 = vmax.f32 %v2686_v1, 0.0  ;;  %v3125_v19 = vmax.f32 %v2879_v6, 0.0 }
 0x529   : > { %4178 = vst [vmem:[%s6202_s19 + $0x350] sm:$0xff] %v4831_v9  ;;  %4179 = vst [vmem:[%s6202_s19 + $0x358] sm:$0xff] %v4832_v10  ;;  %v2692_v15 = vadd.f32 %v2691_v12, %v6409_v31  ;;  %v2885_v16 = vadd.f32 %v2884_v13, %v6411_v34  ;;  %v3124_v21 = vmax.f32 %v2688_v51, 0.0  ;;  %v3126_v22 = vmax.f32 %v2881_v11, 0.0 }
 0x52a   : > { %v2693_v24 = vpop.f32.mrf.mxu0  ;;  %v2886_v25 = vpop.f32.mrf.mxu1 }
 0x52b   : > { %v2694_v26 = vadd.f32 %v2693_v24, %v6417_v39  ;;  %v2887_v27 = vadd.f32 %v2886_v25, %v6419_v47  ;;  %v4835_v5 = vpack.c.bf16 %v3124_v21, %v3123_v18  ;;  %v4836_v28 = vpack.c.bf16 %v3126_v22, %v3125_v19 }
 0x52c   : > { %v2695_v29 = vpop.f32.mrf.mxu0  ;;  %v2888_v30 = vpop.f32.mrf.mxu1  ;;  %v3131_v23 = vmax.f32 %v2692_v15, 0.0  ;;  %v3133_v42 = vmax.f32 %v2885_v16, 0.0 }
 0x52d   : > { %v3132_v48 = vmax.f32 %v2694_v26, 0.0  ;;  %v3134_v49 = vmax.f32 %v2887_v27, 0.0  ;;  %4182 = vst [vmem:[%s6202_s19 + $0x370] sm:$0xff] %v4835_v5  ;;  %4183 = vst [vmem:[%s6202_s19 + $0x378] sm:$0xff] %v4836_v28  ;;  %v2696_v14 = vadd.f32 %v2695_v29, %v6409_v31  ;;  %v2889_v37 = vadd.f32 %v2888_v30, %v6411_v34 }
 0x52e   : > { %v2697_v40 = vpop.f32.mrf.mxu0  ;;  %v2890_v44 = vpop.f32.mrf.mxu1 }
 0x52f   : > { %v4839_v45 = vpack.c.bf16 %v3132_v48, %v3131_v23  ;;  %v4840_v46 = vpack.c.bf16 %v3134_v49, %v3133_v42  ;;  %v2698_v2 = vadd.f32 %v2697_v40, %v6417_v39  ;;  %v2891_v38 = vadd.f32 %v2890_v44, %v6419_v47 }
 0x530   : > { %v2701_v60 = vpop.f32.mrf.mxu0  ;;  %v2894_v63 = vpop.f32.mrf.mxu1  ;;  %v3139_v35 = vmax.f32 %v2696_v14, 0.0  ;;  %v3141_v58 = vmax.f32 %v2889_v37, 0.0 }
 0x531   : > { %4186 = vst [vmem:[%s6202_s19 + $0x390] sm:$0xff] %v4839_v45  ;;  %4187 = vst [vmem:[%s6202_s19 + $0x398] sm:$0xff] %v4840_v46  ;;  %v2702_v41 = vadd.f32 %v2701_v60, %v6409_v31  ;;  %v2895_v50 = vadd.f32 %v2894_v63, %v6411_v34  ;;  %v3140_v20 = vmax.f32 %v2698_v2, 0.0  ;;  %v3142_v33 = vmax.f32 %v2891_v38, 0.0 }
 0x532   : > { %v2703_v43 = vpop.f32.mrf.mxu0  ;;  %v2896_v54 = vpop.f32.mrf.mxu1 }
 0x533   : > { %v2704_v52 = vadd.f32 %v2703_v43, %v6417_v39  ;;  %v2897_v53 = vadd.f32 %v2896_v54, %v6419_v47  ;;  %v4843_v55 = vpack.c.bf16 %v3140_v20, %v3139_v35  ;;  %v4844_v56 = vpack.c.bf16 %v3142_v33, %v3141_v58 }
 0x534   : > { %v2705_v57 = vpop.f32.mrf.mxu0  ;;  %v2898_v59 = vpop.f32.mrf.mxu1  ;;  %v3147_v61 = vmax.f32 %v2702_v41, 0.0  ;;  %v3149_v62 = vmax.f32 %v2895_v50, 0.0 }
 0x535   : > { %v3148_v0 = vmax.f32 %v2704_v52, 0.0  ;;  %v3150_v17 = vmax.f32 %v2897_v53, 0.0  ;;  %4190 = vst [vmem:[%s6202_s19 + $0x3b0] sm:$0xff] %v4843_v55  ;;  %4191 = vst [vmem:[%s6202_s19 + $0x3b8] sm:$0xff] %v4844_v56  ;;  %v2706_v3 = vadd.f32 %v2705_v57, %v6409_v31  ;;  %v2899_v36 = vadd.f32 %v2898_v59, %v6411_v34 }
 0x536   : > { %v2707_v32 = vpop.f32.mrf.mxu0  ;;  %v2900_v4 = vpop.f32.mrf.mxu1 }
 0x537   : > { %v4847_v1 = vpack.c.bf16 %v3148_v0, %v3147_v61  ;;  %v4848_v6 = vpack.c.bf16 %v3150_v17, %v3149_v62  ;;  %v2708_v7 = vadd.f32 %v2707_v32, %v6417_v39  ;;  %v2901_v8 = vadd.f32 %v2900_v4, %v6419_v47 }
 0x538   : > { %v3155_v9 = vmax.f32 %v2706_v3, 0.0  ;;  %v3157_v31 = vmax.f32 %v2899_v36, 0.0 }
 0x539   : > { %4194 = vst [vmem:[%s6202_s19 + $0x3d0] sm:$0xff] %v4847_v1  ;;  %4195 = vst [vmem:[%s6202_s19 + $0x3d8] sm:$0xff] %v4848_v6  ;;  %v3156_v10 = vmax.f32 %v2708_v7, 0.0  ;;  %v3158_v34 = vmax.f32 %v2901_v8, 0.0 }
 0x53b   : > { %v4851_v39 = vpack.c.bf16 %v3156_v10, %v3155_v9  ;;  %v4852_v47 = vpack.c.bf16 %v3158_v34, %v3157_v31 }
 0x53d   : > { %4198 = vst [vmem:[%s6202_s19 + $0x3f0] sm:$0xff] %v4851_v39  ;;  %4199 = vst [vmem:[%s6202_s19 + $0x3f8] sm:$0xff] %v4852_v47 }
 0x53e   : > { %5245 = shalt.err (!%p5242_p9)
}
 0x53f   : > { %s5246_s18 = scalar_lea.hbm %s6622_s17, 16384  ;;  %s5250_s27 = scalar_lea.hbm %s6687_s12, 32768 }
 0x540   : > { %p5247_p12 = scmp.ne.s32.totalorder %s6622_s17, %s5246_s18  ;;  %p5251_p5 = scmp.lt.s32.totalorder %s6622_s17, %s6687_s12 }
 0x541   : > { %p5252_p3 = scmp.lt.s32.totalorder %s5250_s27, %s5246_s18 }
 0x542   : > { %p5248_p1 = pnand %p5247_p12, %p6701_p10 }
 0x543   : > { %p5253_p4 = por %p5252_p3, %p5251_p5 }
 0x544   : > { %p5249_p2 = pneg %p5248_p1 }
 0x546   : > { %p5254_p8 = pnand %p5253_p4, %p5249_p2 }
 0x548   : > { %5257 = shalt.err (!%p5254_p8)
}
 0x549   : > { %s5324_s20 = smov 512   ;;  %s5325_s28 = smov 32  }
 0x54a   : > { %5094 = dma.vmem_to_hbm [thread:$0]  (%p6701_p10), %s6624_s23, 16384, %s6622_s17, %s6630_s24, %s5324_s20, %s5324_s20, %s5325_s28  }
 0x54b PF: > { %p5111_p11 = scmp.ge.s32.totalorder %s5316_s26, 2  ;;  %s4257_s14 = sand.u32 1, %s5296_s21  }
 0x54c   : > { %p6702_p13 = scmp.ne.s32.totalorder %s6696_s15, 0  ;;  %s4258_s30 = scalar_lea.sflag [#allocation4], %s4257_s14 }
 0x54e   : > { %p5104_p0 = pnand %p5111_p11, %p6702_p13 }
 0x550   : > { %p5105_p6 = pneg %p5104_p0 }
 0x552   : > { %5291 = dma.done.wait (%p5105_p6), %s4258_s30, 16384  }
 0x553   : > { %5293 = vsyncadd (%p5105_p6), %s4258_s30, 4294950912  ;;  %s28_s26 = sadd.s32 1, %s5316_s26   ;;  %s6703_s18 = sld [smem:[#allocation11_spill]] }
 0x554   : > { %p25_p7 = scmp.ge.s32.totalorder %s28_s26, 4   ;;  %s6704_s23 = sld [smem:[#allocation14_spill]] }
 0x555   : > { %s6705_s24 = sld [smem:[#allocation12_spill]]  ;;  %s6707_s21 = smov %s5300_s22 }
 0x556   : > { %s6706_s25 = sld [smem:[#allocation13_spill]]  ;;  %27 = sbr.rel (!%p25_p7) target bundleno = 6 (0x6), region = 120 }
 0x559   : > { %s6708_s22 = smov %s6703_s18 }
 0x55b   :  { %4263 = vsyncpa [#allocation3], 1 }
 0x55c   :  { %4265 = vsyncpa [#allocation3 + $0x1], 1 }
 0x55d   :  { %4266 = vsyncpa [#allocation6], 1 }
 0x55e   :  { %4267 = vsyncpa [#allocation4], 1 }
 0x55f   :  { %4269 = vsyncpa [#allocation4 + $0x1], 1 }

</bundles_post_ra>
